<compile_context>
chip_gen: v7x
topology: tpu7x:2x2x1
jax: 0.10.0
libtpu: 0.0.40
codegen_flags: <defaults>
</compile_context>

<pallas_src>
import jax
import jax.numpy as jnp
from jax.experimental import pallas as pl
from jax.experimental.pallas import tpu as pltpu

D = 768          # hidden size
LN_EPS = 1e-5
MAX_TB = 512     # row-tile cap (2 MXU tiles on v6e/v7x)
MIN_TB = 128     # preferred minimum row tile when searching the step count
_MiB = 1024 * 1024


def _cdiv(a, b):
    return -(-a // b)


def _round_up(x, m):
    return (x + m - 1) // m * m


def _layer_norm(h, gamma, beta):
    mu = jnp.mean(h, axis=-1, keepdims=True)
    var = jnp.mean((h - mu) ** 2, axis=-1, keepdims=True)
    return (h - mu) * jax.lax.rsqrt(var + LN_EPS) * gamma + beta


def head_kernel(t_ref, s_ref, c_ref,
                w_spv_s_ref, w_c_ref, w_mip_t_ref,
                vec_ref, out_ref):
    # bf16 activation tiles; all accumulation / LN done in f32.
    t = t_ref[...]
    s = s_ref[...]
    c = c_ref[...]

    vec = vec_ref[...]                       # [8, D] packed: b/g/beta per head
    b_spv, g_spv, be_spv = vec[0:1], vec[1:2], vec[2:3]
    b_mip, g_mip, be_mip = vec[3:4], vec[4:5], vec[5:6]

    # `contextual` drives both heads -> stream it through the MXU once against
    # the [D, 2D] concatenated weight (w_spv_c | w_mip_c).
    hc = jnp.dot(c, w_c_ref[...], preferred_element_type=jnp.float32)  # [tb,2D]

    # IE_SPV: Linear(cat[sentence, contextual]) == two summed 768x768 matmuls.
    h_in = (jnp.dot(s, w_spv_s_ref[...], preferred_element_type=jnp.float32)
            + hc[:, :D] + b_spv)
    spv = _layer_norm(h_in, g_spv, be_spv) + c.astype(jnp.float32)

    # M_MIP: Linear(cat[contextual, target]) == two summed 768x768 matmuls.
    h_m = (jnp.dot(t, w_mip_t_ref[...], preferred_element_type=jnp.float32)
           + hc[:, D:] + b_mip)
    mip = _layer_norm(h_m, g_mip, be_mip) + t.astype(jnp.float32)

    # concat([SPV, MIP], dim=1) -- lane-dense 2*768 output block.
    out_ref[:, :D] = spv.astype(out_ref.dtype)
    out_ref[:, D:] = mip.astype(out_ref.dtype)


def _choose_tiling(rows):
    """Pick (tile, padded_rows, n_steps): >=2 steps when possible (v7x dual TC),
    tile <= MAX_TB, minimal zero-row padding (avoids an extra jnp.pad pass)."""
    b8 = _round_up(max(rows, 8), 8)
    lo = max(2 if b8 >= 16 else 1, _cdiv(b8, MAX_TB))
    hi = max(lo, min(b8 // 8, max(_cdiv(b8, MIN_TB), 8)))
    best = None
    for n in range(lo, hi + 1):
        tb = _round_up(_cdiv(b8, n), 8)
        bp = n * tb
        key = (bp - b8, n)
        if best is None or key < best[0]:
            best = (key, tb, bp, n)
    _, tb, bp, n = best
    return tb, bp, n


def fused_spv_mip(target, sentence, contextual, params):
    """target/sentence/contextual: [rows, 768] bf16 -> [rows, 1536] bf16."""
    rows = target.shape[0]
    tb, bp, n_steps = _choose_tiling(rows)
    if bp != rows:
        pad = ((0, bp - rows), (0, 0))
        target = jnp.pad(target, pad)
        sentence = jnp.pad(sentence, pad)
        contextual = jnp.pad(contextual, pad)

    act_spec = pl.BlockSpec((tb, D), lambda i: (i, 0))
    w_sq_spec = pl.BlockSpec((D, D), lambda i: (0, 0))       # VMEM-resident
    w_c_spec = pl.BlockSpec((D, 2 * D), lambda i: (0, 0))    # VMEM-resident
    vec_spec = pl.BlockSpec((8, D), lambda i: (0, 0))
    out_spec = pl.BlockSpec((tb, 2 * D), lambda i: (i, 0))

    # VMEM footprint: double-buffered bf16 acts/out + resident bf16 weights.
    io_bytes = 2 * (3 * tb * D * 2 + tb * 2 * D * 2)
    io_bytes += 2 * (2 * D * D * 2 + D * 2 * D * 2 + 8 * D * 4)
    vmem_limit = min(40 * _MiB, _round_up(io_bytes, _MiB) + 24 * _MiB)

    flops = 2 * bp * D * (4 * D)          # four 768x768 matmul panels per row
    bytes_accessed = (3 * bp * D * 2 + bp * 2 * D * 2
                      + 4 * D * D * 2 + 8 * D * 4)
    cost = pl.CostEstimate(flops=flops, transcendentals=2 * bp,
                           bytes_accessed=bytes_accessed)

    out = pl.pallas_call(
        head_kernel,
        out_shape=jax.ShapeDtypeStruct((bp, 2 * D), jnp.bfloat16),
        grid=(n_steps,),
        in_specs=[act_spec, act_spec, act_spec,
                  w_sq_spec, w_c_spec, w_sq_spec,
                  vec_spec],
        out_specs=out_spec,
        compiler_params=pltpu.CompilerParams(
            dimension_semantics=("parallel",),
            vmem_limit_bytes=vmem_limit),
        cost_estimate=cost,
    )(target, sentence, contextual,
      params["w_spv_s"], params["w_c"], params["w_mip_t"],
      params["vecs"])
    return out[:rows]


def init_params(key):
    """nn.Linear(2*768, 768) weights are stored transposed ([in, out]) in bf16;
    the two `contextual` halves are concatenated along N into w_c [768, 1536];
    bias/gamma/beta packed into one [8, 768] f32 array
    (rows: b_spv, g_spv, be_spv, b_mip, g_mip, be_mip, pad, pad)."""
    ks = jax.random.split(key, 6)
    bound = 1.0 / jnp.sqrt(2.0 * D)

    def u(k, shape):
        return jax.random.uniform(k, shape, jnp.float32, -bound, bound)

    vecs = jnp.zeros((8, D), jnp.float32)
    vecs = vecs.at[0].set(u(ks[2], (D,)))     # b_spv
    vecs = vecs.at[1].set(jnp.ones((D,)))     # gamma_spv
    vecs = vecs.at[2].set(jnp.zeros((D,)))    # beta_spv
    vecs = vecs.at[3].set(u(ks[5], (D,)))     # b_mip
    vecs = vecs.at[4].set(jnp.ones((D,)))     # gamma_mip
    vecs = vecs.at[5].set(jnp.zeros((D,)))    # beta_mip

    w_spv_s = u(ks[0], (D, D)).astype(jnp.bfloat16)   # acts on `sentence`
    w_spv_c = u(ks[1], (D, D)).astype(jnp.bfloat16)   # acts on `contextual` (SPV)
    w_mip_c = u(ks[3], (D, D)).astype(jnp.bfloat16)   # acts on `contextual` (MIP)
    w_mip_t = u(ks[4], (D, D)).astype(jnp.bfloat16)   # acts on `target`

    return {
        "w_spv_s": w_spv_s,
        "w_c": jnp.concatenate([w_spv_c, w_mip_c], axis=1),   # [D, 2D]
        "w_mip_t": w_mip_t,
        "vecs": vecs,
    }


def model_forward(params, targets, sentences, contextuals):
    """targets/sentences/contextuals: [3, B, 768] stacked (axis0 = pos/neg/anc),
    ideally already bf16 from the encoder (a f32 input pays one extra cast
    pass).  Returns (pos_emb, neg_emb, anc_emb), each [B, 1536] bf16."""
    three, B, _ = targets.shape

    def prep(x):
        if x.dtype != jnp.bfloat16:
            x = x.astype(jnp.bfloat16)
        return x.reshape(three * B, D)     # contiguous-axis reshape: free

    out = fused_spv_mip(prep(targets), prep(sentences), prep(contextuals),
                        params)
    out = out.reshape(three, B, 2 * D)
    return out[0], out[1], out[2]


def _ref_head(target, sentence, contextual, params):
    """Pure-JAX reference (same bf16 weights/acts, f32 accumulation)."""
    v = params["vecs"]
    b_spv, g_spv, be_spv = v[0:1], v[1:2], v[2:3]
    b_mip, g_mip, be_mip = v[3:4], v[4:5], v[5:6]
    hc = jnp.dot(contextual, params["w_c"], preferred_element_type=jnp.float32)
    h_in = (jnp.dot(sentence, params["w_spv_s"],
                    preferred_element_type=jnp.float32) + hc[:, :D] + b_spv)
    spv = _layer_norm(h_in, g_spv, be_spv) + contextual.astype(jnp.float32)
    h_m = (jnp.dot(target, params["w_mip_t"],
                   preferred_element_type=jnp.float32) + hc[:, D:] + b_mip)
    mip = _layer_norm(h_m, g_mip, be_mip) + target.astype(jnp.float32)
    return jnp.concatenate([spv, mip], axis=1).astype(jnp.bfloat16)


if __name__ == "__main__":
    B = 4
    key = jax.random.PRNGKey(0)
    pkey, tkey, skey, ckey = jax.random.split(key, 4)
    params = init_params(pkey)

    # Stacked "encoder outputs" (axis 0 = pos/neg/anc) already in bf16, so the
    # kernel streams bf16 with no wrapper concat/cast pass.
    targets = jax.random.normal(tkey, (3, B, D), jnp.float32).astype(jnp.bfloat16)
    sentences = jax.random.normal(skey, (3, B, D), jnp.float32).astype(jnp.bfloat16)
    contextuals = jax.random.normal(ckey, (3, B, D), jnp.float32).astype(jnp.bfloat16)

    fwd = jax.jit(model_forward)
    outs = jax.block_until_ready(fwd(params, targets, sentences, contextuals))

    # Sanity-check all three fused outputs against a pure-JAX reference.
    for i, o in enumerate(outs):
        r = _ref_head(targets[i], sentences[i], contextuals[i], params)
        assert o.shape == (B, 2 * D)
        diff = jnp.max(jnp.abs(o.astype(jnp.float32) - r.astype(jnp.float32)))
        assert jnp.allclose(o.astype(jnp.float32), r.astype(jnp.float32),
                            atol=2e-2, rtol=2e-2), float(diff)

    print("KERNEL_OK")
</pallas_src>

<mosaic_0001>
module attributes {stable_mosaic.version = 11 : i64} {
  func.func @head_kernel(%arg0: i32, %arg1: memref<8x768xbf16, #tpu.memory_space<vmem>>, %arg2: memref<8x768xbf16, #tpu.memory_space<vmem>>, %arg3: memref<8x768xbf16, #tpu.memory_space<vmem>>, %arg4: memref<768x768xbf16, #tpu.memory_space<vmem>>, %arg5: memref<768x1536xbf16, #tpu.memory_space<vmem>>, %arg6: memref<768x768xbf16, #tpu.memory_space<vmem>>, %arg7: memref<8x768xf32, #tpu.memory_space<vmem>>, %arg8: memref<8x1536xbf16, #tpu.memory_space<vmem>>) attributes {dimension_semantics = [#tpu.dimension_semantics<parallel>], iteration_bounds = array<i64: 2>, scalar_prefetch = 0 : i64, scratch_operands = 0 : i64, tpu.core_type = #tpu.core_type<tc>, window_params = [{transform_indices = @transform_0, window_bounds = array<i64: 8, 768>}, {transform_indices = @transform_1, window_bounds = array<i64: 8, 768>}, {transform_indices = @transform_2, window_bounds = array<i64: 8, 768>}, {pipeline_mode = #tpu.pipeline_mode<synchronous>, transform_indices = @transform_3, window_bounds = array<i64: 768, 768>}, {pipeline_mode = #tpu.pipeline_mode<synchronous>, transform_indices = @transform_4, window_bounds = array<i64: 768, 1536>}, {pipeline_mode = #tpu.pipeline_mode<synchronous>, transform_indices = @transform_5, window_bounds = array<i64: 768, 768>}, {pipeline_mode = #tpu.pipeline_mode<synchronous>, transform_indices = @transform_6, window_bounds = array<i64: 8, 768>}, {transform_indices = @transform_7, window_bounds = array<i64: 8, 1536>}]} {
    %c0 = arith.constant 0 : index
    %c0_0 = arith.constant 0 : index
    %0 = vector.load %arg1[%c0, %c0_0] : memref<8x768xbf16, #tpu.memory_space<vmem>>, vector<8x768xbf16>
    %c0_1 = arith.constant 0 : index
    %c0_2 = arith.constant 0 : index
    %1 = vector.load %arg2[%c0_1, %c0_2] : memref<8x768xbf16, #tpu.memory_space<vmem>>, vector<8x768xbf16>
    %c0_3 = arith.constant 0 : index
    %c0_4 = arith.constant 0 : index
    %2 = vector.load %arg3[%c0_3, %c0_4] : memref<8x768xbf16, #tpu.memory_space<vmem>>, vector<8x768xbf16>
    %c0_5 = arith.constant 0 : index
    %c0_6 = arith.constant 0 : index
    %3 = vector.load %arg7[%c0_5, %c0_6] : memref<8x768xf32, #tpu.memory_space<vmem>>, vector<8x768xf32>
    %4 = vector.extract_strided_slice %3 {offsets = [0, 0], sizes = [1, 768], strides = [1, 1]} : vector<8x768xf32> to vector<1x768xf32>
    %5 = vector.extract_strided_slice %3 {offsets = [1, 0], sizes = [1, 768], strides = [1, 1]} : vector<8x768xf32> to vector<1x768xf32>
    %6 = vector.extract_strided_slice %3 {offsets = [2, 0], sizes = [1, 768], strides = [1, 1]} : vector<8x768xf32> to vector<1x768xf32>
    %7 = vector.extract_strided_slice %3 {offsets = [3, 0], sizes = [1, 768], strides = [1, 1]} : vector<8x768xf32> to vector<1x768xf32>
    %8 = vector.extract_strided_slice %3 {offsets = [4, 0], sizes = [1, 768], strides = [1, 1]} : vector<8x768xf32> to vector<1x768xf32>
    %9 = vector.extract_strided_slice %3 {offsets = [5, 0], sizes = [1, 768], strides = [1, 1]} : vector<8x768xf32> to vector<1x768xf32>
    %c0_7 = arith.constant 0 : index
    %c0_8 = arith.constant 0 : index
    %10 = vector.load %arg5[%c0_7, %c0_8] : memref<768x1536xbf16, #tpu.memory_space<vmem>>, vector<768x1536xbf16>
    %cst = arith.constant dense<0.000000e+00> : vector<8x1536xf32>
    %11 = tpu.matmul %2, %10, %cst {dimension_numbers = #tpu.dot_dimension_numbers<[1], [0], [0], [1], [0, 0, 1, 1], [], []>} : vector<8x768xbf16>, vector<768x1536xbf16>, vector<8x1536xf32> -> vector<8x1536xf32>
    %c0_9 = arith.constant 0 : index
    %c0_10 = arith.constant 0 : index
    %12 = vector.load %arg4[%c0_9, %c0_10] : memref<768x768xbf16, #tpu.memory_space<vmem>>, vector<768x768xbf16>
    %cst_11 = arith.constant dense<0.000000e+00> : vector<8x768xf32>
    %13 = tpu.matmul %1, %12, %cst_11 {dimension_numbers = #tpu.dot_dimension_numbers<[1], [0], [0], [1], [0, 0, 1, 1], [], []>} : vector<8x768xbf16>, vector<768x768xbf16>, vector<8x768xf32> -> vector<8x768xf32>
    %14 = vector.extract_strided_slice %11 {offsets = [0, 0], sizes = [8, 768], strides = [1, 1]} : vector<8x1536xf32> to vector<8x768xf32>
    %15 = arith.addf %13, %14 : vector<8x768xf32>
    %16 = vector.broadcast %4 : vector<1x768xf32> to vector<8x768xf32>
    %17 = arith.addf %15, %16 : vector<8x768xf32>
    %cst_12 = arith.constant dense<0.000000e+00> : vector<8xf32>
    %18 = vector.multi_reduction <add>, %17, %cst_12 [1] : vector<8x768xf32> to vector<8xf32>
    %19 = vector.shape_cast %18 : vector<8xf32> to vector<8x1xf32>
    %cst_13 = arith.constant 7.680000e+02 : f32
    %20 = vector.broadcast %cst_13 : f32 to vector<8x1xf32>
    %21 = arith.divf %19, %20 : vector<8x1xf32>
    %22 = vector.broadcast %21 : vector<8x1xf32> to vector<8x768xf32>
    %23 = arith.subf %17, %22 : vector<8x768xf32>
    %24 = arith.mulf %23, %23 : vector<8x768xf32>
    %cst_14 = arith.constant dense<0.000000e+00> : vector<8xf32>
    %25 = vector.multi_reduction <add>, %24, %cst_14 [1] : vector<8x768xf32> to vector<8xf32>
    %26 = vector.shape_cast %25 : vector<8xf32> to vector<8x1xf32>
    %cst_15 = arith.constant 7.680000e+02 : f32
    %27 = vector.broadcast %cst_15 : f32 to vector<8x1xf32>
    %28 = arith.divf %26, %27 : vector<8x1xf32>
    %29 = vector.broadcast %21 : vector<8x1xf32> to vector<8x768xf32>
    %30 = arith.subf %17, %29 : vector<8x768xf32>
    %cst_16 = arith.constant 9.99999974E-6 : f32
    %31 = vector.broadcast %cst_16 : f32 to vector<8x1xf32>
    %32 = arith.addf %28, %31 : vector<8x1xf32>
    %33 = math.rsqrt %32 : vector<8x1xf32>
    %34 = vector.broadcast %33 : vector<8x1xf32> to vector<8x768xf32>
    %35 = arith.mulf %30, %34 : vector<8x768xf32>
    %36 = vector.broadcast %5 : vector<1x768xf32> to vector<8x768xf32>
    %37 = arith.mulf %35, %36 : vector<8x768xf32>
    %38 = vector.broadcast %6 : vector<1x768xf32> to vector<8x768xf32>
    %39 = arith.addf %37, %38 : vector<8x768xf32>
    %40 = arith.extf %2 : vector<8x768xbf16> to vector<8x768xf32>
    %41 = arith.addf %39, %40 : vector<8x768xf32>
    %c0_17 = arith.constant 0 : index
    %c0_18 = arith.constant 0 : index
    %42 = vector.load %arg6[%c0_17, %c0_18] : memref<768x768xbf16, #tpu.memory_space<vmem>>, vector<768x768xbf16>
    %cst_19 = arith.constant dense<0.000000e+00> : vector<8x768xf32>
    %43 = tpu.matmul %0, %42, %cst_19 {dimension_numbers = #tpu.dot_dimension_numbers<[1], [0], [0], [1], [0, 0, 1, 1], [], []>} : vector<8x768xbf16>, vector<768x768xbf16>, vector<8x768xf32> -> vector<8x768xf32>
    %44 = vector.extract_strided_slice %11 {offsets = [0, 768], sizes = [8, 768], strides = [1, 1]} : vector<8x1536xf32> to vector<8x768xf32>
    %45 = arith.addf %43, %44 : vector<8x768xf32>
    %46 = vector.broadcast %7 : vector<1x768xf32> to vector<8x768xf32>
    %47 = arith.addf %45, %46 : vector<8x768xf32>
    %cst_20 = arith.constant dense<0.000000e+00> : vector<8xf32>
    %48 = vector.multi_reduction <add>, %47, %cst_20 [1] : vector<8x768xf32> to vector<8xf32>
    %49 = vector.shape_cast %48 : vector<8xf32> to vector<8x1xf32>
    %cst_21 = arith.constant 7.680000e+02 : f32
    %50 = vector.broadcast %cst_21 : f32 to vector<8x1xf32>
    %51 = arith.divf %49, %50 : vector<8x1xf32>
    %52 = vector.broadcast %51 : vector<8x1xf32> to vector<8x768xf32>
    %53 = arith.subf %47, %52 : vector<8x768xf32>
    %54 = arith.mulf %53, %53 : vector<8x768xf32>
    %cst_22 = arith.constant dense<0.000000e+00> : vector<8xf32>
    %55 = vector.multi_reduction <add>, %54, %cst_22 [1] : vector<8x768xf32> to vector<8xf32>
    %56 = vector.shape_cast %55 : vector<8xf32> to vector<8x1xf32>
    %cst_23 = arith.constant 7.680000e+02 : f32
    %57 = vector.broadcast %cst_23 : f32 to vector<8x1xf32>
    %58 = arith.divf %56, %57 : vector<8x1xf32>
    %59 = vector.broadcast %51 : vector<8x1xf32> to vector<8x768xf32>
    %60 = arith.subf %47, %59 : vector<8x768xf32>
    %cst_24 = arith.constant 9.99999974E-6 : f32
    %61 = vector.broadcast %cst_24 : f32 to vector<8x1xf32>
    %62 = arith.addf %58, %61 : vector<8x1xf32>
    %63 = math.rsqrt %62 : vector<8x1xf32>
    %64 = vector.broadcast %63 : vector<8x1xf32> to vector<8x768xf32>
    %65 = arith.mulf %60, %64 : vector<8x768xf32>
    %66 = vector.broadcast %8 : vector<1x768xf32> to vector<8x768xf32>
    %67 = arith.mulf %65, %66 : vector<8x768xf32>
    %68 = vector.broadcast %9 : vector<1x768xf32> to vector<8x768xf32>
    %69 = arith.addf %67, %68 : vector<8x768xf32>
    %70 = arith.extf %0 : vector<8x768xbf16> to vector<8x768xf32>
    %71 = arith.addf %69, %70 : vector<8x768xf32>
    %72 = arith.truncf %41 : vector<8x768xf32> to vector<8x768xbf16>
    %c0_25 = arith.constant 0 : index
    %c0_26 = arith.constant 0 : index
    %73 = vector.load %arg8[%c0_25, %c0_26] : memref<8x1536xbf16, #tpu.memory_space<vmem>>, vector<8x768xbf16>
    tpu.vector_store %arg8[%c0_25, %c0_26], %72 {strides = array<i32>} : memref<8x1536xbf16, #tpu.memory_space<vmem>>, vector<8x768xbf16>,
    %74 = arith.truncf %71 : vector<8x768xf32> to vector<8x768xbf16>
    %c0_27 = arith.constant 0 : index
    %c768 = arith.constant 768 : index
    %75 = vector.load %arg8[%c0_27, %c768] : memref<8x1536xbf16, #tpu.memory_space<vmem>>, vector<8x768xbf16>
    tpu.vector_store %arg8[%c0_27, %c768], %74 {strides = array<i32>} : memref<8x1536xbf16, #tpu.memory_space<vmem>>, vector<8x768xbf16>,
    return
  }
  func.func @transform_0(%arg0: i32) -> (i32, i32) {
    %c0_i32 = arith.constant 0 : i32
    %c0_i32_0 = arith.constant 0 : i32
    return %arg0, %c0_i32 : i32, i32
  }
  func.func @transform_1(%arg0: i32) -> (i32, i32) {
    %c0_i32 = arith.constant 0 : i32
    %c0_i32_0 = arith.constant 0 : i32
    return %arg0, %c0_i32 : i32, i32
  }
  func.func @transform_2(%arg0: i32) -> (i32, i32) {
    %c0_i32 = arith.constant 0 : i32
    %c0_i32_0 = arith.constant 0 : i32
    return %arg0, %c0_i32 : i32, i32
  }
  func.func @transform_3(%arg0: i32) -> (i32, i32) {
    %c0_i32 = arith.constant 0 : i32
    %c0_i32_0 = arith.constant 0 : i32
    %c0_i32_1 = arith.constant 0 : i32
    return %c0_i32, %c0_i32_0 : i32, i32
  }
  func.func @transform_4(%arg0: i32) -> (i32, i32) {
    %c0_i32 = arith.constant 0 : i32
    %c0_i32_0 = arith.constant 0 : i32
    %c0_i32_1 = arith.constant 0 : i32
    return %c0_i32, %c0_i32_0 : i32, i32
  }
  func.func @transform_5(%arg0: i32) -> (i32, i32) {
    %c0_i32 = arith.constant 0 : i32
    %c0_i32_0 = arith.constant 0 : i32
    %c0_i32_1 = arith.constant 0 : i32
    return %c0_i32, %c0_i32_0 : i32, i32
  }
  func.func @transform_6(%arg0: i32) -> (i32, i32) {
    %c0_i32 = arith.constant 0 : i32
    %c0_i32_0 = arith.constant 0 : i32
    %c0_i32_1 = arith.constant 0 : i32
    return %c0_i32, %c0_i32_0 : i32, i32
  }
  func.func @transform_7(%arg0: i32) -> (i32, i32) {
    %c0_i32 = arith.constant 0 : i32
    %c0_i32_0 = arith.constant 0 : i32
    return %arg0, %c0_i32 : i32, i32
  }
}

</mosaic_0001>

<bundles_post_ra>
// kernel: model_forward.1
= control target key start
LH: loop header
LB: loop body
LE: loop exit
PB: predicated region body
PF: predicated region fallthrough
CT: control target
= control target key end

     0   :  { %12 = vsyncpa [#allocation3], 0  ;;  %s13072_s0 = inlined_call_operand.vmem [shape: bf16[16,768], index: 0, kind: input, shape index: {}]   ;;  %s13073_s1 = inlined_call_operand.vmem [shape: bf16[16,768], index: 1, kind: input, shape index: {}]   ;;  %s13074_s2 = inlined_call_operand.vmem [shape: bf16[16,768], index: 2, kind: input, shape index: {}]   ;;  %s13075_s3 = inlined_call_operand.hbm [shape: bf16[768,768], index: 3, kind: input, shape index: {}]   ;;  %s13076_s4 = inlined_call_operand.hbm [shape: bf16[768,1536], index: 4, kind: input, shape index: {}]   ;;  %s13077_s5 = inlined_call_operand.hbm [shape: bf16[768,768], index: 5, kind: input, shape index: {}]   ;;  %s13078_s6 = inlined_call_operand.hbm [shape: f32[8,768], index: 6, kind: input, shape index: {}]   ;;  %s13079_s7 = inlined_call_operand.vmem [shape: bf16[16,1536], index: 7, kind: output, shape index: {}]  }
   0x1   :  { %13 = vsyncpa [#allocation5], 0 }
   0x2   :  { %14 = vsyncpa [#allocation8], 0  ;;  %s12485_s24 = smov 0  }
   0x3 LB: > { %s12437_s25 = smov [#allocation4]   ;;  %s12491_s27 = sadd.s32 4294967295, %s12435_s24   ;;  %s12435_s24 = sphi %s12485_s24, %s20_s24  }
   0x4   : > { %s238_s26 = sshll.u32 %s12437_s25, 4  ;;  %p9295_p0 = scmp.ge.s32.totalorder %s12435_s24, 1  ;;  %s12496_s26 = int_to_ptr.vmem [resolvable:$true] %s238_s26 }
   0x5   : > { %p213_p1 = scmp.lt.s32.totalorder %s12435_s24, 3  ;;  %p13080_p2 = scmp.eq.s32.totalorder %s12491_s27, 0 }
   0x6   : > { %s12438_s29 = smov [#allocation2]   ;;  %s12439_s9 = smov [#allocation6]  }
   0x7   : > { %p12498_p3 = pnand %p9295_p0, %p213_p1  ;;  %s225_s30 = sshll.u32 %s12438_s29, 4  ;;  %s12504_s30 = int_to_ptr.vmem [resolvable:$true] %s225_s30 }
   0x8   : > { %s12512_s10 = sshll.u32 %s12439_s9, 4  ;;  %s12305_s13 = scalar_lea.hbm %s13076_s4, 73728  ;;  %s252_s10 = int_to_ptr.vmem [resolvable:$true] %s12512_s10 }
   0x9   : > { %s13082_s28 = scalar_select %p12498_p3, 1, 0 }
   0xa   : > { %p10512_p4 = pneg %p12498_p3  ;;  %p12306_p6 = scmp.ne.s32.totalorder %s13076_s4, %s12305_s13 }
   0xb   : > { %p12312_p10 = scmp.lt.u32.totalorder %s12305_s13, %s13076_s4 }
   0xc   : > { %p12508_p5 = pnand %p13080_p2, %p10512_p4 }
   0xe   : > { %p12522_p7 = pneg %p12508_p5 }
  0x10   : > { %p12308_p8 = pnand %p12522_p7, %p12306_p6 }
  0x12   : > { %p12309_p9 = pneg %p12308_p8 }
  0x14   : > { %p12314_p11 = pnand %p12312_p10, %p12309_p9 }
  0x16   : > { %12317 = shalt.err (!%p12314_p11)
}
  0x17   : > { %s12318_s19 = scalar_lea.vmem %s12496_s26, 73728  ;;  %p12326_p1 = scmp.lt.s32.totalorder %s12496_s26, %s12496_s26 }
  0x18   : > { %p12319_p12 = scmp.ne.s32.totalorder %s12496_s26, %s12318_s19  ;;  %p12327_p4 = scmp.lt.s32.totalorder %s12318_s19, %s12318_s19 }
  0x1a   : > { %p12321_p13 = pnand %p12319_p12, %p12522_p7  ;;  %p12328_p6 = por %p12327_p4, %p12326_p1 }
  0x1c   : > { %p12322_p0 = pneg %p12321_p13 }
  0x1e   : > { %p12329_p8 = pnand %p12328_p6, %p12322_p0 }
  0x20   : > { %12332 = shalt.err (!%p12329_p8)
}
  0x21   : > { %s12440_s20 = smov 768   ;;  %s12441_s21 = smov 48  }
  0x22   : > { %10518 = dma.hbm_to_vmem [thread:$0]  (!%p12508_p5), %s13076_s4, 73728, %s12496_s26, [#allocation5], %s12440_s20, %s12440_s20, %s12441_s21  }
  0x23   : > { %s12333_s9 = scalar_lea.hbm %s13075_s3, 36864 }
  0x24   : > { %p12334_p9 = scmp.ne.s32.totalorder %s13075_s3, %s12333_s9  ;;  %p12340_p12 = scmp.lt.u32.totalorder %s12333_s9, %s13075_s3 }
  0x26   : > { %p12336_p10 = pnand %p12334_p9, %p12522_p7 }
  0x28   : > { %p12337_p11 = pneg %p12336_p10 }
  0x2a   : > { %p12342_p13 = pnand %p12340_p12, %p12337_p11 }
  0x2c   : > { %12345 = shalt.err (!%p12342_p13)
}
  0x2d   : > { %s12346_s26 = scalar_lea.vmem %s12504_s30, 36864  ;;  %p12354_p6 = scmp.lt.s32.totalorder %s12504_s30, %s12504_s30 }
  0x2e   : > { %p12347_p0 = scmp.ne.s32.totalorder %s12504_s30, %s12346_s26  ;;  %p12355_p8 = scmp.lt.s32.totalorder %s12346_s26, %s12346_s26 }
  0x30   : > { %p12349_p1 = pnand %p12347_p0, %p12522_p7  ;;  %p12356_p9 = por %p12355_p8, %p12354_p6 }
  0x32   : > { %p12350_p4 = pneg %p12349_p1 }
  0x34   : > { %p12357_p10 = pnand %p12356_p9, %p12350_p4 }
  0x36   : > { %12360 = shalt.err (!%p12357_p10)
}
  0x37   : > { %s12442_s15 = smov 384   ;;  %s12443_s17 = smov 24  }
  0x38   : > { %10515 = dma.hbm_to_vmem [thread:$0]  (!%p12508_p5), %s13075_s3, 36864, %s12504_s30, [#allocation3], %s12442_s15, %s12442_s15, %s12443_s17  }
  0x39   : > { %s12444_s20 = smov [#allocation7]   ;;  %s12361_s25 = scalar_lea.hbm %s13077_s5, 36864 }
  0x3a   : > { %s265_s21 = sshll.u32 %s12444_s20, 4  ;;  %p12362_p11 = scmp.ne.s32.totalorder %s13077_s5, %s12361_s25  ;;  %s266_s21 = int_to_ptr.vmem [resolvable:$true] %s265_s21 }
  0x3b   : > { %p12368_p0 = scmp.lt.u32.totalorder %s12361_s25, %s13077_s5 }
  0x3c   : > { %p12364_p12 = pnand %p12362_p11, %p12522_p7 }
  0x3e   : > { %p12365_p13 = pneg %p12364_p12 }
  0x40   : > { %p12370_p1 = pnand %p12368_p0, %p12365_p13 }
  0x42   : > { %12373 = shalt.err (!%p12370_p1)
}
  0x43   : > { %s12374_s30 = scalar_lea.vmem %s252_s10, 36864  ;;  %p12382_p9 = scmp.lt.s32.totalorder %s252_s10, %s252_s10 }
  0x44   : > { %p12375_p4 = scmp.ne.s32.totalorder %s252_s10, %s12374_s30  ;;  %p12383_p10 = scmp.lt.s32.totalorder %s12374_s30, %s12374_s30 }
  0x46   : > { %p12377_p6 = pnand %p12375_p4, %p12522_p7  ;;  %p12384_p2 = por %p12383_p10, %p12382_p9 }
  0x48   : > { %p12378_p8 = pneg %p12377_p6 }
  0x4a   : > { %p12385_p3 = pnand %p12384_p2, %p12378_p8 }
  0x4c   : > { %12388 = shalt.err (!%p12385_p3)
}
  0x4d   : > { %10521 = dma.hbm_to_vmem [thread:$0]  (!%p12508_p5), %s13077_s5, 36864, %s252_s10, [#allocation5], %s12442_s15, %s12442_s15, %s12443_s17  }
  0x4e   : > { %s12389_s19 = scalar_lea.hbm %s13078_s6, 768 }
  0x4f   : > { %p12390_p11 = scmp.ne.s32.totalorder %s13078_s6, %s12389_s19  ;;  %p12396_p3 = scmp.lt.u32.totalorder %s12389_s19, %s13078_s6 }
  0x51   : > { %p12392_p12 = pnand %p12390_p11, %p12522_p7 }
  0x53   : > { %p12393_p2 = pneg %p12392_p12 }
  0x55   : > { %p12398_p13 = pnand %p12396_p3, %p12393_p2 }
  0x57   : > { %12401 = shalt.err (!%p12398_p13)
}
  0x58   : > { %s12402_s29 = scalar_lea.vmem %s266_s21, 768  ;;  %p12410_p6 = scmp.lt.s32.totalorder %s266_s21, %s266_s21 }
  0x59   : > { %p12403_p0 = scmp.ne.s32.totalorder %s266_s21, %s12402_s29  ;;  %p12411_p8 = scmp.lt.s32.totalorder %s12402_s29, %s12402_s29 }
  0x5b   : > { %p12405_p1 = pnand %p12403_p0, %p12522_p7  ;;  %p12412_p9 = por %p12411_p8, %p12410_p6 }
  0x5d   : > { %p12406_p4 = pneg %p12405_p1 }
  0x5f   : > { %p12413_p10 = pnand %p12412_p9, %p12406_p4 }
  0x61   : > { %12416 = shalt.err (!%p12413_p10)
}
  0x62   : > { %10524 = dma.hbm_to_vmem [thread:$0]  (!%p12508_p5), %s13078_s6, 768, %s266_s21, [#allocation8]  }
  0x63   : > { %p13085_p11 = scmp.ne.s32.totalorder %s13082_s28, 0 }
  0x64   : > { %p13086_p12 = scmp.eq.s32.totalorder (!%p13085_p11), %s12491_s27, 0 }
  0x65   : > { %302 = sbr.rel (%p13085_p11) target bundleno = 1818 (0x71a), region = 48 }
  0x6c   : > { %12422 = dma.done.wait (%p13086_p12), [#allocation3], 36864   ;;  %p13087_p7 = pmov %p13086_p12 }
  0x6e   : > { %12424 = vsyncadd (%p13087_p7), [#allocation3], 4294930432  ;;  %p13088_p2 = pmov %p13087_p7 }
  0x70   : > { %12426 = dma.done.wait (%p13088_p2), [#allocation5], 110592   ;;  %p13089_p3 = pmov %p13088_p2 }
  0x71   : > { %p13090_p13 = pmov %p13088_p2 }
  0x72   : > { %12428 = vsyncadd (%p13089_p3), [#allocation5], 4294856704 }
  0x73   : > { %12430 = dma.done.wait (%p13090_p13), [#allocation8], 768   ;;  %p13091_p5 = pmov %p13088_p2 }
  0x74   : > { %v10549_v0 = vld [vmem:[#allocation4 + $0x4] ss:$48 sps:$4 sm:$0xff]   ;;  %v10553_v2 = vld [vmem:[#allocation4] ss:$48 sps:$4 sm:$0xff]   ;;  %p356_p0 = scmp.lt.s32.totalorder %s12491_s27, 1 }
  0x75   : > { %12432 = vsyncadd (%p13091_p5), [#allocation8], 4294966528  ;;  %v10551_v1 = vld [vmem:[#allocation4 + $0x604] ss:$48 sps:$4 sm:$0xff]   ;;  %3868 = vmatprep.subr.bf16.mxu0 %v10549_v0  ;;  %v10554_v3 = vld [vmem:[#allocation4 + $0x600] ss:$48 sps:$4 sm:$0xff]  }
  0x76   : > { %3909 = vmatprep.subr.bf16.mxu1 %v10551_v1  ;;  %v10555_v4 = vld [vmem:[#allocation4 + $0x64] ss:$48 sps:$4 sm:$0xff]   ;;  %3869 = vmatpush1.bf16.msra.mxu0 %v10553_v2  ;;  %v10559_v6 = vld [vmem:[#allocation4 + $0x60] ss:$48 sps:$4 sm:$0xff]   ;;  %s13093_s27 = smov (!%p356_p0, %s12491_s27), 1 }
  0x77   : > { %3910 = vmatpush1.bf16.msra.mxu1 %v10554_v3  ;;  %v10557_v5 = vld [vmem:[#allocation4 + $0x664] ss:$48 sps:$4 sm:$0xff]   ;;  %3870 = vmatprep.subr.bf16.mxu0 %v10555_v4  ;;  %v10560_v7 = vld [vmem:[#allocation4 + $0x660] ss:$48 sps:$4 sm:$0xff]   ;;  %s12622_s28 = smul.u32 24, %s13093_s27 }
  0x78   : > { %3911 = vmatprep.subr.bf16.mxu1 %v10557_v5  ;;  %v10561_v8 = vld [vmem:[#allocation4 + $0xc4] ss:$48 sps:$4 sm:$0xff]   ;;  %v10565_v10 = vld [vmem:[#allocation4 + $0xc0] ss:$48 sps:$4 sm:$0xff]   ;;  %v10654_v5 = vld [vmem:[#allocation4 + $0xc] ss:$48 sps:$4 sm:$0xff]  }
  0x79   : > { %v10563_v9 = vld [vmem:[#allocation4 + $0x6c4] ss:$48 sps:$4 sm:$0xff]   ;;  %v10566_v11 = vld [vmem:[#allocation4 + $0x6c0] ss:$48 sps:$4 sm:$0xff]   ;;  %s12628_s17 = scalar_lea.vmem %s13074_s2, %s12622_s28  ;;  %s12723_s11 = scalar_lea.vmem %s13073_s1, %s12622_s28 }
  0x7a   : > { %3871 = vmatpush1.bf16.msra.mxu0 %v10559_v6  ;;  %v10567_v12 = vld [vmem:[#allocation4 + $0x124] ss:$48 sps:$4 sm:$0xff]   ;;  %v10571_v14 = vld [vmem:[#allocation4 + $0x120] ss:$48 sps:$4 sm:$0xff]   ;;  %v383_v48 = vld [vmem:[%s12628_s17 + $0x8] sm:$0xff]  ;;  %s12804_s13 = scalar_lea.vmem %s13072_s0, %s12622_s28  ;;  %s10495_s14 = smul.u32 48, %s13093_s27 }
  0x7b   : > { %3912 = vmatpush1.bf16.msra.mxu1 %v10560_v7  ;;  %3872 = vmatprep.subr.bf16.mxu0 %v10561_v8  ;;  %v10569_v13 = vld [vmem:[#allocation4 + $0x724] ss:$48 sps:$4 sm:$0xff]   ;;  %v10572_v15 = vld [vmem:[#allocation4 + $0x720] ss:$48 sps:$4 sm:$0xff]   ;;  %v12634_v51 = vcombine.high %v383_v48, %v383_v48  ;;  %v12640_v7 = vcombine.low %v383_v48, %v383_v48  ;;  %v10706_v48 = vld [vmem:[#allocation4 + $0x368] ss:$48 sps:$4 sm:$0xff]  }
  0x7c   : > { %3913 = vmatprep.subr.bf16.mxu1 %v10563_v9  ;;  %v10573_v16 = vld [vmem:[#allocation4 + $0x184] ss:$48 sps:$4 sm:$0xff]   ;;  %v10577_v18 = vld [vmem:[#allocation4 + $0x180] ss:$48 sps:$4 sm:$0xff]   ;;  %v10652_v9 = vld [vmem:[#allocation4 + $0x8] ss:$48 sps:$4 sm:$0xff]   ;;  %s13038_s19 = scalar_lea.vmem %s13079_s7, %s10495_s14 }
  0x7d   : > { %v10575_v17 = vld [vmem:[#allocation4 + $0x784] ss:$48 sps:$4 sm:$0xff]   ;;  %v10578_v19 = vld [vmem:[#allocation4 + $0x780] ss:$48 sps:$4 sm:$0xff]   ;;  %3941 = vmatprep.mubr.bf16.mxu1 %v12634_v51 }
  0x7e   : > { %3873 = vmatpush1.bf16.msra.mxu0 %v10565_v10  ;;  %v10579_v20 = vld [vmem:[#allocation4 + $0x1e4] ss:$48 sps:$4 sm:$0xff]   ;;  %v10583_v22 = vld [vmem:[#allocation4 + $0x1e0] ss:$48 sps:$4 sm:$0xff]  }
  0x7f   : > { %3914 = vmatpush1.bf16.msra.mxu1 %v10566_v11  ;;  %3874 = vmatprep.subr.bf16.mxu0 %v10567_v12  ;;  %v10581_v21 = vld [vmem:[#allocation4 + $0x7e4] ss:$48 sps:$4 sm:$0xff]   ;;  %v10584_v23 = vld [vmem:[#allocation4 + $0x7e0] ss:$48 sps:$4 sm:$0xff]   ;;  %v10660_v11 = vld [vmem:[#allocation4 + $0x6c] ss:$48 sps:$4 sm:$0xff]  }
  0x80   : > { %3915 = vmatprep.subr.bf16.mxu1 %v10569_v13  ;;  %v10585_v24 = vld [vmem:[#allocation4 + $0x244] ss:$48 sps:$4 sm:$0xff]   ;;  %v10589_v26 = vld [vmem:[#allocation4 + $0x240] ss:$48 sps:$4 sm:$0xff]   ;;  %v10658_v13 = vld [vmem:[#allocation4 + $0x68] ss:$48 sps:$4 sm:$0xff]  }
  0x81   : > { %v10587_v25 = vld [vmem:[#allocation4 + $0x844] ss:$48 sps:$4 sm:$0xff]   ;;  %v10590_v27 = vld [vmem:[#allocation4 + $0x840] ss:$48 sps:$4 sm:$0xff]  }
  0x82   : > { %3875 = vmatpush1.bf16.msra.mxu0 %v10571_v14  ;;  %v10591_v28 = vld [vmem:[#allocation4 + $0x2a4] ss:$48 sps:$4 sm:$0xff]   ;;  %v10595_v30 = vld [vmem:[#allocation4 + $0x2a0] ss:$48 sps:$4 sm:$0xff]  }
  0x83   : > { %3916 = vmatpush1.bf16.msra.mxu1 %v10572_v15  ;;  %3876 = vmatprep.subr.bf16.mxu0 %v10573_v16  ;;  %v10593_v29 = vld [vmem:[#allocation4 + $0x8a4] ss:$48 sps:$4 sm:$0xff]   ;;  %v10596_v31 = vld [vmem:[#allocation4 + $0x8a0] ss:$48 sps:$4 sm:$0xff]   ;;  %v10666_v15 = vld [vmem:[#allocation4 + $0xcc] ss:$48 sps:$4 sm:$0xff]  }
  0x84   : > { %3917 = vmatprep.subr.bf16.mxu1 %v10575_v17  ;;  %v10597_v32 = vld [vmem:[#allocation4 + $0x304] ss:$48 sps:$4 sm:$0xff]   ;;  %v10601_v34 = vld [vmem:[#allocation4 + $0x300] ss:$48 sps:$4 sm:$0xff]   ;;  %v10664_v17 = vld [vmem:[#allocation4 + $0xc8] ss:$48 sps:$4 sm:$0xff]  }
  0x85   : > { %v10599_v33 = vld [vmem:[#allocation4 + $0x904] ss:$48 sps:$4 sm:$0xff]   ;;  %v10602_v35 = vld [vmem:[#allocation4 + $0x900] ss:$48 sps:$4 sm:$0xff]  }
  0x86   : > { %3877 = vmatpush1.bf16.msra.mxu0 %v10577_v18  ;;  %v10603_v36 = vld [vmem:[#allocation4 + $0x364] ss:$48 sps:$4 sm:$0xff]   ;;  %v10607_v38 = vld [vmem:[#allocation4 + $0x360] ss:$48 sps:$4 sm:$0xff]  }
  0x87   : > { %3918 = vmatpush1.bf16.msra.mxu1 %v10578_v19  ;;  %3878 = vmatprep.subr.bf16.mxu0 %v10579_v20  ;;  %v10605_v37 = vld [vmem:[#allocation4 + $0x964] ss:$48 sps:$4 sm:$0xff]   ;;  %v10608_v39 = vld [vmem:[#allocation4 + $0x960] ss:$48 sps:$4 sm:$0xff]   ;;  %v10672_v19 = vld [vmem:[#allocation4 + $0x12c] ss:$48 sps:$4 sm:$0xff]  }
  0x88   : > { %3919 = vmatprep.subr.bf16.mxu1 %v10581_v21  ;;  %v10609_v40 = vld [vmem:[#allocation4 + $0x3c4] ss:$48 sps:$4 sm:$0xff]   ;;  %v10613_v42 = vld [vmem:[#allocation4 + $0x3c0] ss:$48 sps:$4 sm:$0xff]   ;;  %v10670_v21 = vld [vmem:[#allocation4 + $0x128] ss:$48 sps:$4 sm:$0xff]  }
  0x89   : > { %v10611_v41 = vld [vmem:[#allocation4 + $0x9c4] ss:$48 sps:$4 sm:$0xff]   ;;  %v10614_v43 = vld [vmem:[#allocation4 + $0x9c0] ss:$48 sps:$4 sm:$0xff]  }
  0x8a   : > { %3879 = vmatpush1.bf16.msra.mxu0 %v10583_v22  ;;  %v10615_v44 = vld [vmem:[#allocation4 + $0x424] ss:$48 sps:$4 sm:$0xff]   ;;  %v10619_v49 = vld [vmem:[#allocation4 + $0x420] ss:$48 sps:$4 sm:$0xff]  }
  0x8b   : > { %3920 = vmatpush1.bf16.msra.mxu1 %v10584_v23  ;;  %3880 = vmatprep.subr.bf16.mxu0 %v10585_v24  ;;  %v10617_v45 = vld [vmem:[#allocation4 + $0xa24] ss:$48 sps:$4 sm:$0xff]   ;;  %v10620_v50 = vld [vmem:[#allocation4 + $0xa20] ss:$48 sps:$4 sm:$0xff]   ;;  %v10678_v23 = vld [vmem:[#allocation4 + $0x18c] ss:$48 sps:$4 sm:$0xff]  }
  0x8c   : > { %3921 = vmatprep.subr.bf16.mxu1 %v10587_v25  ;;  %v382_v46 = vld [vmem:[%s12628_s17] sm:$0xff]  ;;  %v10676_v25 = vld [vmem:[#allocation4 + $0x188] ss:$48 sps:$4 sm:$0xff]  }
  0x8d   : > { %v12631_v47 = vcombine.high %v382_v46, %v382_v46  ;;  %v10621_v52 = vld [vmem:[#allocation4 + $0x484] ss:$48 sps:$4 sm:$0xff]   ;;  %v10625_v54 = vld [vmem:[#allocation4 + $0x480] ss:$48 sps:$4 sm:$0xff]   ;;  %v12638_v6 = vcombine.low %v382_v46, %v382_v46 }
  0x8e   : > { %3881 = vmatpush1.bf16.msra.mxu0 %v10589_v26  ;;  %v10623_v53 = vld [vmem:[#allocation4 + $0xa84] ss:$48 sps:$4 sm:$0xff]   ;;  %v10626_v55 = vld [vmem:[#allocation4 + $0xa80] ss:$48 sps:$4 sm:$0xff]  }
  0x8f   : > { %3922 = vmatpush1.bf16.msra.mxu1 %v10590_v27  ;;  %3882 = vmatprep.subr.bf16.mxu0 %v10591_v28  ;;  %v10627_v56 = vld [vmem:[#allocation4 + $0x4e4] ss:$48 sps:$4 sm:$0xff]   ;;  %v10631_v58 = vld [vmem:[#allocation4 + $0x4e0] ss:$48 sps:$4 sm:$0xff]   ;;  %v10684_v27 = vld [vmem:[#allocation4 + $0x1ec] ss:$48 sps:$4 sm:$0xff]  }
  0x90   : > { %3923 = vmatprep.subr.bf16.mxu1 %v10593_v29  ;;  %3900 = vmatprep.mubr.bf16.mxu0 %v12631_v47  ;;  %v10629_v57 = vld [vmem:[#allocation4 + $0xae4] ss:$48 sps:$4 sm:$0xff]   ;;  %v10632_v59 = vld [vmem:[#allocation4 + $0xae0] ss:$48 sps:$4 sm:$0xff]   ;;  %v10682_v29 = vld [vmem:[#allocation4 + $0x1e8] ss:$48 sps:$4 sm:$0xff]  }
  0x91   : > { %v10633_v60 = vld [vmem:[#allocation4 + $0x544] ss:$48 sps:$4 sm:$0xff]   ;;  %v10637_v62 = vld [vmem:[#allocation4 + $0x540] ss:$48 sps:$4 sm:$0xff]  }
  0x92   : > { %3883 = vmatpush1.bf16.msra.mxu0 %v10595_v30  ;;  %v10635_v61 = vld [vmem:[#allocation4 + $0xb44] ss:$48 sps:$4 sm:$0xff]   ;;  %v10638_v63 = vld [vmem:[#allocation4 + $0xb40] ss:$48 sps:$4 sm:$0xff]  }
  0x93   : > { %3924 = vmatpush1.bf16.msra.mxu1 %v10596_v31  ;;  %3884 = vmatprep.subr.bf16.mxu0 %v10597_v32  ;;  %v10639_v0 = vld [vmem:[#allocation4 + $0x5a4] ss:$48 sps:$4 sm:$0xff]   ;;  %v10643_v2 = vld [vmem:[#allocation4 + $0x5a0] ss:$48 sps:$4 sm:$0xff]   ;;  %v10690_v31 = vld [vmem:[#allocation4 + $0x24c] ss:$48 sps:$4 sm:$0xff]  }
  0x94   : > { %3925 = vmatprep.subr.bf16.mxu1 %v10599_v33  ;;  %v10641_v1 = vld [vmem:[#allocation4 + $0xba4] ss:$48 sps:$4 sm:$0xff]   ;;  %v10644_v3 = vld [vmem:[#allocation4 + $0xba0] ss:$48 sps:$4 sm:$0xff]  }
  0x95   : > { %v10651_v4 = vld [vmem:[#allocation4 + $0xc04] ss:$48 sps:$4 sm:$0xff]   ;;  %v10649_v8 = vld [vmem:[#allocation4 + $0xc00] ss:$48 sps:$4 sm:$0xff]  }
  0x96   : > { %3885 = vmatpush1.bf16.msra.mxu0 %v10601_v34  ;;  %v10657_v10 = vld [vmem:[#allocation4 + $0xc64] ss:$48 sps:$4 sm:$0xff]   ;;  %v10655_v12 = vld [vmem:[#allocation4 + $0xc60] ss:$48 sps:$4 sm:$0xff]  }
  0x97   : > { %3926 = vmatpush1.bf16.msra.mxu1 %v10602_v35  ;;  %3886 = vmatprep.subr.bf16.mxu0 %v10603_v36  ;;  %v10663_v14 = vld [vmem:[#allocation4 + $0xcc4] ss:$48 sps:$4 sm:$0xff]   ;;  %v10661_v16 = vld [vmem:[#allocation4 + $0xcc0] ss:$48 sps:$4 sm:$0xff]   ;;  %v10688_v35 = vld [vmem:[#allocation4 + $0x248] ss:$48 sps:$4 sm:$0xff]  }
  0x98   : > { %3927 = vmatprep.subr.bf16.mxu1 %v10605_v37  ;;  %v10669_v18 = vld [vmem:[#allocation4 + $0xd24] ss:$48 sps:$4 sm:$0xff]   ;;  %v10667_v20 = vld [vmem:[#allocation4 + $0xd20] ss:$48 sps:$4 sm:$0xff]   ;;  %v10696_v37 = vld [vmem:[#allocation4 + $0x2ac] ss:$48 sps:$4 sm:$0xff]  }
  0x99   : > { %v10675_v22 = vld [vmem:[#allocation4 + $0xd84] ss:$48 sps:$4 sm:$0xff]   ;;  %v10673_v24 = vld [vmem:[#allocation4 + $0xd80] ss:$48 sps:$4 sm:$0xff]  }
  0x9a   : > { %3887 = vmatpush1.bf16.msra.mxu0 %v10607_v38  ;;  %v10681_v26 = vld [vmem:[#allocation4 + $0xde4] ss:$48 sps:$4 sm:$0xff]   ;;  %v10679_v28 = vld [vmem:[#allocation4 + $0xde0] ss:$48 sps:$4 sm:$0xff]  }
  0x9b   : > { %3928 = vmatpush1.bf16.msra.mxu1 %v10608_v39  ;;  %3888 = vmatprep.subr.bf16.mxu0 %v10609_v40  ;;  %v10687_v30 = vld [vmem:[#allocation4 + $0xe44] ss:$48 sps:$4 sm:$0xff]   ;;  %v10685_v33 = vld [vmem:[#allocation4 + $0xe40] ss:$48 sps:$4 sm:$0xff]   ;;  %v10694_v39 = vld [vmem:[#allocation4 + $0x2a8] ss:$48 sps:$4 sm:$0xff]  }
  0x9c   : > { %3929 = vmatprep.subr.bf16.mxu1 %v10611_v41  ;;  %v12646_v32 = vld [vmem:[%s12628_s17 + $0x10] sm:$0xff]  ;;  %v10702_v41 = vld [vmem:[#allocation4 + $0x30c] ss:$48 sps:$4 sm:$0xff]  }
  0x9d   : > { %v12650_v34 = vcombine.high %v12646_v32, %v12646_v32  ;;  %v10693_v36 = vld [vmem:[#allocation4 + $0xea4] ss:$48 sps:$4 sm:$0xff]   ;;  %v10691_v38 = vld [vmem:[#allocation4 + $0xea0] ss:$48 sps:$4 sm:$0xff]  }
  0x9e   : > { %3889 = vmatpush1.bf16.msra.mxu0 %v10613_v42  ;;  %v10699_v40 = vld [vmem:[#allocation4 + $0xf04] ss:$48 sps:$4 sm:$0xff]   ;;  %v10697_v42 = vld [vmem:[#allocation4 + $0xf00] ss:$48 sps:$4 sm:$0xff]  }
  0x9f   : > { %3930 = vmatpush1.bf16.msra.mxu1 %v10614_v43  ;;  %3890 = vmatprep.subr.bf16.mxu0 %v10615_v44  ;;  %v10700_v43 = vld [vmem:[#allocation4 + $0x308] ss:$48 sps:$4 sm:$0xff]   ;;  %v10705_v44 = vld [vmem:[#allocation4 + $0xf64] ss:$48 sps:$4 sm:$0xff]   ;;  %v10703_v46 = vld [vmem:[#allocation4 + $0xf60] ss:$48 sps:$4 sm:$0xff]  }
  0xa0   : > { %3931 = vmatprep.subr.bf16.mxu1 %v10617_v45  ;;  %v10708_v45 = vld [vmem:[#allocation4 + $0x36c] ss:$48 sps:$4 sm:$0xff]  }
  0xa2   : > { %3891 = vmatpush1.bf16.msra.mxu0 %v10619_v49  ;;  %v10711_v49 = vld [vmem:[#allocation4 + $0xfc4] ss:$48 sps:$4 sm:$0xff]  }
  0xa3   : > { %3932 = vmatpush1.bf16.msra.mxu1 %v10620_v50  ;;  %3892 = vmatprep.subr.bf16.mxu0 %v10621_v52  ;;  %v10714_v50 = vld [vmem:[#allocation4 + $0x3cc] ss:$48 sps:$4 sm:$0xff]   ;;  %v10709_v52 = vld [vmem:[#allocation4 + $0xfc0] ss:$48 sps:$4 sm:$0xff]  }
  0xa4   : > { %3933 = vmatprep.subr.bf16.mxu1 %v10623_v53  ;;  %v10712_v53 = vld [vmem:[#allocation4 + $0x3c8] ss:$48 sps:$4 sm:$0xff]  }
  0xa6   : > { %3893 = vmatpush1.bf16.msra.mxu0 %v10625_v54  ;;  %v10717_v54 = vld [vmem:[#allocation4 + $0x1024] ss:$48 sps:$4 sm:$0xff]  }
  0xa7   : > { %3934 = vmatpush1.bf16.msra.mxu1 %v10626_v55  ;;  %3894 = vmatprep.subr.bf16.mxu0 %v10627_v56  ;;  %v10720_v55 = vld [vmem:[#allocation4 + $0x42c] ss:$48 sps:$4 sm:$0xff]   ;;  %v10715_v56 = vld [vmem:[#allocation4 + $0x1020] ss:$48 sps:$4 sm:$0xff]  }
  0xa8   : > { %3935 = vmatprep.subr.bf16.mxu1 %v10629_v57  ;;  %v10718_v57 = vld [vmem:[#allocation4 + $0x428] ss:$48 sps:$4 sm:$0xff]  }
  0xaa   : > { %3895 = vmatpush1.bf16.msra.mxu0 %v10631_v58  ;;  %v10723_v58 = vld [vmem:[#allocation4 + $0x1084] ss:$48 sps:$4 sm:$0xff]  }
  0xab   : > { %3936 = vmatpush1.bf16.msra.mxu1 %v10632_v59  ;;  %3896 = vmatprep.subr.bf16.mxu0 %v10633_v60  ;;  %v10726_v59 = vld [vmem:[#allocation4 + $0x48c] ss:$48 sps:$4 sm:$0xff]   ;;  %v10721_v60 = vld [vmem:[#allocation4 + $0x1080] ss:$48 sps:$4 sm:$0xff]  }
  0xac   : > { %3937 = vmatprep.subr.bf16.mxu1 %v10635_v61  ;;  %v10724_v61 = vld [vmem:[#allocation4 + $0x488] ss:$48 sps:$4 sm:$0xff]  }
  0xae   : > { %3897 = vmatpush1.bf16.msra.mxu0 %v10637_v62  ;;  %v10729_v62 = vld [vmem:[#allocation4 + $0x10e4] ss:$48 sps:$4 sm:$0xff]  }
  0xaf   : > { %3938 = vmatpush1.bf16.msra.mxu1 %v10638_v63  ;;  %3898 = vmatprep.subr.bf16.mxu0 %v10639_v0  ;;  %v10732_v63 = vld [vmem:[#allocation4 + $0x4ec] ss:$48 sps:$4 sm:$0xff]   ;;  %v10727_v0 = vld [vmem:[#allocation4 + $0x10e0] ss:$48 sps:$4 sm:$0xff]  }
  0xb0   : > { %3939 = vmatprep.subr.bf16.mxu1 %v10641_v1  ;;  %v10730_v1 = vld [vmem:[#allocation4 + $0x4e8] ss:$48 sps:$4 sm:$0xff]  }
  0xb2   : > { %3899 = vmatpush1.bf16.msra.mxu0 %v10643_v2  ;;  %v10735_v2 = vld [vmem:[#allocation4 + $0x1144] ss:$48 sps:$4 sm:$0xff]  }
  0xb3   : > { %3940 = vmatpush1.bf16.msra.mxu1 %v10644_v3  ;;  %3950 = vmatprep.subr.bf16.mxu0 %v10651_v4  ;;  %v10738_v3 = vld [vmem:[#allocation4 + $0x54c] ss:$48 sps:$4 sm:$0xff]   ;;  %v10733_v4 = vld [vmem:[#allocation4 + $0x1140] ss:$48 sps:$4 sm:$0xff]  }
  0xb4   : > { %3991 = vmatprep.subr.bf16.mxu1 %v10654_v5  ;;  %v10736_v5 = vld [vmem:[#allocation4 + $0x548] ss:$48 sps:$4 sm:$0xff]  }
  0xb5   : > { %3901 = vmatmul.mubr.bf16.vlgmr.msra.gmra.mrb[0].mxu0 %v12638_v6 }
  0xb6   : > { %3942 = vmatmul.mubr.bf16.vlgmr.msra.gmra.mrb[0].mxu1 %v12640_v7  ;;  %3951 = vmatpush1.bf16.msra.mxu0 %v10649_v8  ;;  %v10741_v8 = vld [vmem:[#allocation4 + $0x11a4] ss:$48 sps:$4 sm:$0xff]  }
  0xb7   : > { %3992 = vmatpush1.bf16.msra.mxu1 %v10652_v9  ;;  %3952 = vmatprep.subr.bf16.mxu0 %v10657_v10  ;;  %v10744_v9 = vld [vmem:[#allocation4 + $0x5ac] ss:$48 sps:$4 sm:$0xff]   ;;  %v10739_v10 = vld [vmem:[#allocation4 + $0x11a0] ss:$48 sps:$4 sm:$0xff]  }
  0xb8   : > { %3993 = vmatprep.subr.bf16.mxu1 %v10660_v11  ;;  %4023 = vmatprep.mubr.bf16.mxu1 %v12631_v47  ;;  %v10742_v11 = vld [vmem:[#allocation4 + $0x5a8] ss:$48 sps:$4 sm:$0xff]  }
  0xb9   : > { %3982 = vmatprep.mubr.bf16.mxu0 %v12650_v34 }
  0xba   : > { %3953 = vmatpush1.bf16.msra.mxu0 %v10655_v12  ;;  %v10749_v12 = vld [vmem:[#allocation4 + $0x60c] ss:$48 sps:$4 sm:$0xff]  }
  0xbb   : > { %3994 = vmatpush1.bf16.msra.mxu1 %v10658_v13  ;;  %3954 = vmatprep.subr.bf16.mxu0 %v10663_v14  ;;  %v10752_v13 = vld [vmem:[#allocation4 + $0xc0c] ss:$48 sps:$4 sm:$0xff]   ;;  %v12655_v14 = vcombine.low %v12646_v32, %v12646_v32  ;;  %v10774_v32 = vld [vmem:[#allocation4 + $0xd88] ss:$48 sps:$4 sm:$0xff]  }
  0xbc   : > { %3995 = vmatprep.subr.bf16.mxu1 %v10666_v15  ;;  %v10747_v15 = vld [vmem:[#allocation4 + $0x608] ss:$48 sps:$4 sm:$0xff]  }
  0xbe   : > { %3955 = vmatpush1.bf16.msra.mxu0 %v10661_v16  ;;  %v10750_v16 = vld [vmem:[#allocation4 + $0xc08] ss:$48 sps:$4 sm:$0xff]  }
  0xbf   : > { %3996 = vmatpush1.bf16.msra.mxu1 %v10664_v17  ;;  %3956 = vmatprep.subr.bf16.mxu0 %v10669_v18  ;;  %v10755_v17 = vld [vmem:[#allocation4 + $0x66c] ss:$48 sps:$4 sm:$0xff]  }
  0xc0   : > { %3997 = vmatprep.subr.bf16.mxu1 %v10672_v19  ;;  %v10758_v18 = vld [vmem:[#allocation4 + $0xc6c] ss:$48 sps:$4 sm:$0xff]   ;;  %v10753_v19 = vld [vmem:[#allocation4 + $0x668] ss:$48 sps:$4 sm:$0xff]  }
  0xc2   : > { %3957 = vmatpush1.bf16.msra.mxu0 %v10667_v20  ;;  %v10756_v20 = vld [vmem:[#allocation4 + $0xc68] ss:$48 sps:$4 sm:$0xff]  }
  0xc3   : > { %3998 = vmatpush1.bf16.msra.mxu1 %v10670_v21  ;;  %3958 = vmatprep.subr.bf16.mxu0 %v10675_v22  ;;  %v10761_v21 = vld [vmem:[#allocation4 + $0x6cc] ss:$48 sps:$4 sm:$0xff]  }
  0xc4   : > { %3999 = vmatprep.subr.bf16.mxu1 %v10678_v23  ;;  %v10764_v22 = vld [vmem:[#allocation4 + $0xccc] ss:$48 sps:$4 sm:$0xff]   ;;  %v10759_v23 = vld [vmem:[#allocation4 + $0x6c8] ss:$48 sps:$4 sm:$0xff]  }
  0xc6   : > { %3959 = vmatpush1.bf16.msra.mxu0 %v10673_v24  ;;  %v10762_v24 = vld [vmem:[#allocation4 + $0xcc8] ss:$48 sps:$4 sm:$0xff]  }
  0xc7   : > { %4000 = vmatpush1.bf16.msra.mxu1 %v10676_v25  ;;  %3960 = vmatprep.subr.bf16.mxu0 %v10681_v26  ;;  %v10767_v25 = vld [vmem:[#allocation4 + $0x72c] ss:$48 sps:$4 sm:$0xff]  }
  0xc8   : > { %4001 = vmatprep.subr.bf16.mxu1 %v10684_v27  ;;  %v10770_v26 = vld [vmem:[#allocation4 + $0xd2c] ss:$48 sps:$4 sm:$0xff]   ;;  %v10765_v27 = vld [vmem:[#allocation4 + $0x728] ss:$48 sps:$4 sm:$0xff]  }
  0xca   : > { %3961 = vmatpush1.bf16.msra.mxu0 %v10679_v28  ;;  %v10768_v28 = vld [vmem:[#allocation4 + $0xd28] ss:$48 sps:$4 sm:$0xff]  }
  0xcb   : > { %4002 = vmatpush1.bf16.msra.mxu1 %v10682_v29  ;;  %3962 = vmatprep.subr.bf16.mxu0 %v10687_v30  ;;  %v10773_v29 = vld [vmem:[#allocation4 + $0x78c] ss:$48 sps:$4 sm:$0xff]  }
  0xcc   : > { %4003 = vmatprep.subr.bf16.mxu1 %v10690_v31  ;;  %v10776_v30 = vld [vmem:[#allocation4 + $0xd8c] ss:$48 sps:$4 sm:$0xff]   ;;  %v10771_v31 = vld [vmem:[#allocation4 + $0x788] ss:$48 sps:$4 sm:$0xff]  }
  0xce   : > { %3963 = vmatpush1.bf16.msra.mxu0 %v10685_v33  ;;  %v10779_v33 = vld [vmem:[#allocation4 + $0x7ec] ss:$48 sps:$4 sm:$0xff]  }
  0xcf   : > { %4004 = vmatpush1.bf16.msra.mxu1 %v10688_v35  ;;  %3964 = vmatprep.subr.bf16.mxu0 %v10693_v36  ;;  %v10782_v35 = vld [vmem:[#allocation4 + $0xdec] ss:$48 sps:$4 sm:$0xff]   ;;  %v10777_v36 = vld [vmem:[#allocation4 + $0x7e8] ss:$48 sps:$4 sm:$0xff]  }
  0xd0   : > { %4005 = vmatprep.subr.bf16.mxu1 %v10696_v37  ;;  %v10780_v37 = vld [vmem:[#allocation4 + $0xde8] ss:$48 sps:$4 sm:$0xff]  }
  0xd2   : > { %3965 = vmatpush1.bf16.msra.mxu0 %v10691_v38  ;;  %v10785_v38 = vld [vmem:[#allocation4 + $0x84c] ss:$48 sps:$4 sm:$0xff]  }
  0xd3   : > { %4006 = vmatpush1.bf16.msra.mxu1 %v10694_v39  ;;  %3966 = vmatprep.subr.bf16.mxu0 %v10699_v40  ;;  %v10788_v39 = vld [vmem:[#allocation4 + $0xe4c] ss:$48 sps:$4 sm:$0xff]   ;;  %v10783_v40 = vld [vmem:[#allocation4 + $0x848] ss:$48 sps:$4 sm:$0xff]  }
  0xd4   : > { %4007 = vmatprep.subr.bf16.mxu1 %v10702_v41  ;;  %v10786_v41 = vld [vmem:[#allocation4 + $0xe48] ss:$48 sps:$4 sm:$0xff]  }
  0xd6   : > { %3967 = vmatpush1.bf16.msra.mxu0 %v10697_v42  ;;  %v10791_v42 = vld [vmem:[#allocation4 + $0x8ac] ss:$48 sps:$4 sm:$0xff]  }
  0xd7   : > { %4008 = vmatpush1.bf16.msra.mxu1 %v10700_v43  ;;  %3968 = vmatprep.subr.bf16.mxu0 %v10705_v44  ;;  %v10794_v43 = vld [vmem:[#allocation4 + $0xeac] ss:$48 sps:$4 sm:$0xff]   ;;  %v10789_v44 = vld [vmem:[#allocation4 + $0x8a8] ss:$48 sps:$4 sm:$0xff]  }
  0xd8   : > { %4009 = vmatprep.subr.bf16.mxu1 %v10708_v45  ;;  %v10792_v45 = vld [vmem:[#allocation4 + $0xea8] ss:$48 sps:$4 sm:$0xff]  }
  0xda   : > { %3969 = vmatpush1.bf16.msra.mxu0 %v10703_v46  ;;  %v10797_v46 = vld [vmem:[#allocation4 + $0x90c] ss:$48 sps:$4 sm:$0xff]  }
  0xdb   : > { %4010 = vmatpush1.bf16.msra.mxu1 %v10706_v48  ;;  %3970 = vmatprep.subr.bf16.mxu0 %v10711_v49  ;;  %v10800_v48 = vld [vmem:[#allocation4 + $0xf0c] ss:$48 sps:$4 sm:$0xff]   ;;  %v10795_v49 = vld [vmem:[#allocation4 + $0x908] ss:$48 sps:$4 sm:$0xff]  }
  0xdc   : > { %4011 = vmatprep.subr.bf16.mxu1 %v10714_v50  ;;  %v10798_v50 = vld [vmem:[#allocation4 + $0xf08] ss:$48 sps:$4 sm:$0xff]  }
  0xde   : > { %3971 = vmatpush1.bf16.msra.mxu0 %v10709_v52  ;;  %v10803_v52 = vld [vmem:[#allocation4 + $0x96c] ss:$48 sps:$4 sm:$0xff]  }
  0xdf   : > { %4012 = vmatpush1.bf16.msra.mxu1 %v10712_v53  ;;  %3972 = vmatprep.subr.bf16.mxu0 %v10717_v54  ;;  %v10806_v53 = vld [vmem:[#allocation4 + $0xf6c] ss:$48 sps:$4 sm:$0xff]   ;;  %v10801_v54 = vld [vmem:[#allocation4 + $0x968] ss:$48 sps:$4 sm:$0xff]  }
  0xe0   : > { %4013 = vmatprep.subr.bf16.mxu1 %v10720_v55  ;;  %v10804_v55 = vld [vmem:[#allocation4 + $0xf68] ss:$48 sps:$4 sm:$0xff]  }
  0xe2   : > { %3973 = vmatpush1.bf16.msra.mxu0 %v10715_v56  ;;  %v10809_v56 = vld [vmem:[#allocation4 + $0x9cc] ss:$48 sps:$4 sm:$0xff]  }
  0xe3   : > { %4014 = vmatpush1.bf16.msra.mxu1 %v10718_v57  ;;  %3974 = vmatprep.subr.bf16.mxu0 %v10723_v58  ;;  %v10812_v57 = vld [vmem:[#allocation4 + $0xfcc] ss:$48 sps:$4 sm:$0xff]   ;;  %v10807_v58 = vld [vmem:[#allocation4 + $0x9c8] ss:$48 sps:$4 sm:$0xff]  }
  0xe4   : > { %4015 = vmatprep.subr.bf16.mxu1 %v10726_v59  ;;  %v10810_v59 = vld [vmem:[#allocation4 + $0xfc8] ss:$48 sps:$4 sm:$0xff]  }
  0xe6   : > { %3975 = vmatpush1.bf16.msra.mxu0 %v10721_v60  ;;  %v10815_v60 = vld [vmem:[#allocation4 + $0xa2c] ss:$48 sps:$4 sm:$0xff]  }
  0xe7   : > { %4016 = vmatpush1.bf16.msra.mxu1 %v10724_v61  ;;  %3976 = vmatprep.subr.bf16.mxu0 %v10729_v62  ;;  %v10818_v61 = vld [vmem:[#allocation4 + $0x102c] ss:$48 sps:$4 sm:$0xff]   ;;  %v10813_v62 = vld [vmem:[#allocation4 + $0xa28] ss:$48 sps:$4 sm:$0xff]  }
  0xe8   : > { %4017 = vmatprep.subr.bf16.mxu1 %v10732_v63  ;;  %v10816_v63 = vld [vmem:[#allocation4 + $0x1028] ss:$48 sps:$4 sm:$0xff]  }
  0xea   : > { %3977 = vmatpush1.bf16.msra.mxu0 %v10727_v0  ;;  %v10821_v0 = vld [vmem:[#allocation4 + $0xa8c] ss:$48 sps:$4 sm:$0xff]  }
  0xeb   : > { %4018 = vmatpush1.bf16.msra.mxu1 %v10730_v1  ;;  %3978 = vmatprep.subr.bf16.mxu0 %v10735_v2  ;;  %v10824_v1 = vld [vmem:[#allocation4 + $0x108c] ss:$48 sps:$4 sm:$0xff]   ;;  %v10819_v2 = vld [vmem:[#allocation4 + $0xa88] ss:$48 sps:$4 sm:$0xff]  }
  0xec   : > { %4019 = vmatprep.subr.bf16.mxu1 %v10738_v3  ;;  %v10822_v3 = vld [vmem:[#allocation4 + $0x1088] ss:$48 sps:$4 sm:$0xff]  }
  0xee   : > { %3979 = vmatpush1.bf16.msra.mxu0 %v10733_v4  ;;  %v10827_v4 = vld [vmem:[#allocation4 + $0xaec] ss:$48 sps:$4 sm:$0xff]  }
  0xef   : > { %4020 = vmatpush1.bf16.msra.mxu1 %v10736_v5  ;;  %3980 = vmatprep.subr.bf16.mxu0 %v10741_v8  ;;  %v10830_v5 = vld [vmem:[#allocation4 + $0x10ec] ss:$48 sps:$4 sm:$0xff]   ;;  %v10825_v8 = vld [vmem:[#allocation4 + $0xae8] ss:$48 sps:$4 sm:$0xff]  }
  0xf0   : > { %4021 = vmatprep.subr.bf16.mxu1 %v10744_v9  ;;  %v10828_v9 = vld [vmem:[#allocation4 + $0x10e8] ss:$48 sps:$4 sm:$0xff]  }
  0xf2   : > { %3981 = vmatpush1.bf16.msra.mxu0 %v10739_v10  ;;  %v10833_v10 = vld [vmem:[#allocation4 + $0xb4c] ss:$48 sps:$4 sm:$0xff]  }
  0xf3   : > { %4022 = vmatpush1.bf16.msra.mxu1 %v10742_v11  ;;  %4032 = vmatprep.subr.bf16.mxu0 %v10749_v12  ;;  %v10836_v11 = vld [vmem:[#allocation4 + $0x114c] ss:$48 sps:$4 sm:$0xff]   ;;  %v10831_v12 = vld [vmem:[#allocation4 + $0xb48] ss:$48 sps:$4 sm:$0xff]  }
  0xf4   : > { %4073 = vmatprep.subr.bf16.mxu1 %v10752_v13  ;;  %v10834_v13 = vld [vmem:[#allocation4 + $0x1148] ss:$48 sps:$4 sm:$0xff]  }
  0xf5   : > { %3983 = vmatmul.mubr.bf16.vlgmr.msra.gmra.mrb[4].mxu0 %v12655_v14 }
  0xf6   : > { %4024 = vmatmul.mubr.bf16.vlgmr.msra.gmra.mrb[4].mxu1 %v12638_v6  ;;  %4033 = vmatpush1.bf16.msra.mxu0 %v10747_v15  ;;  %v10839_v15 = vld [vmem:[#allocation4 + $0xbac] ss:$48 sps:$4 sm:$0xff]  }
  0xf7   : > { %4074 = vmatpush1.bf16.msra.mxu1 %v10750_v16  ;;  %4034 = vmatprep.subr.bf16.mxu0 %v10755_v17  ;;  %v10842_v16 = vld [vmem:[#allocation4 + $0x11ac] ss:$48 sps:$4 sm:$0xff]   ;;  %v10837_v17 = vld [vmem:[#allocation4 + $0xba8] ss:$48 sps:$4 sm:$0xff]  }
  0xf8   : > { %4075 = vmatprep.subr.bf16.mxu1 %v10758_v18  ;;  %4064 = vmatprep.mubr.bf16.mxu0 %v12634_v51  ;;  %v10840_v18 = vld [vmem:[#allocation4 + $0x11a8] ss:$48 sps:$4 sm:$0xff]  }
  0xf9   : > { %4105 = vmatprep.mubr.bf16.mxu1 %v12650_v34 }
  0xfa   : > { %4035 = vmatpush1.bf16.msra.mxu0 %v10753_v19  ;;  %v10845_v19 = vld [vmem:[#allocation4 + $0x14] ss:$48 sps:$4 sm:$0xff]  }
  0xfb   : > { %4076 = vmatpush1.bf16.msra.mxu1 %v10756_v20  ;;  %4036 = vmatprep.subr.bf16.mxu0 %v10761_v21  ;;  %v10848_v20 = vld [vmem:[#allocation4 + $0x614] ss:$48 sps:$4 sm:$0xff]   ;;  %v10843_v21 = vld [vmem:[#allocation4 + $0x10] ss:$48 sps:$4 sm:$0xff]  }
  0xfc   : > { %4077 = vmatprep.subr.bf16.mxu1 %v10764_v22  ;;  %v10846_v22 = vld [vmem:[#allocation4 + $0x610] ss:$48 sps:$4 sm:$0xff]  }
  0xfe   : > { %4037 = vmatpush1.bf16.msra.mxu0 %v10759_v23  ;;  %v10851_v23 = vld [vmem:[#allocation4 + $0x74] ss:$48 sps:$4 sm:$0xff]  }
  0xff   : > { %4078 = vmatpush1.bf16.msra.mxu1 %v10762_v24  ;;  %4038 = vmatprep.subr.bf16.mxu0 %v10767_v25  ;;  %v10854_v24 = vld [vmem:[#allocation4 + $0x674] ss:$48 sps:$4 sm:$0xff]   ;;  %v10849_v25 = vld [vmem:[#allocation4 + $0x70] ss:$48 sps:$4 sm:$0xff]  }
 0x100   : > { %4079 = vmatprep.subr.bf16.mxu1 %v10770_v26  ;;  %v10852_v26 = vld [vmem:[#allocation4 + $0x670] ss:$48 sps:$4 sm:$0xff]  }
 0x102   : > { %4039 = vmatpush1.bf16.msra.mxu0 %v10765_v27  ;;  %v10857_v27 = vld [vmem:[#allocation4 + $0xd4] ss:$48 sps:$4 sm:$0xff]  }
 0x103   : > { %4080 = vmatpush1.bf16.msra.mxu1 %v10768_v28  ;;  %4040 = vmatprep.subr.bf16.mxu0 %v10773_v29  ;;  %v10860_v28 = vld [vmem:[#allocation4 + $0x6d4] ss:$48 sps:$4 sm:$0xff]   ;;  %v10855_v29 = vld [vmem:[#allocation4 + $0xd0] ss:$48 sps:$4 sm:$0xff]  }
 0x104   : > { %4081 = vmatprep.subr.bf16.mxu1 %v10776_v30  ;;  %v10858_v30 = vld [vmem:[#allocation4 + $0x6d0] ss:$48 sps:$4 sm:$0xff]  }
 0x106   : > { %4041 = vmatpush1.bf16.msra.mxu0 %v10771_v31  ;;  %v10863_v31 = vld [vmem:[#allocation4 + $0x134] ss:$48 sps:$4 sm:$0xff]  }
 0x107   : > { %4082 = vmatpush1.bf16.msra.mxu1 %v10774_v32  ;;  %4042 = vmatprep.subr.bf16.mxu0 %v10779_v33  ;;  %v10866_v32 = vld [vmem:[#allocation4 + $0x734] ss:$48 sps:$4 sm:$0xff]   ;;  %v10861_v33 = vld [vmem:[#allocation4 + $0x130] ss:$48 sps:$4 sm:$0xff]  }
 0x108   : > { %4083 = vmatprep.subr.bf16.mxu1 %v10782_v35  ;;  %v10864_v35 = vld [vmem:[#allocation4 + $0x730] ss:$48 sps:$4 sm:$0xff]  }
 0x10a   : > { %4043 = vmatpush1.bf16.msra.mxu0 %v10777_v36  ;;  %v10869_v36 = vld [vmem:[#allocation4 + $0x194] ss:$48 sps:$4 sm:$0xff]  }
 0x10b   : > { %4084 = vmatpush1.bf16.msra.mxu1 %v10780_v37  ;;  %4044 = vmatprep.subr.bf16.mxu0 %v10785_v38  ;;  %v10872_v37 = vld [vmem:[#allocation4 + $0x794] ss:$48 sps:$4 sm:$0xff]   ;;  %v10867_v38 = vld [vmem:[#allocation4 + $0x190] ss:$48 sps:$4 sm:$0xff]  }
 0x10c   : > { %4085 = vmatprep.subr.bf16.mxu1 %v10788_v39  ;;  %v10870_v39 = vld [vmem:[#allocation4 + $0x790] ss:$48 sps:$4 sm:$0xff]  }
 0x10e   : > { %4045 = vmatpush1.bf16.msra.mxu0 %v10783_v40  ;;  %v10875_v40 = vld [vmem:[#allocation4 + $0x1f4] ss:$48 sps:$4 sm:$0xff]  }
 0x10f   : > { %4086 = vmatpush1.bf16.msra.mxu1 %v10786_v41  ;;  %4046 = vmatprep.subr.bf16.mxu0 %v10791_v42  ;;  %v10878_v41 = vld [vmem:[#allocation4 + $0x7f4] ss:$48 sps:$4 sm:$0xff]   ;;  %v10873_v42 = vld [vmem:[#allocation4 + $0x1f0] ss:$48 sps:$4 sm:$0xff]  }
 0x110   : > { %4087 = vmatprep.subr.bf16.mxu1 %v10794_v43  ;;  %v10876_v43 = vld [vmem:[#allocation4 + $0x7f0] ss:$48 sps:$4 sm:$0xff]  }
 0x112   : > { %4047 = vmatpush1.bf16.msra.mxu0 %v10789_v44  ;;  %v10881_v44 = vld [vmem:[#allocation4 + $0x254] ss:$48 sps:$4 sm:$0xff]  }
 0x113   : > { %4088 = vmatpush1.bf16.msra.mxu1 %v10792_v45  ;;  %4048 = vmatprep.subr.bf16.mxu0 %v10797_v46  ;;  %v10884_v45 = vld [vmem:[#allocation4 + $0x854] ss:$48 sps:$4 sm:$0xff]   ;;  %v10879_v46 = vld [vmem:[#allocation4 + $0x250] ss:$48 sps:$4 sm:$0xff]  }
 0x114   : > { %4089 = vmatprep.subr.bf16.mxu1 %v10800_v48  ;;  %v10882_v48 = vld [vmem:[#allocation4 + $0x850] ss:$48 sps:$4 sm:$0xff]  }
 0x116   : > { %4049 = vmatpush1.bf16.msra.mxu0 %v10795_v49  ;;  %v10887_v49 = vld [vmem:[#allocation4 + $0x2b4] ss:$48 sps:$4 sm:$0xff]  }
 0x117   : > { %4090 = vmatpush1.bf16.msra.mxu1 %v10798_v50  ;;  %4050 = vmatprep.subr.bf16.mxu0 %v10803_v52  ;;  %v10890_v50 = vld [vmem:[#allocation4 + $0x8b4] ss:$48 sps:$4 sm:$0xff]   ;;  %v10885_v52 = vld [vmem:[#allocation4 + $0x2b0] ss:$48 sps:$4 sm:$0xff]  }
 0x118   : > { %4091 = vmatprep.subr.bf16.mxu1 %v10806_v53  ;;  %v10888_v53 = vld [vmem:[#allocation4 + $0x8b0] ss:$48 sps:$4 sm:$0xff]  }
 0x11a   : > { %4051 = vmatpush1.bf16.msra.mxu0 %v10801_v54  ;;  %v10893_v54 = vld [vmem:[#allocation4 + $0x314] ss:$48 sps:$4 sm:$0xff]  }
 0x11b   : > { %4092 = vmatpush1.bf16.msra.mxu1 %v10804_v55  ;;  %4052 = vmatprep.subr.bf16.mxu0 %v10809_v56  ;;  %v10896_v55 = vld [vmem:[#allocation4 + $0x914] ss:$48 sps:$4 sm:$0xff]   ;;  %v10891_v56 = vld [vmem:[#allocation4 + $0x310] ss:$48 sps:$4 sm:$0xff]  }
 0x11c   : > { %4093 = vmatprep.subr.bf16.mxu1 %v10812_v57  ;;  %v10894_v57 = vld [vmem:[#allocation4 + $0x910] ss:$48 sps:$4 sm:$0xff]  }
 0x11e   : > { %4053 = vmatpush1.bf16.msra.mxu0 %v10807_v58  ;;  %v10899_v58 = vld [vmem:[#allocation4 + $0x374] ss:$48 sps:$4 sm:$0xff]  }
 0x11f   : > { %4094 = vmatpush1.bf16.msra.mxu1 %v10810_v59  ;;  %4054 = vmatprep.subr.bf16.mxu0 %v10815_v60  ;;  %v10902_v59 = vld [vmem:[#allocation4 + $0x974] ss:$48 sps:$4 sm:$0xff]   ;;  %v10897_v60 = vld [vmem:[#allocation4 + $0x370] ss:$48 sps:$4 sm:$0xff]  }
 0x120   : > { %4095 = vmatprep.subr.bf16.mxu1 %v10818_v61  ;;  %v10900_v61 = vld [vmem:[#allocation4 + $0x970] ss:$48 sps:$4 sm:$0xff]  }
 0x122   : > { %4055 = vmatpush1.bf16.msra.mxu0 %v10813_v62  ;;  %v10905_v62 = vld [vmem:[#allocation4 + $0x3d4] ss:$48 sps:$4 sm:$0xff]  }
 0x123   : > { %4096 = vmatpush1.bf16.msra.mxu1 %v10816_v63  ;;  %4056 = vmatprep.subr.bf16.mxu0 %v10821_v0  ;;  %v10908_v63 = vld [vmem:[#allocation4 + $0x9d4] ss:$48 sps:$4 sm:$0xff]   ;;  %v10903_v0 = vld [vmem:[#allocation4 + $0x3d0] ss:$48 sps:$4 sm:$0xff]  }
 0x124   : > { %4097 = vmatprep.subr.bf16.mxu1 %v10824_v1  ;;  %v10906_v1 = vld [vmem:[#allocation4 + $0x9d0] ss:$48 sps:$4 sm:$0xff]  }
 0x126   : > { %4057 = vmatpush1.bf16.msra.mxu0 %v10819_v2  ;;  %v10911_v2 = vld [vmem:[#allocation4 + $0x434] ss:$48 sps:$4 sm:$0xff]  }
 0x127   : > { %4098 = vmatpush1.bf16.msra.mxu1 %v10822_v3  ;;  %4058 = vmatprep.subr.bf16.mxu0 %v10827_v4  ;;  %v10914_v3 = vld [vmem:[#allocation4 + $0xa34] ss:$48 sps:$4 sm:$0xff]   ;;  %v10909_v4 = vld [vmem:[#allocation4 + $0x430] ss:$48 sps:$4 sm:$0xff]  }
 0x128   : > { %4099 = vmatprep.subr.bf16.mxu1 %v10830_v5  ;;  %v10912_v5 = vld [vmem:[#allocation4 + $0xa30] ss:$48 sps:$4 sm:$0xff]  }
 0x12a   : > { %4059 = vmatpush1.bf16.msra.mxu0 %v10825_v8  ;;  %v10917_v8 = vld [vmem:[#allocation4 + $0x494] ss:$48 sps:$4 sm:$0xff]  }
 0x12b   : > { %4100 = vmatpush1.bf16.msra.mxu1 %v10828_v9  ;;  %4060 = vmatprep.subr.bf16.mxu0 %v10833_v10  ;;  %v10920_v9 = vld [vmem:[#allocation4 + $0xa94] ss:$48 sps:$4 sm:$0xff]   ;;  %v10915_v10 = vld [vmem:[#allocation4 + $0x490] ss:$48 sps:$4 sm:$0xff]  }
 0x12c   : > { %4101 = vmatprep.subr.bf16.mxu1 %v10836_v11  ;;  %v10918_v11 = vld [vmem:[#allocation4 + $0xa90] ss:$48 sps:$4 sm:$0xff]  }
 0x12e   : > { %4061 = vmatpush1.bf16.msra.mxu0 %v10831_v12  ;;  %v10923_v12 = vld [vmem:[#allocation4 + $0x4f4] ss:$48 sps:$4 sm:$0xff]  }
 0x12f   : > { %4102 = vmatpush1.bf16.msra.mxu1 %v10834_v13  ;;  %4062 = vmatprep.subr.bf16.mxu0 %v10839_v15  ;;  %v10926_v13 = vld [vmem:[#allocation4 + $0xaf4] ss:$48 sps:$4 sm:$0xff]   ;;  %v10921_v15 = vld [vmem:[#allocation4 + $0x4f0] ss:$48 sps:$4 sm:$0xff]  }
 0x130   : > { %4103 = vmatprep.subr.bf16.mxu1 %v10842_v16  ;;  %v10924_v16 = vld [vmem:[#allocation4 + $0xaf0] ss:$48 sps:$4 sm:$0xff]  }
 0x132   : > { %4063 = vmatpush1.bf16.msra.mxu0 %v10837_v17  ;;  %v10929_v17 = vld [vmem:[#allocation4 + $0x554] ss:$48 sps:$4 sm:$0xff]  }
 0x133   : > { %4104 = vmatpush1.bf16.msra.mxu1 %v10840_v18  ;;  %4114 = vmatprep.subr.bf16.mxu0 %v10845_v19  ;;  %v10932_v18 = vld [vmem:[#allocation4 + $0xb54] ss:$48 sps:$4 sm:$0xff]   ;;  %v10927_v19 = vld [vmem:[#allocation4 + $0x550] ss:$48 sps:$4 sm:$0xff]  }
 0x134   : > { %4155 = vmatprep.subr.bf16.mxu1 %v10848_v20  ;;  %v10930_v20 = vld [vmem:[#allocation4 + $0xb50] ss:$48 sps:$4 sm:$0xff]  }
 0x135   : > { %4065 = vmatmul.mubr.bf16.vlgmr.msra.gmra.mrb[8].mxu0 %v12640_v7 }
 0x136   : > { %4106 = vmatmul.mubr.bf16.vlgmr.msra.gmra.mrb[8].mxu1 %v12655_v14  ;;  %4115 = vmatpush1.bf16.msra.mxu0 %v10843_v21  ;;  %v10935_v21 = vld [vmem:[#allocation4 + $0x5b4] ss:$48 sps:$4 sm:$0xff]  }
 0x137   : > { %4156 = vmatpush1.bf16.msra.mxu1 %v10846_v22  ;;  %4116 = vmatprep.subr.bf16.mxu0 %v10851_v23  ;;  %v10938_v22 = vld [vmem:[#allocation4 + $0xbb4] ss:$48 sps:$4 sm:$0xff]   ;;  %v10933_v23 = vld [vmem:[#allocation4 + $0x5b0] ss:$48 sps:$4 sm:$0xff]  }
 0x138   : > { %4157 = vmatprep.subr.bf16.mxu1 %v10854_v24  ;;  %4146 = vmatprep.mubr.bf16.mxu0 %v12631_v47  ;;  %v10936_v24 = vld [vmem:[#allocation4 + $0xbb0] ss:$48 sps:$4 sm:$0xff]  }
 0x139   : > { %4187 = vmatprep.mubr.bf16.mxu1 %v12634_v51 }
 0x13a   : > { %4117 = vmatpush1.bf16.msra.mxu0 %v10849_v25  ;;  %v10941_v25 = vld [vmem:[#allocation4 + $0xc14] ss:$48 sps:$4 sm:$0xff]  }
 0x13b   : > { %4158 = vmatpush1.bf16.msra.mxu1 %v10852_v26  ;;  %4118 = vmatprep.subr.bf16.mxu0 %v10857_v27  ;;  %v10944_v26 = vld [vmem:[#allocation4 + $0x1c] ss:$48 sps:$4 sm:$0xff]   ;;  %v10939_v27 = vld [vmem:[#allocation4 + $0xc10] ss:$48 sps:$4 sm:$0xff]  }
 0x13c   : > { %4159 = vmatprep.subr.bf16.mxu1 %v10860_v28  ;;  %v10942_v28 = vld [vmem:[#allocation4 + $0x18] ss:$48 sps:$4 sm:$0xff]  }
 0x13e   : > { %4119 = vmatpush1.bf16.msra.mxu0 %v10855_v29  ;;  %v10947_v29 = vld [vmem:[#allocation4 + $0xc74] ss:$48 sps:$4 sm:$0xff]  }
 0x13f   : > { %4160 = vmatpush1.bf16.msra.mxu1 %v10858_v30  ;;  %4120 = vmatprep.subr.bf16.mxu0 %v10863_v31  ;;  %v10950_v30 = vld [vmem:[#allocation4 + $0x7c] ss:$48 sps:$4 sm:$0xff]   ;;  %v10945_v31 = vld [vmem:[#allocation4 + $0xc70] ss:$48 sps:$4 sm:$0xff]  }
 0x140   : > { %4161 = vmatprep.subr.bf16.mxu1 %v10866_v32  ;;  %v10948_v32 = vld [vmem:[#allocation4 + $0x78] ss:$48 sps:$4 sm:$0xff]  }
 0x142   : > { %4121 = vmatpush1.bf16.msra.mxu0 %v10861_v33  ;;  %v10953_v33 = vld [vmem:[#allocation4 + $0xcd4] ss:$48 sps:$4 sm:$0xff]  }
 0x143   : > { %4162 = vmatpush1.bf16.msra.mxu1 %v10864_v35  ;;  %4122 = vmatprep.subr.bf16.mxu0 %v10869_v36  ;;  %v10956_v35 = vld [vmem:[#allocation4 + $0xdc] ss:$48 sps:$4 sm:$0xff]   ;;  %v10951_v36 = vld [vmem:[#allocation4 + $0xcd0] ss:$48 sps:$4 sm:$0xff]  }
 0x144   : > { %4163 = vmatprep.subr.bf16.mxu1 %v10872_v37  ;;  %v10954_v37 = vld [vmem:[#allocation4 + $0xd8] ss:$48 sps:$4 sm:$0xff]  }
 0x146   : > { %4123 = vmatpush1.bf16.msra.mxu0 %v10867_v38  ;;  %v10959_v38 = vld [vmem:[#allocation4 + $0xd34] ss:$48 sps:$4 sm:$0xff]  }
 0x147   : > { %4164 = vmatpush1.bf16.msra.mxu1 %v10870_v39  ;;  %4124 = vmatprep.subr.bf16.mxu0 %v10875_v40  ;;  %v10962_v39 = vld [vmem:[#allocation4 + $0x13c] ss:$48 sps:$4 sm:$0xff]   ;;  %v10957_v40 = vld [vmem:[#allocation4 + $0xd30] ss:$48 sps:$4 sm:$0xff]  }
 0x148   : > { %4165 = vmatprep.subr.bf16.mxu1 %v10878_v41  ;;  %v10960_v41 = vld [vmem:[#allocation4 + $0x138] ss:$48 sps:$4 sm:$0xff]  }
 0x14a   : > { %4125 = vmatpush1.bf16.msra.mxu0 %v10873_v42  ;;  %v10965_v42 = vld [vmem:[#allocation4 + $0xd94] ss:$48 sps:$4 sm:$0xff]  }
 0x14b   : > { %4166 = vmatpush1.bf16.msra.mxu1 %v10876_v43  ;;  %4126 = vmatprep.subr.bf16.mxu0 %v10881_v44  ;;  %v10968_v43 = vld [vmem:[#allocation4 + $0x19c] ss:$48 sps:$4 sm:$0xff]   ;;  %v10963_v44 = vld [vmem:[#allocation4 + $0xd90] ss:$48 sps:$4 sm:$0xff]  }
 0x14c   : > { %4167 = vmatprep.subr.bf16.mxu1 %v10884_v45  ;;  %v10966_v45 = vld [vmem:[#allocation4 + $0x198] ss:$48 sps:$4 sm:$0xff]  }
 0x14e   : > { %4127 = vmatpush1.bf16.msra.mxu0 %v10879_v46  ;;  %v10971_v46 = vld [vmem:[#allocation4 + $0xdf4] ss:$48 sps:$4 sm:$0xff]  }
 0x14f   : > { %4168 = vmatpush1.bf16.msra.mxu1 %v10882_v48  ;;  %4128 = vmatprep.subr.bf16.mxu0 %v10887_v49  ;;  %v10974_v48 = vld [vmem:[#allocation4 + $0x1fc] ss:$48 sps:$4 sm:$0xff]   ;;  %v10969_v49 = vld [vmem:[#allocation4 + $0xdf0] ss:$48 sps:$4 sm:$0xff]  }
 0x150   : > { %4169 = vmatprep.subr.bf16.mxu1 %v10890_v50  ;;  %v10972_v50 = vld [vmem:[#allocation4 + $0x1f8] ss:$48 sps:$4 sm:$0xff]  }
 0x152   : > { %4129 = vmatpush1.bf16.msra.mxu0 %v10885_v52  ;;  %v10977_v52 = vld [vmem:[#allocation4 + $0xe54] ss:$48 sps:$4 sm:$0xff]  }
 0x153   : > { %4170 = vmatpush1.bf16.msra.mxu1 %v10888_v53  ;;  %4130 = vmatprep.subr.bf16.mxu0 %v10893_v54  ;;  %v10980_v53 = vld [vmem:[#allocation4 + $0x25c] ss:$48 sps:$4 sm:$0xff]  }
 0x154   : > { %4171 = vmatprep.subr.bf16.mxu1 %v10896_v55 }
 0x156   : > { %4131 = vmatpush1.bf16.msra.mxu0 %v10891_v56  ;;  %v10975_v56 = vld [vmem:[#allocation4 + $0xe50] ss:$48 sps:$4 sm:$0xff]  }
 0x157   : > { %4172 = vmatpush1.bf16.msra.mxu1 %v10894_v57  ;;  %4132 = vmatprep.subr.bf16.mxu0 %v10899_v58  ;;  %v10978_v57 = vld [vmem:[#allocation4 + $0x258] ss:$48 sps:$4 sm:$0xff]  }
 0x158   : > { %4173 = vmatprep.subr.bf16.mxu1 %v10902_v59 }
 0x15a   : > { %4133 = vmatpush1.bf16.msra.mxu0 %v10897_v60 }
 0x15b   : > { %4174 = vmatpush1.bf16.msra.mxu1 %v10900_v61  ;;  %4134 = vmatprep.subr.bf16.mxu0 %v10905_v62 }
 0x15c   : > { %4175 = vmatprep.subr.bf16.mxu1 %v10908_v63 }
 0x15e   : > { %4135 = vmatpush1.bf16.msra.mxu0 %v10903_v0 }
 0x15f   : > { %4176 = vmatpush1.bf16.msra.mxu1 %v10906_v1  ;;  %4136 = vmatprep.subr.bf16.mxu0 %v10911_v2  ;;  %v10983_v2 = vld [vmem:[#allocation4 + $0xeb4] ss:$48 sps:$4 sm:$0xff]  }
 0x160   : > { %4177 = vmatprep.subr.bf16.mxu1 %v10914_v3  ;;  %v10986_v3 = vld [vmem:[#allocation4 + $0x2bc] ss:$48 sps:$4 sm:$0xff]  }
 0x162   : > { %4137 = vmatpush1.bf16.msra.mxu0 %v10909_v4  ;;  %v10981_v4 = vld [vmem:[#allocation4 + $0xeb0] ss:$48 sps:$4 sm:$0xff]  }
 0x163   : > { %4178 = vmatpush1.bf16.msra.mxu1 %v10912_v5  ;;  %4138 = vmatprep.subr.bf16.mxu0 %v10917_v8  ;;  %v10984_v5 = vld [vmem:[#allocation4 + $0x2b8] ss:$48 sps:$4 sm:$0xff]   ;;  %v10989_v8 = vld [vmem:[#allocation4 + $0xf14] ss:$48 sps:$4 sm:$0xff]  }
 0x164   : > { %4179 = vmatprep.subr.bf16.mxu1 %v10920_v9  ;;  %v10992_v9 = vld [vmem:[#allocation4 + $0x31c] ss:$48 sps:$4 sm:$0xff]  }
 0x166   : > { %4139 = vmatpush1.bf16.msra.mxu0 %v10915_v10  ;;  %v10987_v10 = vld [vmem:[#allocation4 + $0xf10] ss:$48 sps:$4 sm:$0xff]  }
 0x167   : > { %4180 = vmatpush1.bf16.msra.mxu1 %v10918_v11  ;;  %4140 = vmatprep.subr.bf16.mxu0 %v10923_v12  ;;  %v10990_v11 = vld [vmem:[#allocation4 + $0x318] ss:$48 sps:$4 sm:$0xff]   ;;  %v10995_v12 = vld [vmem:[#allocation4 + $0xf74] ss:$48 sps:$4 sm:$0xff]  }
 0x168   : > { %4181 = vmatprep.subr.bf16.mxu1 %v10926_v13  ;;  %v10998_v13 = vld [vmem:[#allocation4 + $0x37c] ss:$48 sps:$4 sm:$0xff]  }
 0x16a   : > { %4141 = vmatpush1.bf16.msra.mxu0 %v10921_v15  ;;  %v10993_v15 = vld [vmem:[#allocation4 + $0xf70] ss:$48 sps:$4 sm:$0xff]  }
 0x16b   : > { %4182 = vmatpush1.bf16.msra.mxu1 %v10924_v16  ;;  %4142 = vmatprep.subr.bf16.mxu0 %v10929_v17  ;;  %v10996_v16 = vld [vmem:[#allocation4 + $0x378] ss:$48 sps:$4 sm:$0xff]   ;;  %v11001_v17 = vld [vmem:[#allocation4 + $0xfd4] ss:$48 sps:$4 sm:$0xff]  }
 0x16c   : > { %4183 = vmatprep.subr.bf16.mxu1 %v10932_v18  ;;  %v11004_v18 = vld [vmem:[#allocation4 + $0x3dc] ss:$48 sps:$4 sm:$0xff]  }
 0x16e   : > { %4143 = vmatpush1.bf16.msra.mxu0 %v10927_v19  ;;  %v10999_v19 = vld [vmem:[#allocation4 + $0xfd0] ss:$48 sps:$4 sm:$0xff]  }
 0x16f   : > { %4184 = vmatpush1.bf16.msra.mxu1 %v10930_v20  ;;  %4144 = vmatprep.subr.bf16.mxu0 %v10935_v21  ;;  %v11002_v20 = vld [vmem:[#allocation4 + $0x3d8] ss:$48 sps:$4 sm:$0xff]   ;;  %v11007_v21 = vld [vmem:[#allocation4 + $0x1034] ss:$48 sps:$4 sm:$0xff]  }
 0x170   : > { %4185 = vmatprep.subr.bf16.mxu1 %v10938_v22  ;;  %v11010_v22 = vld [vmem:[#allocation4 + $0x43c] ss:$48 sps:$4 sm:$0xff]  }
 0x172   : > { %4145 = vmatpush1.bf16.msra.mxu0 %v10933_v23  ;;  %v11005_v23 = vld [vmem:[#allocation4 + $0x1030] ss:$48 sps:$4 sm:$0xff]  }
 0x173   : > { %4186 = vmatpush1.bf16.msra.mxu1 %v10936_v24  ;;  %4196 = vmatprep.subr.bf16.mxu0 %v10941_v25  ;;  %v11008_v24 = vld [vmem:[#allocation4 + $0x438] ss:$48 sps:$4 sm:$0xff]   ;;  %v11013_v25 = vld [vmem:[#allocation4 + $0x1094] ss:$48 sps:$4 sm:$0xff]  }
 0x174   : > { %4237 = vmatprep.subr.bf16.mxu1 %v10944_v26  ;;  %v11016_v26 = vld [vmem:[#allocation4 + $0x49c] ss:$48 sps:$4 sm:$0xff]  }
 0x175   : > { %4147 = vmatmul.mubr.bf16.vlgmr.msra.gmra.mrb[12].mxu0 %v12638_v6 }
 0x176   : > { %4188 = vmatmul.mubr.bf16.vlgmr.msra.gmra.mrb[12].mxu1 %v12640_v7  ;;  %4197 = vmatpush1.bf16.msra.mxu0 %v10939_v27  ;;  %v11011_v27 = vld [vmem:[#allocation4 + $0x1090] ss:$48 sps:$4 sm:$0xff]  }
 0x177   : > { %4238 = vmatpush1.bf16.msra.mxu1 %v10942_v28  ;;  %4198 = vmatprep.subr.bf16.mxu0 %v10947_v29  ;;  %v11014_v28 = vld [vmem:[#allocation4 + $0x498] ss:$48 sps:$4 sm:$0xff]   ;;  %v11019_v29 = vld [vmem:[#allocation4 + $0x10f4] ss:$48 sps:$4 sm:$0xff]  }
 0x178   : > { %4239 = vmatprep.subr.bf16.mxu1 %v10950_v30  ;;  %4228 = vmatprep.mubr.bf16.mxu0 %v12650_v34  ;;  %v11022_v30 = vld [vmem:[#allocation4 + $0x4fc] ss:$48 sps:$4 sm:$0xff]  }
 0x179   : > { %4269 = vmatprep.mubr.bf16.mxu1 %v12631_v47 }
 0x17a   : > { %4199 = vmatpush1.bf16.msra.mxu0 %v10945_v31  ;;  %v11017_v31 = vld [vmem:[#allocation4 + $0x10f0] ss:$48 sps:$4 sm:$0xff]  }
 0x17b   : > { %4240 = vmatpush1.bf16.msra.mxu1 %v10948_v32  ;;  %4200 = vmatprep.subr.bf16.mxu0 %v10953_v33  ;;  %v11020_v32 = vld [vmem:[#allocation4 + $0x4f8] ss:$48 sps:$4 sm:$0xff]   ;;  %v11025_v33 = vld [vmem:[#allocation4 + $0x1154] ss:$48 sps:$4 sm:$0xff]  }
 0x17c   : > { %4241 = vmatprep.subr.bf16.mxu1 %v10956_v35  ;;  %v11028_v35 = vld [vmem:[#allocation4 + $0x55c] ss:$48 sps:$4 sm:$0xff]  }
 0x17e   : > { %4201 = vmatpush1.bf16.msra.mxu0 %v10951_v36  ;;  %v11023_v36 = vld [vmem:[#allocation4 + $0x1150] ss:$48 sps:$4 sm:$0xff]  }
 0x17f   : > { %4242 = vmatpush1.bf16.msra.mxu1 %v10954_v37  ;;  %4202 = vmatprep.subr.bf16.mxu0 %v10959_v38  ;;  %v11026_v37 = vld [vmem:[#allocation4 + $0x558] ss:$48 sps:$4 sm:$0xff]   ;;  %v11031_v38 = vld [vmem:[#allocation4 + $0x11b4] ss:$48 sps:$4 sm:$0xff]  }
 0x180   : > { %4243 = vmatprep.subr.bf16.mxu1 %v10962_v39  ;;  %v11034_v39 = vld [vmem:[#allocation4 + $0x5bc] ss:$48 sps:$4 sm:$0xff]  }
 0x182   : > { %4203 = vmatpush1.bf16.msra.mxu0 %v10957_v40  ;;  %v11029_v40 = vld [vmem:[#allocation4 + $0x11b0] ss:$48 sps:$4 sm:$0xff]  }
 0x183   : > { %4244 = vmatpush1.bf16.msra.mxu1 %v10960_v41  ;;  %4204 = vmatprep.subr.bf16.mxu0 %v10965_v42  ;;  %v11032_v41 = vld [vmem:[#allocation4 + $0x5b8] ss:$48 sps:$4 sm:$0xff]   ;;  %v11037_v42 = vld [vmem:[#allocation4 + $0x61c] ss:$48 sps:$4 sm:$0xff]  }
 0x184   : > { %4245 = vmatprep.subr.bf16.mxu1 %v10968_v43  ;;  %v11040_v43 = vld [vmem:[#allocation4 + $0xc1c] ss:$48 sps:$4 sm:$0xff]  }
 0x186   : > { %4205 = vmatpush1.bf16.msra.mxu0 %v10963_v44  ;;  %v11035_v44 = vld [vmem:[#allocation4 + $0x618] ss:$48 sps:$4 sm:$0xff]  }
 0x187   : > { %4246 = vmatpush1.bf16.msra.mxu1 %v10966_v45  ;;  %4206 = vmatprep.subr.bf16.mxu0 %v10971_v46  ;;  %v11038_v45 = vld [vmem:[#allocation4 + $0xc18] ss:$48 sps:$4 sm:$0xff]   ;;  %v11043_v46 = vld [vmem:[#allocation4 + $0x67c] ss:$48 sps:$4 sm:$0xff]  }
 0x188   : > { %4247 = vmatprep.subr.bf16.mxu1 %v10974_v48  ;;  %v3902_v54 = vpop.f32.mrb[0].mxu0  ;;  %v11046_v48 = vld [vmem:[#allocation4 + $0xc7c] ss:$48 sps:$4 sm:$0xff]  }
 0x189   : > { %v3943_v55 = vpop.f32.mrb[0].mxu1  ;;  %v3904_v59 = vpop.f32.mrb[1].mxu0 }
 0x18a   : > { %v12669_v58 = vadd.f32 %v3943_v55, %v3902_v54  ;;  %v3945_v60 = vpop.f32.mrb[1].mxu1  ;;  %v3906_v62 = vpop.f32.mrb[2].mxu0  ;;  %4207 = vmatpush1.bf16.msra.mxu0 %v10969_v49  ;;  %v11041_v49 = vld [vmem:[#allocation4 + $0x678] ss:$48 sps:$4 sm:$0xff]  }
 0x18b   : > { %v12671_v61 = vadd.f32 %v3945_v60, %v3904_v59  ;;  %v3947_v63 = vpop.f32.mrb[2].mxu1  ;;  %4248 = vmatpush1.bf16.msra.mxu1 %v10972_v50  ;;  %v3907_v0 = vpop.f32.mrb[3].mxu0  ;;  %4208 = vmatprep.subr.bf16.mxu0 %v10977_v52  ;;  %v11044_v50 = vld [vmem:[#allocation4 + $0xc78] ss:$48 sps:$4 sm:$0xff]   ;;  %v11049_v52 = vld [vmem:[#allocation4 + $0x6dc] ss:$48 sps:$4 sm:$0xff]  }
 0x18c   : > { %v3948_v1 = vpop.f32.mrb[3].mxu1  ;;  %4249 = vmatprep.subr.bf16.mxu1 %v10980_v53  ;;  %v11052_v53 = vld [vmem:[#allocation4 + $0xcdc] ss:$48 sps:$4 sm:$0xff]   ;;  %v11047_v54 = vld [vmem:[#allocation4 + $0x6d8] ss:$48 sps:$4 sm:$0xff]  }
 0x18d   : > { %v11050_v55 = vld [vmem:[#allocation4 + $0xcd8] ss:$48 sps:$4 sm:$0xff]   ;;  %v11061_v62 = vld [vmem:[#allocation4 + $0x79c] ss:$48 sps:$4 sm:$0xff]  }
 0x18e   : > { %4209 = vmatpush1.bf16.msra.mxu0 %v10975_v56  ;;  %v11055_v56 = vld [vmem:[#allocation4 + $0x73c] ss:$48 sps:$4 sm:$0xff]   ;;  %v11053_v59 = vld [vmem:[#allocation4 + $0x738] ss:$48 sps:$4 sm:$0xff]  }
 0x18f   : > { %4250 = vmatpush1.bf16.msra.mxu1 %v10978_v57  ;;  %4210 = vmatprep.subr.bf16.mxu0 %v10983_v2  ;;  %v11058_v57 = vld [vmem:[#allocation4 + $0xd3c] ss:$48 sps:$4 sm:$0xff]   ;;  %v11056_v60 = vld [vmem:[#allocation4 + $0xd38] ss:$48 sps:$4 sm:$0xff]  }
 0x190   : > { %4251 = vmatprep.subr.bf16.mxu1 %v10986_v3  ;;  %v11064_v63 = vld [vmem:[#allocation4 + $0xd9c] ss:$48 sps:$4 sm:$0xff]   ;;  %v11059_v0 = vld [vmem:[#allocation4 + $0x798] ss:$48 sps:$4 sm:$0xff]  }
 0x191   : > { %v11062_v1 = vld [vmem:[#allocation4 + $0xd98] ss:$48 sps:$4 sm:$0xff]   ;;  %v11067_v2 = vld [vmem:[#allocation4 + $0x7fc] ss:$48 sps:$4 sm:$0xff]  }
 0x192   : > { %4211 = vmatpush1.bf16.msra.mxu0 %v10981_v4  ;;  %v11070_v3 = vld [vmem:[#allocation4 + $0xdfc] ss:$48 sps:$4 sm:$0xff]   ;;  %v11065_v4 = vld [vmem:[#allocation4 + $0x7f8] ss:$48 sps:$4 sm:$0xff]  }
 0x193   : > { %4252 = vmatpush1.bf16.msra.mxu1 %v10984_v5  ;;  %4212 = vmatprep.subr.bf16.mxu0 %v10989_v8  ;;  %v11068_v5 = vld [vmem:[#allocation4 + $0xdf8] ss:$48 sps:$4 sm:$0xff]   ;;  %v11073_v8 = vld [vmem:[#allocation4 + $0x85c] ss:$48 sps:$4 sm:$0xff]  }
 0x194   : > { %4253 = vmatprep.subr.bf16.mxu1 %v10992_v9  ;;  %v11076_v9 = vld [vmem:[#allocation4 + $0xe5c] ss:$48 sps:$4 sm:$0xff]  }
 0x196   : > { %4213 = vmatpush1.bf16.msra.mxu0 %v10987_v10 }
 0x197   : > { %4254 = vmatpush1.bf16.msra.mxu1 %v10990_v11  ;;  %4214 = vmatprep.subr.bf16.mxu0 %v10995_v12  ;;  %v11071_v12 = vld [vmem:[#allocation4 + $0x858] ss:$48 sps:$4 sm:$0xff]  }
 0x198   : > { %4255 = vmatprep.subr.bf16.mxu1 %v10998_v13  ;;  %v11074_v13 = vld [vmem:[#allocation4 + $0xe58] ss:$48 sps:$4 sm:$0xff]  }
 0x19a   : > { %4215 = vmatpush1.bf16.msra.mxu0 %v10993_v15 }
 0x19b   : > { %4256 = vmatpush1.bf16.msra.mxu1 %v10996_v16  ;;  %4216 = vmatprep.subr.bf16.mxu0 %v11001_v17 }
 0x19c   : > { %4257 = vmatprep.subr.bf16.mxu1 %v11004_v18 }
 0x19e   : > { %4217 = vmatpush1.bf16.msra.mxu0 %v10999_v19 }
 0x19f   : > { %4258 = vmatpush1.bf16.msra.mxu1 %v11002_v20  ;;  %4218 = vmatprep.subr.bf16.mxu0 %v11007_v21 }
 0x1a0   : > { %4259 = vmatprep.subr.bf16.mxu1 %v11010_v22 }
 0x1a2   : > { %4219 = vmatpush1.bf16.msra.mxu0 %v11005_v23  ;;  %v11079_v23 = vld [vmem:[#allocation4 + $0x8bc] ss:$48 sps:$4 sm:$0xff]  }
 0x1a3   : > { %4260 = vmatpush1.bf16.msra.mxu1 %v11008_v24  ;;  %4220 = vmatprep.subr.bf16.mxu0 %v11013_v25  ;;  %v11082_v24 = vld [vmem:[#allocation4 + $0xebc] ss:$48 sps:$4 sm:$0xff]   ;;  %v11080_v25 = vld [vmem:[#allocation4 + $0xeb8] ss:$48 sps:$4 sm:$0xff]  }
 0x1a4   : > { %4261 = vmatprep.subr.bf16.mxu1 %v11016_v26  ;;  %v11085_v26 = vld [vmem:[#allocation4 + $0x91c] ss:$48 sps:$4 sm:$0xff]  }
 0x1a6   : > { %4221 = vmatpush1.bf16.msra.mxu0 %v11011_v27  ;;  %v11088_v27 = vld [vmem:[#allocation4 + $0xf1c] ss:$48 sps:$4 sm:$0xff]  }
 0x1a7   : > { %4262 = vmatpush1.bf16.msra.mxu1 %v11014_v28  ;;  %4222 = vmatprep.subr.bf16.mxu0 %v11019_v29  ;;  %v11086_v28 = vld [vmem:[#allocation4 + $0xf18] ss:$48 sps:$4 sm:$0xff]   ;;  %v11091_v29 = vld [vmem:[#allocation4 + $0x97c] ss:$48 sps:$4 sm:$0xff]  }
 0x1a8   : > { %4263 = vmatprep.subr.bf16.mxu1 %v11022_v30  ;;  %v11094_v30 = vld [vmem:[#allocation4 + $0xf7c] ss:$48 sps:$4 sm:$0xff]  }
 0x1aa   : > { %4223 = vmatpush1.bf16.msra.mxu0 %v11017_v31  ;;  %v11089_v31 = vld [vmem:[#allocation4 + $0x978] ss:$48 sps:$4 sm:$0xff]  }
 0x1ab   : > { %4264 = vmatpush1.bf16.msra.mxu1 %v11020_v32  ;;  %4224 = vmatprep.subr.bf16.mxu0 %v11025_v33  ;;  %v11092_v32 = vld [vmem:[#allocation4 + $0xf78] ss:$48 sps:$4 sm:$0xff]   ;;  %v11097_v33 = vld [vmem:[#allocation4 + $0x9dc] ss:$48 sps:$4 sm:$0xff]  }
 0x1ac   : > { %4265 = vmatprep.subr.bf16.mxu1 %v11028_v35  ;;  %v11100_v35 = vld [vmem:[#allocation4 + $0xfdc] ss:$48 sps:$4 sm:$0xff]  }
 0x1ae   : > { %4225 = vmatpush1.bf16.msra.mxu0 %v11023_v36  ;;  %v11095_v36 = vld [vmem:[#allocation4 + $0x9d8] ss:$48 sps:$4 sm:$0xff]  }
 0x1af   : > { %4266 = vmatpush1.bf16.msra.mxu1 %v11026_v37  ;;  %4226 = vmatprep.subr.bf16.mxu0 %v11031_v38  ;;  %v11098_v37 = vld [vmem:[#allocation4 + $0xfd8] ss:$48 sps:$4 sm:$0xff]   ;;  %v11103_v38 = vld [vmem:[#allocation4 + $0xa3c] ss:$48 sps:$4 sm:$0xff]  }
 0x1b0   : > { %4267 = vmatprep.subr.bf16.mxu1 %v11034_v39  ;;  %v11106_v39 = vld [vmem:[#allocation4 + $0x103c] ss:$48 sps:$4 sm:$0xff]  }
 0x1b2   : > { %4227 = vmatpush1.bf16.msra.mxu0 %v11029_v40  ;;  %v11101_v40 = vld [vmem:[#allocation4 + $0xa38] ss:$48 sps:$4 sm:$0xff]  }
 0x1b3   : > { %4268 = vmatpush1.bf16.msra.mxu1 %v11032_v41  ;;  %4278 = vmatprep.subr.bf16.mxu0 %v11037_v42  ;;  %v11104_v41 = vld [vmem:[#allocation4 + $0x1038] ss:$48 sps:$4 sm:$0xff]   ;;  %v11109_v42 = vld [vmem:[#allocation4 + $0xa9c] ss:$48 sps:$4 sm:$0xff]  }
 0x1b4   : > { %4319 = vmatprep.subr.bf16.mxu1 %v11040_v43  ;;  %v11112_v43 = vld [vmem:[#allocation4 + $0x109c] ss:$48 sps:$4 sm:$0xff]  }
 0x1b5   : > { %4229 = vmatmul.mubr.bf16.vlgmr.msra.gmra.mrb[16].mxu0 %v12655_v14 }
 0x1b6   : > { %4270 = vmatmul.mubr.bf16.vlgmr.msra.gmra.mrb[16].mxu1 %v12638_v6  ;;  %4279 = vmatpush1.bf16.msra.mxu0 %v11035_v44  ;;  %v11107_v44 = vld [vmem:[#allocation4 + $0xa98] ss:$48 sps:$4 sm:$0xff]  }
 0x1b7   : > { %4320 = vmatpush1.bf16.msra.mxu1 %v11038_v45  ;;  %4280 = vmatprep.subr.bf16.mxu0 %v11043_v46  ;;  %v11110_v45 = vld [vmem:[#allocation4 + $0x1098] ss:$48 sps:$4 sm:$0xff]   ;;  %v11115_v46 = vld [vmem:[#allocation4 + $0xafc] ss:$48 sps:$4 sm:$0xff]  }
 0x1b8   : > { %4321 = vmatprep.subr.bf16.mxu1 %v11046_v48  ;;  %4310 = vmatprep.mubr.bf16.mxu0 %v12634_v51  ;;  %v11118_v48 = vld [vmem:[#allocation4 + $0x10fc] ss:$48 sps:$4 sm:$0xff]  }
 0x1b9   : > { %4351 = vmatprep.mubr.bf16.mxu1 %v12650_v34 }
 0x1ba   : > { %4281 = vmatpush1.bf16.msra.mxu0 %v11041_v49  ;;  %v11113_v49 = vld [vmem:[#allocation4 + $0xaf8] ss:$48 sps:$4 sm:$0xff]  }
 0x1bb   : > { %4322 = vmatpush1.bf16.msra.mxu1 %v11044_v50  ;;  %4282 = vmatprep.subr.bf16.mxu0 %v11049_v52  ;;  %v11116_v50 = vld [vmem:[#allocation4 + $0x10f8] ss:$48 sps:$4 sm:$0xff]   ;;  %v11121_v52 = vld [vmem:[#allocation4 + $0xb5c] ss:$48 sps:$4 sm:$0xff]  }
 0x1bc   : > { %4323 = vmatprep.subr.bf16.mxu1 %v11052_v53  ;;  %v11124_v53 = vld [vmem:[#allocation4 + $0x115c] ss:$48 sps:$4 sm:$0xff]  }
 0x1be   : > { %4283 = vmatpush1.bf16.msra.mxu0 %v11047_v54  ;;  %v11119_v54 = vld [vmem:[#allocation4 + $0xb58] ss:$48 sps:$4 sm:$0xff]  }
 0x1bf   : > { %4324 = vmatpush1.bf16.msra.mxu1 %v11050_v55  ;;  %4284 = vmatprep.subr.bf16.mxu0 %v11055_v56  ;;  %v11122_v55 = vld [vmem:[#allocation4 + $0x1158] ss:$48 sps:$4 sm:$0xff]   ;;  %v11127_v56 = vld [vmem:[#allocation4 + $0xbbc] ss:$48 sps:$4 sm:$0xff]  }
 0x1c0   : > { %4325 = vmatprep.subr.bf16.mxu1 %v11058_v57  ;;  %v11130_v57 = vld [vmem:[#allocation4 + $0x11bc] ss:$48 sps:$4 sm:$0xff]  }
 0x1c2   : > { %4285 = vmatpush1.bf16.msra.mxu0 %v11053_v59  ;;  %v11125_v59 = vld [vmem:[#allocation4 + $0xbb8] ss:$48 sps:$4 sm:$0xff]  }
 0x1c3   : > { %4326 = vmatpush1.bf16.msra.mxu1 %v11056_v60  ;;  %4286 = vmatprep.subr.bf16.mxu0 %v11061_v62  ;;  %v11128_v60 = vld [vmem:[#allocation4 + $0x11b8] ss:$48 sps:$4 sm:$0xff]   ;;  %v11133_v62 = vld [vmem:[#allocation4 + $0x24] ss:$48 sps:$4 sm:$0xff]  }
 0x1c4   : > { %4327 = vmatprep.subr.bf16.mxu1 %v11064_v63  ;;  %v11136_v63 = vld [vmem:[#allocation4 + $0x624] ss:$48 sps:$4 sm:$0xff]  }
 0x1c6   : > { %4287 = vmatpush1.bf16.msra.mxu0 %v11059_v0  ;;  %v11131_v0 = vld [vmem:[#allocation4 + $0x20] ss:$48 sps:$4 sm:$0xff]  }
 0x1c7   : > { %4328 = vmatpush1.bf16.msra.mxu1 %v11062_v1  ;;  %4288 = vmatprep.subr.bf16.mxu0 %v11067_v2  ;;  %v11134_v1 = vld [vmem:[#allocation4 + $0x620] ss:$48 sps:$4 sm:$0xff]   ;;  %v11139_v2 = vld [vmem:[#allocation4 + $0x84] ss:$48 sps:$4 sm:$0xff]  }
 0x1c8   : > { %4329 = vmatprep.subr.bf16.mxu1 %v11070_v3  ;;  %v3984_v10 = vpop.f32.mrb[4].mxu0  ;;  %v11142_v3 = vld [vmem:[#allocation4 + $0x684] ss:$48 sps:$4 sm:$0xff]  }
 0x1c9   : > { %v12677_v11 = vpop.f32.mrb[4].mxu1  ;;  %v12680_v15 = vadd.f32 %v3984_v10, %v12669_v58  ;;  %v3986_v16 = vpop.f32.mrb[5].mxu0  ;;  %v11077_v58 = vld [vmem:[#allocation4 + $0x8b8] ss:$48 sps:$4 sm:$0xff]   ;;  %v11143_v10 = vld [vmem:[#allocation4 + $0xe0] ss:$48 sps:$4 sm:$0xff]  }
 0x1ca   : > { %v12682_v17 = vpop.f32.mrb[5].mxu1  ;;  %v12685_v18 = vadd.f32 %v3986_v16, %v12671_v61  ;;  %v3988_v19 = vpop.f32.mrb[6].mxu0  ;;  %4289 = vmatpush1.bf16.msra.mxu0 %v11065_v4  ;;  %v11083_v61 = vld [vmem:[#allocation4 + $0x918] ss:$48 sps:$4 sm:$0xff]   ;;  %v11137_v4 = vld [vmem:[#allocation4 + $0x80] ss:$48 sps:$4 sm:$0xff]  }
 0x1cb   : > { %v4029_v20 = vpop.f32.mrb[6].mxu1  ;;  %4330 = vmatpush1.bf16.msra.mxu1 %v11068_v5  ;;  %v3989_v21 = vpop.f32.mrb[7].mxu0  ;;  %4290 = vmatprep.subr.bf16.mxu0 %v11073_v8  ;;  %v11140_v5 = vld [vmem:[#allocation4 + $0x680] ss:$48 sps:$4 sm:$0xff]   ;;  %v11145_v8 = vld [vmem:[#allocation4 + $0xe4] ss:$48 sps:$4 sm:$0xff]  }
 0x1cc   : > { %v4030_v22 = vpop.f32.mrb[7].mxu1  ;;  %4331 = vmatprep.subr.bf16.mxu1 %v11076_v9  ;;  %v11148_v9 = vld [vmem:[#allocation4 + $0x6e4] ss:$48 sps:$4 sm:$0xff]   ;;  %v11149_v19 = vld [vmem:[#allocation4 + $0x140] ss:$48 sps:$4 sm:$0xff]  }
 0x1cd   : > { %v11154_v16 = vld [vmem:[#allocation4 + $0x744] ss:$48 sps:$4 sm:$0xff]   ;;  %v11152_v20 = vld [vmem:[#allocation4 + $0x740] ss:$48 sps:$4 sm:$0xff]  }
 0x1ce   : > { %4291 = vmatpush1.bf16.msra.mxu0 %v11071_v12  ;;  %v11146_v12 = vld [vmem:[#allocation4 + $0x6e0] ss:$48 sps:$4 sm:$0xff]   ;;  %v11157_v21 = vld [vmem:[#allocation4 + $0x1a4] ss:$48 sps:$4 sm:$0xff]  }
 0x1cf   : > { %4332 = vmatpush1.bf16.msra.mxu1 %v11074_v13  ;;  %4292 = vmatprep.subr.bf16.mxu0 %v11079_v23  ;;  %v11151_v13 = vld [vmem:[#allocation4 + $0x144] ss:$48 sps:$4 sm:$0xff]   ;;  %v11155_v23 = vld [vmem:[#allocation4 + $0x1a0] ss:$48 sps:$4 sm:$0xff]  }
 0x1d0   : > { %4333 = vmatprep.subr.bf16.mxu1 %v11082_v24  ;;  %v11160_v22 = vld [vmem:[#allocation4 + $0x7a4] ss:$48 sps:$4 sm:$0xff]   ;;  %v11158_v24 = vld [vmem:[#allocation4 + $0x7a0] ss:$48 sps:$4 sm:$0xff]  }
 0x1d2   : > { %4293 = vmatpush1.bf16.msra.mxu0 %v11077_v58  ;;  %v11163_v58 = vld [vmem:[#allocation4 + $0x204] ss:$48 sps:$4 sm:$0xff]  }
 0x1d3   : > { %4334 = vmatpush1.bf16.msra.mxu1 %v11080_v25  ;;  %4294 = vmatprep.subr.bf16.mxu0 %v11085_v26  ;;  %v11166_v25 = vld [vmem:[#allocation4 + $0x804] ss:$48 sps:$4 sm:$0xff]   ;;  %v11161_v26 = vld [vmem:[#allocation4 + $0x200] ss:$48 sps:$4 sm:$0xff]  }
 0x1d4   : > { %4335 = vmatprep.subr.bf16.mxu1 %v11088_v27  ;;  %v11164_v27 = vld [vmem:[#allocation4 + $0x800] ss:$48 sps:$4 sm:$0xff]  }
 0x1d6   : > { %4295 = vmatpush1.bf16.msra.mxu0 %v11083_v61  ;;  %v11169_v61 = vld [vmem:[#allocation4 + $0x264] ss:$48 sps:$4 sm:$0xff]  }
 0x1d7   : > { %4336 = vmatpush1.bf16.msra.mxu1 %v11086_v28  ;;  %4296 = vmatprep.subr.bf16.mxu0 %v11091_v29  ;;  %v11172_v28 = vld [vmem:[#allocation4 + $0x864] ss:$48 sps:$4 sm:$0xff]  }
 0x1d8   : > { %4337 = vmatprep.subr.bf16.mxu1 %v11094_v30 }
 0x1da   : > { %4297 = vmatpush1.bf16.msra.mxu0 %v11089_v31  ;;  %v11167_v31 = vld [vmem:[#allocation4 + $0x260] ss:$48 sps:$4 sm:$0xff]  }
 0x1db   : > { %4338 = vmatpush1.bf16.msra.mxu1 %v11092_v32  ;;  %4298 = vmatprep.subr.bf16.mxu0 %v11097_v33  ;;  %v11170_v32 = vld [vmem:[#allocation4 + $0x860] ss:$48 sps:$4 sm:$0xff]  }
 0x1dc   : > { %4339 = vmatprep.subr.bf16.mxu1 %v11100_v35 }
 0x1de   : > { %4299 = vmatpush1.bf16.msra.mxu0 %v11095_v36 }
 0x1df   : > { %4340 = vmatpush1.bf16.msra.mxu1 %v11098_v37  ;;  %4300 = vmatprep.subr.bf16.mxu0 %v11103_v38 }
 0x1e0   : > { %4341 = vmatprep.subr.bf16.mxu1 %v11106_v39 }
 0x1e2   : > { %4301 = vmatpush1.bf16.msra.mxu0 %v11101_v40 }
 0x1e3   : > { %4342 = vmatpush1.bf16.msra.mxu1 %v11104_v41  ;;  %4302 = vmatprep.subr.bf16.mxu0 %v11109_v42 }
 0x1e4   : > { %4343 = vmatprep.subr.bf16.mxu1 %v11112_v43  ;;  %v11175_v43 = vld [vmem:[#allocation4 + $0x2c4] ss:$48 sps:$4 sm:$0xff]  }
 0x1e6   : > { %4303 = vmatpush1.bf16.msra.mxu0 %v11107_v44  ;;  %v11178_v44 = vld [vmem:[#allocation4 + $0x8c4] ss:$48 sps:$4 sm:$0xff]  }
 0x1e7   : > { %4344 = vmatpush1.bf16.msra.mxu1 %v11110_v45  ;;  %4304 = vmatprep.subr.bf16.mxu0 %v11115_v46  ;;  %v11176_v46 = vld [vmem:[#allocation4 + $0x8c0] ss:$48 sps:$4 sm:$0xff]  }
 0x1e8   : > { %4345 = vmatprep.subr.bf16.mxu1 %v11118_v48  ;;  %v11184_v48 = vld [vmem:[#allocation4 + $0x924] ss:$48 sps:$4 sm:$0xff]  }
 0x1ea   : > { %4305 = vmatpush1.bf16.msra.mxu0 %v11113_v49  ;;  %v11179_v49 = vld [vmem:[#allocation4 + $0x320] ss:$48 sps:$4 sm:$0xff]  }
 0x1eb   : > { %4346 = vmatpush1.bf16.msra.mxu1 %v11116_v50  ;;  %4306 = vmatprep.subr.bf16.mxu0 %v11121_v52  ;;  %v11182_v50 = vld [vmem:[#allocation4 + $0x920] ss:$48 sps:$4 sm:$0xff]   ;;  %v11187_v52 = vld [vmem:[#allocation4 + $0x384] ss:$48 sps:$4 sm:$0xff]  }
 0x1ec   : > { %4347 = vmatprep.subr.bf16.mxu1 %v11124_v53  ;;  %v11190_v53 = vld [vmem:[#allocation4 + $0x984] ss:$48 sps:$4 sm:$0xff]  }
 0x1ee   : > { %4307 = vmatpush1.bf16.msra.mxu0 %v11119_v54  ;;  %v11185_v54 = vld [vmem:[#allocation4 + $0x380] ss:$48 sps:$4 sm:$0xff]  }
 0x1ef   : > { %4348 = vmatpush1.bf16.msra.mxu1 %v11122_v55  ;;  %4308 = vmatprep.subr.bf16.mxu0 %v11127_v56  ;;  %v11188_v55 = vld [vmem:[#allocation4 + $0x980] ss:$48 sps:$4 sm:$0xff]   ;;  %v11193_v56 = vld [vmem:[#allocation4 + $0x3e4] ss:$48 sps:$4 sm:$0xff]  }
 0x1f0   : > { %4349 = vmatprep.subr.bf16.mxu1 %v11130_v57  ;;  %v11196_v57 = vld [vmem:[#allocation4 + $0x9e4] ss:$48 sps:$4 sm:$0xff]  }
 0x1f2   : > { %4309 = vmatpush1.bf16.msra.mxu0 %v11125_v59  ;;  %v11191_v59 = vld [vmem:[#allocation4 + $0x3e0] ss:$48 sps:$4 sm:$0xff]  }
 0x1f3   : > { %4350 = vmatpush1.bf16.msra.mxu1 %v11128_v60  ;;  %4360 = vmatprep.subr.bf16.mxu0 %v11133_v62  ;;  %v11194_v60 = vld [vmem:[#allocation4 + $0x9e0] ss:$48 sps:$4 sm:$0xff]   ;;  %v11199_v62 = vld [vmem:[#allocation4 + $0x444] ss:$48 sps:$4 sm:$0xff]  }
 0x1f4   : > { %4401 = vmatprep.subr.bf16.mxu1 %v11136_v63  ;;  %v11202_v63 = vld [vmem:[#allocation4 + $0xa44] ss:$48 sps:$4 sm:$0xff]  }
 0x1f5   : > { %4311 = vmatmul.mubr.bf16.vlgmr.msra.gmra.mrb[20].mxu0 %v12640_v7 }
 0x1f6   : > { %4352 = vmatmul.mubr.bf16.vlgmr.msra.gmra.mrb[20].mxu1 %v12655_v14  ;;  %4361 = vmatpush1.bf16.msra.mxu0 %v11131_v0  ;;  %v11197_v0 = vld [vmem:[#allocation4 + $0x440] ss:$48 sps:$4 sm:$0xff]  }
 0x1f7   : > { %4402 = vmatpush1.bf16.msra.mxu1 %v11134_v1  ;;  %4362 = vmatprep.subr.bf16.mxu0 %v11139_v2  ;;  %v11200_v1 = vld [vmem:[#allocation4 + $0xa40] ss:$48 sps:$4 sm:$0xff]   ;;  %v11205_v2 = vld [vmem:[#allocation4 + $0x4a4] ss:$48 sps:$4 sm:$0xff]  }
 0x1f8   : > { %4403 = vmatprep.subr.bf16.mxu1 %v11142_v3  ;;  %4392 = vmatprep.mubr.bf16.mxu0 %v12631_v47  ;;  %v11208_v3 = vld [vmem:[#allocation4 + $0xaa4] ss:$48 sps:$4 sm:$0xff]  }
 0x1f9   : > { %4433 = vmatprep.mubr.bf16.mxu1 %v12634_v51 }
 0x1fa   : > { %4363 = vmatpush1.bf16.msra.mxu0 %v11137_v4  ;;  %v11203_v4 = vld [vmem:[#allocation4 + $0x4a0] ss:$48 sps:$4 sm:$0xff]  }
 0x1fb   : > { %4404 = vmatpush1.bf16.msra.mxu1 %v11140_v5  ;;  %4364 = vmatprep.subr.bf16.mxu0 %v11145_v8  ;;  %v11206_v5 = vld [vmem:[#allocation4 + $0xaa0] ss:$48 sps:$4 sm:$0xff]   ;;  %v11211_v8 = vld [vmem:[#allocation4 + $0x504] ss:$48 sps:$4 sm:$0xff]  }
 0x1fc   : > { %4405 = vmatprep.subr.bf16.mxu1 %v11148_v9  ;;  %v11214_v9 = vld [vmem:[#allocation4 + $0xb04] ss:$48 sps:$4 sm:$0xff]  }
 0x1fe   : > { %4365 = vmatpush1.bf16.msra.mxu0 %v11143_v10  ;;  %v11209_v10 = vld [vmem:[#allocation4 + $0x500] ss:$48 sps:$4 sm:$0xff]  }
 0x1ff   : > { %4406 = vmatpush1.bf16.msra.mxu1 %v11146_v12  ;;  %4366 = vmatprep.subr.bf16.mxu0 %v11151_v13  ;;  %v11212_v12 = vld [vmem:[#allocation4 + $0xb00] ss:$48 sps:$4 sm:$0xff]   ;;  %v11217_v13 = vld [vmem:[#allocation4 + $0x564] ss:$48 sps:$4 sm:$0xff]  }
 0x200   : > { %4407 = vmatprep.subr.bf16.mxu1 %v11154_v16  ;;  %v11220_v16 = vld [vmem:[#allocation4 + $0xb64] ss:$48 sps:$4 sm:$0xff]  }
 0x202   : > { %4367 = vmatpush1.bf16.msra.mxu0 %v11149_v19  ;;  %v11215_v19 = vld [vmem:[#allocation4 + $0x560] ss:$48 sps:$4 sm:$0xff]  }
 0x203   : > { %4408 = vmatpush1.bf16.msra.mxu1 %v11152_v20  ;;  %4368 = vmatprep.subr.bf16.mxu0 %v11157_v21  ;;  %v11218_v20 = vld [vmem:[#allocation4 + $0xb60] ss:$48 sps:$4 sm:$0xff]   ;;  %v11223_v21 = vld [vmem:[#allocation4 + $0x5c4] ss:$48 sps:$4 sm:$0xff]  }
 0x204   : > { %4409 = vmatprep.subr.bf16.mxu1 %v11160_v22  ;;  %v11226_v22 = vld [vmem:[#allocation4 + $0xbc4] ss:$48 sps:$4 sm:$0xff]  }
 0x206   : > { %4369 = vmatpush1.bf16.msra.mxu0 %v11155_v23  ;;  %v11221_v23 = vld [vmem:[#allocation4 + $0x5c0] ss:$48 sps:$4 sm:$0xff]  }
 0x207   : > { %4410 = vmatpush1.bf16.msra.mxu1 %v11158_v24  ;;  %4370 = vmatprep.subr.bf16.mxu0 %v11163_v58  ;;  %v11224_v24 = vld [vmem:[#allocation4 + $0xbc0] ss:$48 sps:$4 sm:$0xff]   ;;  %v11229_v58 = vld [vmem:[#allocation4 + $0xc24] ss:$48 sps:$4 sm:$0xff]  }
 0x208   : > { %4411 = vmatprep.subr.bf16.mxu1 %v11166_v25  ;;  %v4066_v29 = vpop.f32.mrb[8].mxu0  ;;  %v11232_v25 = vld [vmem:[#allocation4 + $0x2c] ss:$48 sps:$4 sm:$0xff]  }
 0x209   : > { %v4107_v30 = vpop.f32.mrb[8].mxu1  ;;  %v4067_v33 = vadd.f32 %v4066_v29, %v12677_v11  ;;  %v4068_v35 = vpop.f32.mrb[9].mxu0  ;;  %v11173_v11 = vld [vmem:[#allocation4 + $0x2c0] ss:$48 sps:$4 sm:$0xff]  }
 0x20a   : > { %v4109_v36 = vpop.f32.mrb[9].mxu1  ;;  %v4069_v37 = vadd.f32 %v4068_v35, %v12682_v17  ;;  %v4070_v38 = vpop.f32.mrb[10].mxu0  ;;  %4371 = vmatpush1.bf16.msra.mxu0 %v11161_v26  ;;  %v11181_v17 = vld [vmem:[#allocation4 + $0x324] ss:$48 sps:$4 sm:$0xff]   ;;  %v11227_v26 = vld [vmem:[#allocation4 + $0xc20] ss:$48 sps:$4 sm:$0xff]  }
 0x20b   : > { %v4111_v39 = vpop.f32.mrb[10].mxu1  ;;  %4412 = vmatpush1.bf16.msra.mxu1 %v11164_v27  ;;  %v12693_v40 = vadd.f32 %v4107_v30, %v4067_v33  ;;  %v4071_v41 = vpop.f32.mrb[11].mxu0  ;;  %4372 = vmatprep.subr.bf16.mxu0 %v11169_v61  ;;  %v11230_v27 = vld [vmem:[#allocation4 + $0x28] ss:$48 sps:$4 sm:$0xff]   ;;  %v11235_v61 = vld [vmem:[#allocation4 + $0xc84] ss:$48 sps:$4 sm:$0xff]  }
 0x20c   : > { %v4112_v42 = vpop.f32.mrb[11].mxu1  ;;  %4413 = vmatprep.subr.bf16.mxu1 %v11172_v28  ;;  %v12695_v45 = vadd.f32 %v4109_v36, %v4069_v37  ;;  %v11238_v28 = vld [vmem:[#allocation4 + $0x8c] ss:$48 sps:$4 sm:$0xff]   ;;  %v11233_v29 = vld [vmem:[#allocation4 + $0xc80] ss:$48 sps:$4 sm:$0xff]  }
 0x20d   : > { %v11236_v30 = vld [vmem:[#allocation4 + $0x88] ss:$48 sps:$4 sm:$0xff]   ;;  %v11239_v33 = vld [vmem:[#allocation4 + $0xce0] ss:$48 sps:$4 sm:$0xff]   ;;  %v11247_v36 = vld [vmem:[#allocation4 + $0xd44] ss:$48 sps:$4 sm:$0xff]  }
 0x20e   : > { %4373 = vmatpush1.bf16.msra.mxu0 %v11167_v31  ;;  %v11241_v31 = vld [vmem:[#allocation4 + $0xce4] ss:$48 sps:$4 sm:$0xff]   ;;  %v11242_v35 = vld [vmem:[#allocation4 + $0xe8] ss:$48 sps:$4 sm:$0xff]   ;;  %v11250_v37 = vld [vmem:[#allocation4 + $0x14c] ss:$48 sps:$4 sm:$0xff]  }
 0x20f   : > { %4414 = vmatpush1.bf16.msra.mxu1 %v11170_v32  ;;  %4374 = vmatprep.subr.bf16.mxu0 %v11175_v43  ;;  %v11244_v32 = vld [vmem:[#allocation4 + $0xec] ss:$48 sps:$4 sm:$0xff]   ;;  %v11245_v38 = vld [vmem:[#allocation4 + $0xd40] ss:$48 sps:$4 sm:$0xff]   ;;  %v11248_v39 = vld [vmem:[#allocation4 + $0x148] ss:$48 sps:$4 sm:$0xff]  }
 0x210   : > { %4415 = vmatprep.subr.bf16.mxu1 %v11178_v44  ;;  %v11253_v41 = vld [vmem:[#allocation4 + $0xda4] ss:$48 sps:$4 sm:$0xff]   ;;  %v11256_v42 = vld [vmem:[#allocation4 + $0x1ac] ss:$48 sps:$4 sm:$0xff]   ;;  %v11251_v43 = vld [vmem:[#allocation4 + $0xda0] ss:$48 sps:$4 sm:$0xff]  }
 0x211   : > { %v11259_v44 = vld [vmem:[#allocation4 + $0xe04] ss:$48 sps:$4 sm:$0xff]  }
 0x212   : > { %4375 = vmatpush1.bf16.msra.mxu0 %v11173_v11  ;;  %v11262_v11 = vld [vmem:[#allocation4 + $0x20c] ss:$48 sps:$4 sm:$0xff]  }
 0x213   : > { %4416 = vmatpush1.bf16.msra.mxu1 %v11176_v46  ;;  %4376 = vmatprep.subr.bf16.mxu0 %v11181_v17  ;;  %v11257_v46 = vld [vmem:[#allocation4 + $0xe00] ss:$48 sps:$4 sm:$0xff]   ;;  %v11260_v17 = vld [vmem:[#allocation4 + $0x208] ss:$48 sps:$4 sm:$0xff]  }
 0x214   : > { %4417 = vmatprep.subr.bf16.mxu1 %v11184_v48  ;;  %v11265_v48 = vld [vmem:[#allocation4 + $0xe64] ss:$48 sps:$4 sm:$0xff]  }
 0x216   : > { %4377 = vmatpush1.bf16.msra.mxu0 %v11179_v49  ;;  %v11268_v49 = vld [vmem:[#allocation4 + $0x26c] ss:$48 sps:$4 sm:$0xff]  }
 0x217   : > { %4418 = vmatpush1.bf16.msra.mxu1 %v11182_v50  ;;  %4378 = vmatprep.subr.bf16.mxu0 %v11187_v52 }
 0x218   : > { %4419 = vmatprep.subr.bf16.mxu1 %v11190_v53  ;;  %v11263_v53 = vld [vmem:[#allocation4 + $0xe60] ss:$48 sps:$4 sm:$0xff]  }
 0x21a   : > { %4379 = vmatpush1.bf16.msra.mxu0 %v11185_v54  ;;  %v11266_v54 = vld [vmem:[#allocation4 + $0x268] ss:$48 sps:$4 sm:$0xff]  }
 0x21b   : > { %4420 = vmatpush1.bf16.msra.mxu1 %v11188_v55  ;;  %4380 = vmatprep.subr.bf16.mxu0 %v11193_v56 }
 0x21c   : > { %4421 = vmatprep.subr.bf16.mxu1 %v11196_v57 }
 0x21e   : > { %4381 = vmatpush1.bf16.msra.mxu0 %v11191_v59 }
 0x21f   : > { %4422 = vmatpush1.bf16.msra.mxu1 %v11194_v60  ;;  %4382 = vmatprep.subr.bf16.mxu0 %v11199_v62 }
 0x220   : > { %4423 = vmatprep.subr.bf16.mxu1 %v11202_v63 }
 0x222   : > { %4383 = vmatpush1.bf16.msra.mxu0 %v11197_v0 }
 0x223   : > { %4424 = vmatpush1.bf16.msra.mxu1 %v11200_v1  ;;  %4384 = vmatprep.subr.bf16.mxu0 %v11205_v2  ;;  %v11271_v1 = vld [vmem:[#allocation4 + $0xec4] ss:$48 sps:$4 sm:$0xff]   ;;  %v11274_v2 = vld [vmem:[#allocation4 + $0x2cc] ss:$48 sps:$4 sm:$0xff]  }
 0x224   : > { %4425 = vmatprep.subr.bf16.mxu1 %v11208_v3  ;;  %v11269_v3 = vld [vmem:[#allocation4 + $0xec0] ss:$48 sps:$4 sm:$0xff]  }
 0x226   : > { %4385 = vmatpush1.bf16.msra.mxu0 %v11203_v4  ;;  %v11272_v4 = vld [vmem:[#allocation4 + $0x2c8] ss:$48 sps:$4 sm:$0xff]  }
 0x227   : > { %4426 = vmatpush1.bf16.msra.mxu1 %v11206_v5  ;;  %4386 = vmatprep.subr.bf16.mxu0 %v11211_v8  ;;  %v11277_v5 = vld [vmem:[#allocation4 + $0xf24] ss:$48 sps:$4 sm:$0xff]   ;;  %v11280_v8 = vld [vmem:[#allocation4 + $0x32c] ss:$48 sps:$4 sm:$0xff]  }
 0x228   : > { %4427 = vmatprep.subr.bf16.mxu1 %v11214_v9  ;;  %v11275_v9 = vld [vmem:[#allocation4 + $0xf20] ss:$48 sps:$4 sm:$0xff]  }
 0x22a   : > { %4387 = vmatpush1.bf16.msra.mxu0 %v11209_v10  ;;  %v11278_v10 = vld [vmem:[#allocation4 + $0x328] ss:$48 sps:$4 sm:$0xff]  }
 0x22b   : > { %4428 = vmatpush1.bf16.msra.mxu1 %v11212_v12  ;;  %4388 = vmatprep.subr.bf16.mxu0 %v11217_v13  ;;  %v11283_v12 = vld [vmem:[#allocation4 + $0xf84] ss:$48 sps:$4 sm:$0xff]   ;;  %v11286_v13 = vld [vmem:[#allocation4 + $0x38c] ss:$48 sps:$4 sm:$0xff]  }
 0x22c   : > { %4429 = vmatprep.subr.bf16.mxu1 %v11220_v16  ;;  %v11281_v16 = vld [vmem:[#allocation4 + $0xf80] ss:$48 sps:$4 sm:$0xff]  }
 0x22e   : > { %4389 = vmatpush1.bf16.msra.mxu0 %v11215_v19  ;;  %v11284_v19 = vld [vmem:[#allocation4 + $0x388] ss:$48 sps:$4 sm:$0xff]  }
 0x22f   : > { %4430 = vmatpush1.bf16.msra.mxu1 %v11218_v20  ;;  %4390 = vmatprep.subr.bf16.mxu0 %v11223_v21  ;;  %v11289_v20 = vld [vmem:[#allocation4 + $0xfe4] ss:$48 sps:$4 sm:$0xff]   ;;  %v11292_v21 = vld [vmem:[#allocation4 + $0x3ec] ss:$48 sps:$4 sm:$0xff]  }
 0x230   : > { %4431 = vmatprep.subr.bf16.mxu1 %v11226_v22  ;;  %v11287_v22 = vld [vmem:[#allocation4 + $0xfe0] ss:$48 sps:$4 sm:$0xff]  }
 0x232   : > { %4391 = vmatpush1.bf16.msra.mxu0 %v11221_v23  ;;  %v11290_v23 = vld [vmem:[#allocation4 + $0x3e8] ss:$48 sps:$4 sm:$0xff]  }
 0x233   : > { %4432 = vmatpush1.bf16.msra.mxu1 %v11224_v24  ;;  %4442 = vmatprep.subr.bf16.mxu0 %v11229_v58  ;;  %v11295_v24 = vld [vmem:[#allocation4 + $0x1044] ss:$48 sps:$4 sm:$0xff]   ;;  %v11298_v58 = vld [vmem:[#allocation4 + $0x44c] ss:$48 sps:$4 sm:$0xff]  }
 0x234   : > { %4483 = vmatprep.subr.bf16.mxu1 %v11232_v25  ;;  %v11293_v25 = vld [vmem:[#allocation4 + $0x1040] ss:$48 sps:$4 sm:$0xff]  }
 0x235   : > { %4393 = vmatmul.mubr.bf16.vlgmr.msra.gmra.mrb[24].mxu0 %v12638_v6 }
 0x236   : > { %4434 = vmatmul.mubr.bf16.vlgmr.msra.gmra.mrb[24].mxu1 %v12640_v7  ;;  %4443 = vmatpush1.bf16.msra.mxu0 %v11227_v26  ;;  %v11296_v26 = vld [vmem:[#allocation4 + $0x448] ss:$48 sps:$4 sm:$0xff]  }
 0x237   : > { %4484 = vmatpush1.bf16.msra.mxu1 %v11230_v27  ;;  %4444 = vmatprep.subr.bf16.mxu0 %v11235_v61  ;;  %v11301_v27 = vld [vmem:[#allocation4 + $0x10a4] ss:$48 sps:$4 sm:$0xff]   ;;  %v11304_v61 = vld [vmem:[#allocation4 + $0x4ac] ss:$48 sps:$4 sm:$0xff]  }
 0x238   : > { %4485 = vmatprep.subr.bf16.mxu1 %v11238_v28  ;;  %4474 = vmatprep.mubr.bf16.mxu0 %v12650_v34  ;;  %v11299_v28 = vld [vmem:[#allocation4 + $0x10a0] ss:$48 sps:$4 sm:$0xff]  }
 0x239   : > { %4515 = vmatprep.mubr.bf16.mxu1 %v12631_v47  ;;  %v11254_v47 = vld [vmem:[#allocation4 + $0x1a8] ss:$48 sps:$4 sm:$0xff]  }
 0x23a   : > { %4445 = vmatpush1.bf16.msra.mxu0 %v11233_v29  ;;  %v11302_v29 = vld [vmem:[#allocation4 + $0x4a8] ss:$48 sps:$4 sm:$0xff]  }
 0x23b   : > { %4486 = vmatpush1.bf16.msra.mxu1 %v11236_v30  ;;  %4446 = vmatprep.subr.bf16.mxu0 %v11241_v31  ;;  %v11307_v30 = vld [vmem:[#allocation4 + $0x1104] ss:$48 sps:$4 sm:$0xff]   ;;  %v11310_v31 = vld [vmem:[#allocation4 + $0x50c] ss:$48 sps:$4 sm:$0xff]  }
 0x23c   : > { %4487 = vmatprep.subr.bf16.mxu1 %v11244_v32  ;;  %v11305_v32 = vld [vmem:[#allocation4 + $0x1100] ss:$48 sps:$4 sm:$0xff]  }
 0x23e   : > { %4447 = vmatpush1.bf16.msra.mxu0 %v11239_v33  ;;  %v11308_v33 = vld [vmem:[#allocation4 + $0x508] ss:$48 sps:$4 sm:$0xff]  }
 0x23f   : > { %4488 = vmatpush1.bf16.msra.mxu1 %v11242_v35  ;;  %4448 = vmatprep.subr.bf16.mxu0 %v11247_v36  ;;  %v11313_v35 = vld [vmem:[#allocation4 + $0x1164] ss:$48 sps:$4 sm:$0xff]   ;;  %v11316_v36 = vld [vmem:[#allocation4 + $0x56c] ss:$48 sps:$4 sm:$0xff]  }
 0x240   : > { %4489 = vmatprep.subr.bf16.mxu1 %v11250_v37  ;;  %v11311_v37 = vld [vmem:[#allocation4 + $0x1160] ss:$48 sps:$4 sm:$0xff]  }
 0x242   : > { %4449 = vmatpush1.bf16.msra.mxu0 %v11245_v38  ;;  %v11314_v38 = vld [vmem:[#allocation4 + $0x568] ss:$48 sps:$4 sm:$0xff]  }
 0x243   : > { %4490 = vmatpush1.bf16.msra.mxu1 %v11248_v39  ;;  %4450 = vmatprep.subr.bf16.mxu0 %v11253_v41  ;;  %v11319_v39 = vld [vmem:[#allocation4 + $0x11c4] ss:$48 sps:$4 sm:$0xff]   ;;  %v11322_v41 = vld [vmem:[#allocation4 + $0x5cc] ss:$48 sps:$4 sm:$0xff]  }
 0x244   : > { %4491 = vmatprep.subr.bf16.mxu1 %v11256_v42  ;;  %v11317_v42 = vld [vmem:[#allocation4 + $0x11c0] ss:$48 sps:$4 sm:$0xff]  }
 0x246   : > { %4451 = vmatpush1.bf16.msra.mxu0 %v11251_v43  ;;  %v11320_v43 = vld [vmem:[#allocation4 + $0x5c8] ss:$48 sps:$4 sm:$0xff]  }
 0x247   : > { %4492 = vmatpush1.bf16.msra.mxu1 %v11254_v47  ;;  %4452 = vmatprep.subr.bf16.mxu0 %v11259_v44  ;;  %v11325_v47 = vld [vmem:[#allocation4 + $0x62c] ss:$48 sps:$4 sm:$0xff]  }
 0x248   : > { %4493 = vmatprep.subr.bf16.mxu1 %v11262_v11  ;;  %v4148_v50 = vpop.f32.mrb[12].mxu0  ;;  %v11328_v44 = vld [vmem:[#allocation4 + $0xc2c] ss:$48 sps:$4 sm:$0xff]   ;;  %v11323_v11 = vld [vmem:[#allocation4 + $0x628] ss:$48 sps:$4 sm:$0xff]  }
 0x249   : > { %v4189_v52 = vpop.f32.mrb[12].mxu1  ;;  %v4150_v56 = vpop.f32.mrb[13].mxu0 }
 0x24a   : > { %v12701_v55 = vadd.f32 %v4189_v52, %v4148_v50  ;;  %v4191_v57 = vpop.f32.mrb[13].mxu1  ;;  %v4152_v60 = vpop.f32.mrb[14].mxu0  ;;  %4453 = vmatpush1.bf16.msra.mxu0 %v11257_v46  ;;  %v11326_v46 = vld [vmem:[#allocation4 + $0xc28] ss:$48 sps:$4 sm:$0xff]   ;;  %v11337_v52 = vld [vmem:[#allocation4 + $0x6ec] ss:$48 sps:$4 sm:$0xff]  }
 0x24b   : > { %v12703_v59 = vadd.f32 %v4191_v57, %v4150_v56  ;;  %v4193_v62 = vpop.f32.mrb[14].mxu1  ;;  %4494 = vmatpush1.bf16.msra.mxu1 %v11260_v17  ;;  %v4153_v63 = vpop.f32.mrb[15].mxu0  ;;  %4454 = vmatprep.subr.bf16.mxu0 %v11265_v48  ;;  %v11331_v17 = vld [vmem:[#allocation4 + $0x68c] ss:$48 sps:$4 sm:$0xff]   ;;  %v11332_v50 = vld [vmem:[#allocation4 + $0xc88] ss:$48 sps:$4 sm:$0xff]  }
 0x24c   : > { %v4194_v0 = vpop.f32.mrb[15].mxu1  ;;  %4495 = vmatprep.subr.bf16.mxu1 %v11268_v49  ;;  %v11334_v48 = vld [vmem:[#allocation4 + $0xc8c] ss:$48 sps:$4 sm:$0xff]   ;;  %v11329_v49 = vld [vmem:[#allocation4 + $0x688] ss:$48 sps:$4 sm:$0xff]  }
 0x24d   : > { %v11338_v56 = vld [vmem:[#allocation4 + $0xce8] ss:$48 sps:$4 sm:$0xff]   ;;  %v11343_v57 = vld [vmem:[#allocation4 + $0x74c] ss:$48 sps:$4 sm:$0xff]  }
 0x24e   : > { %4455 = vmatpush1.bf16.msra.mxu0 %v11263_v53  ;;  %v11340_v53 = vld [vmem:[#allocation4 + $0xcec] ss:$48 sps:$4 sm:$0xff]   ;;  %v11341_v60 = vld [vmem:[#allocation4 + $0x748] ss:$48 sps:$4 sm:$0xff]  }
 0x24f   : > { %4496 = vmatpush1.bf16.msra.mxu1 %v11266_v54  ;;  %4456 = vmatprep.subr.bf16.mxu0 %v11271_v1  ;;  %v11335_v54 = vld [vmem:[#allocation4 + $0x6e8] ss:$48 sps:$4 sm:$0xff]   ;;  %v11349_v63 = vld [vmem:[#allocation4 + $0x7ac] ss:$48 sps:$4 sm:$0xff]  }
 0x250   : > { %4497 = vmatprep.subr.bf16.mxu1 %v11274_v2  ;;  %v11344_v62 = vld [vmem:[#allocation4 + $0xd48] ss:$48 sps:$4 sm:$0xff]   ;;  %v11352_v0 = vld [vmem:[#allocation4 + $0xdac] ss:$48 sps:$4 sm:$0xff]  }
 0x251   : > { %v11355_v1 = vld [vmem:[#allocation4 + $0x80c] ss:$48 sps:$4 sm:$0xff]  }
 0x252   : > { %4457 = vmatpush1.bf16.msra.mxu0 %v11269_v3  ;;  %v11358_v2 = vld [vmem:[#allocation4 + $0xe0c] ss:$48 sps:$4 sm:$0xff]   ;;  %v11353_v3 = vld [vmem:[#allocation4 + $0x808] ss:$48 sps:$4 sm:$0xff]  }
 0x253   : > { %4498 = vmatpush1.bf16.msra.mxu1 %v11272_v4  ;;  %4458 = vmatprep.subr.bf16.mxu0 %v11277_v5  ;;  %v11356_v4 = vld [vmem:[#allocation4 + $0xe08] ss:$48 sps:$4 sm:$0xff]   ;;  %v11361_v5 = vld [vmem:[#allocation4 + $0x86c] ss:$48 sps:$4 sm:$0xff]  }
 0x254   : > { %4499 = vmatprep.subr.bf16.mxu1 %v11280_v8  ;;  %v11364_v8 = vld [vmem:[#allocation4 + $0xe6c] ss:$48 sps:$4 sm:$0xff]  }
 0x256   : > { %4459 = vmatpush1.bf16.msra.mxu0 %v11275_v9 }
 0x257   : > { %4500 = vmatpush1.bf16.msra.mxu1 %v11278_v10  ;;  %4460 = vmatprep.subr.bf16.mxu0 %v11283_v12  ;;  %v11359_v12 = vld [vmem:[#allocation4 + $0x868] ss:$48 sps:$4 sm:$0xff]  }
 0x258   : > { %4501 = vmatprep.subr.bf16.mxu1 %v11286_v13  ;;  %v11362_v13 = vld [vmem:[#allocation4 + $0xe68] ss:$48 sps:$4 sm:$0xff]  }
 0x25a   : > { %4461 = vmatpush1.bf16.msra.mxu0 %v11281_v16 }
 0x25b   : > { %4502 = vmatpush1.bf16.msra.mxu1 %v11284_v19  ;;  %4462 = vmatprep.subr.bf16.mxu0 %v11289_v20 }
 0x25c   : > { %4503 = vmatprep.subr.bf16.mxu1 %v11292_v21 }
 0x25e   : > { %4463 = vmatpush1.bf16.msra.mxu0 %v11287_v22 }
 0x25f   : > { %4504 = vmatpush1.bf16.msra.mxu1 %v11290_v23  ;;  %4464 = vmatprep.subr.bf16.mxu0 %v11295_v24 }
 0x260   : > { %4505 = vmatprep.subr.bf16.mxu1 %v11298_v58 }
 0x262   : > { %4465 = vmatpush1.bf16.msra.mxu0 %v11293_v25  ;;  %v11367_v25 = vld [vmem:[#allocation4 + $0x8cc] ss:$48 sps:$4 sm:$0xff]  }
 0x263   : > { %4506 = vmatpush1.bf16.msra.mxu1 %v11296_v26  ;;  %4466 = vmatprep.subr.bf16.mxu0 %v11301_v27  ;;  %v11370_v26 = vld [vmem:[#allocation4 + $0xecc] ss:$48 sps:$4 sm:$0xff]   ;;  %v11368_v27 = vld [vmem:[#allocation4 + $0xec8] ss:$48 sps:$4 sm:$0xff]  }
 0x264   : > { %4507 = vmatprep.subr.bf16.mxu1 %v11304_v61  ;;  %v11373_v61 = vld [vmem:[#allocation4 + $0x92c] ss:$48 sps:$4 sm:$0xff]  }
 0x266   : > { %4467 = vmatpush1.bf16.msra.mxu0 %v11299_v28  ;;  %v11376_v28 = vld [vmem:[#allocation4 + $0xf2c] ss:$48 sps:$4 sm:$0xff]  }
 0x267   : > { %4508 = vmatpush1.bf16.msra.mxu1 %v11302_v29  ;;  %4468 = vmatprep.subr.bf16.mxu0 %v11307_v30  ;;  %v11374_v29 = vld [vmem:[#allocation4 + $0xf28] ss:$48 sps:$4 sm:$0xff]   ;;  %v11379_v30 = vld [vmem:[#allocation4 + $0x98c] ss:$48 sps:$4 sm:$0xff]  }
 0x268   : > { %4509 = vmatprep.subr.bf16.mxu1 %v11310_v31  ;;  %v11382_v31 = vld [vmem:[#allocation4 + $0xf8c] ss:$48 sps:$4 sm:$0xff]  }
 0x26a   : > { %4469 = vmatpush1.bf16.msra.mxu0 %v11305_v32  ;;  %v11377_v32 = vld [vmem:[#allocation4 + $0x988] ss:$48 sps:$4 sm:$0xff]  }
 0x26b   : > { %4510 = vmatpush1.bf16.msra.mxu1 %v11308_v33  ;;  %4470 = vmatprep.subr.bf16.mxu0 %v11313_v35  ;;  %v11380_v33 = vld [vmem:[#allocation4 + $0xf88] ss:$48 sps:$4 sm:$0xff]   ;;  %v11385_v35 = vld [vmem:[#allocation4 + $0x9ec] ss:$48 sps:$4 sm:$0xff]  }
 0x26c   : > { %4511 = vmatprep.subr.bf16.mxu1 %v11316_v36  ;;  %v11388_v36 = vld [vmem:[#allocation4 + $0xfec] ss:$48 sps:$4 sm:$0xff]  }
 0x26e   : > { %4471 = vmatpush1.bf16.msra.mxu0 %v11311_v37  ;;  %v11383_v37 = vld [vmem:[#allocation4 + $0x9e8] ss:$48 sps:$4 sm:$0xff]  }
 0x26f   : > { %4512 = vmatpush1.bf16.msra.mxu1 %v11314_v38  ;;  %4472 = vmatprep.subr.bf16.mxu0 %v11319_v39  ;;  %v11386_v38 = vld [vmem:[#allocation4 + $0xfe8] ss:$48 sps:$4 sm:$0xff]   ;;  %v11391_v39 = vld [vmem:[#allocation4 + $0xa4c] ss:$48 sps:$4 sm:$0xff]  }
 0x270   : > { %4513 = vmatprep.subr.bf16.mxu1 %v11322_v41  ;;  %v11394_v41 = vld [vmem:[#allocation4 + $0x104c] ss:$48 sps:$4 sm:$0xff]  }
 0x272   : > { %4473 = vmatpush1.bf16.msra.mxu0 %v11317_v42  ;;  %v11389_v42 = vld [vmem:[#allocation4 + $0xa48] ss:$48 sps:$4 sm:$0xff]  }
 0x273   : > { %4514 = vmatpush1.bf16.msra.mxu1 %v11320_v43  ;;  %4524 = vmatprep.subr.bf16.mxu0 %v11325_v47  ;;  %v11392_v43 = vld [vmem:[#allocation4 + $0x1048] ss:$48 sps:$4 sm:$0xff]   ;;  %v11397_v47 = vld [vmem:[#allocation4 + $0xaac] ss:$48 sps:$4 sm:$0xff]  }
 0x274   : > { %4565 = vmatprep.subr.bf16.mxu1 %v11328_v44  ;;  %v11400_v44 = vld [vmem:[#allocation4 + $0x10ac] ss:$48 sps:$4 sm:$0xff]  }
 0x275   : > { %4475 = vmatmul.mubr.bf16.vlgmr.msra.gmra.mrb[28].mxu0 %v12655_v14 }
 0x276   : > { %4516 = vmatmul.mubr.bf16.vlgmr.msra.gmra.mrb[28].mxu1 %v12638_v6  ;;  %4525 = vmatpush1.bf16.msra.mxu0 %v11323_v11  ;;  %v11346_v6 = vld [vmem:[#allocation4 + $0xd4c] ss:$48 sps:$4 sm:$0xff]   ;;  %v11395_v11 = vld [vmem:[#allocation4 + $0xaa8] ss:$48 sps:$4 sm:$0xff]  }
 0x277   : > { %4566 = vmatpush1.bf16.msra.mxu1 %v11326_v46  ;;  %4526 = vmatprep.subr.bf16.mxu0 %v11331_v17  ;;  %v11398_v46 = vld [vmem:[#allocation4 + $0x10a8] ss:$48 sps:$4 sm:$0xff]   ;;  %v11403_v17 = vld [vmem:[#allocation4 + $0xb0c] ss:$48 sps:$4 sm:$0xff]  }
 0x278   : > { %4567 = vmatprep.subr.bf16.mxu1 %v11334_v48  ;;  %4556 = vmatprep.mubr.bf16.mxu0 %v12634_v51  ;;  %v11347_v51 = vld [vmem:[#allocation4 + $0x7a8] ss:$48 sps:$4 sm:$0xff]   ;;  %v11406_v48 = vld [vmem:[#allocation4 + $0x110c] ss:$48 sps:$4 sm:$0xff]  }
 0x279   : > { %4597 = vmatprep.mubr.bf16.mxu1 %v12650_v34  ;;  %v11350_v34 = vld [vmem:[#allocation4 + $0xda8] ss:$48 sps:$4 sm:$0xff]  }
 0x27a   : > { %4527 = vmatpush1.bf16.msra.mxu0 %v11329_v49  ;;  %v11401_v49 = vld [vmem:[#allocation4 + $0xb08] ss:$48 sps:$4 sm:$0xff]  }
 0x27b   : > { %4568 = vmatpush1.bf16.msra.mxu1 %v11332_v50  ;;  %4528 = vmatprep.subr.bf16.mxu0 %v11337_v52  ;;  %v11404_v50 = vld [vmem:[#allocation4 + $0x1108] ss:$48 sps:$4 sm:$0xff]   ;;  %v11409_v52 = vld [vmem:[#allocation4 + $0xb6c] ss:$48 sps:$4 sm:$0xff]  }
 0x27c   : > { %4569 = vmatprep.subr.bf16.mxu1 %v11340_v53  ;;  %v11412_v53 = vld [vmem:[#allocation4 + $0x116c] ss:$48 sps:$4 sm:$0xff]  }
 0x27e   : > { %4529 = vmatpush1.bf16.msra.mxu0 %v11335_v54  ;;  %v11407_v54 = vld [vmem:[#allocation4 + $0xb68] ss:$48 sps:$4 sm:$0xff]  }
 0x27f   : > { %4570 = vmatpush1.bf16.msra.mxu1 %v11338_v56  ;;  %4530 = vmatprep.subr.bf16.mxu0 %v11343_v57  ;;  %v11410_v56 = vld [vmem:[#allocation4 + $0x1168] ss:$48 sps:$4 sm:$0xff]   ;;  %v11415_v57 = vld [vmem:[#allocation4 + $0xbcc] ss:$48 sps:$4 sm:$0xff]  }
 0x280   : > { %4571 = vmatprep.subr.bf16.mxu1 %v11346_v6  ;;  %v11418_v6 = vld [vmem:[#allocation4 + $0x11cc] ss:$48 sps:$4 sm:$0xff]  }
 0x282   : > { %4531 = vmatpush1.bf16.msra.mxu0 %v11341_v60  ;;  %v11413_v60 = vld [vmem:[#allocation4 + $0xbc8] ss:$48 sps:$4 sm:$0xff]  }
 0x283   : > { %4572 = vmatpush1.bf16.msra.mxu1 %v11344_v62  ;;  %4532 = vmatprep.subr.bf16.mxu0 %v11349_v63  ;;  %v11416_v62 = vld [vmem:[#allocation4 + $0x11c8] ss:$48 sps:$4 sm:$0xff]   ;;  %v11421_v63 = vld [vmem:[#allocation2 + $0x4] ss:$24 sps:$4 sm:$0xff]  }
 0x284   : > { %4573 = vmatprep.subr.bf16.mxu1 %v11352_v0  ;;  %v11424_v0 = vld [vmem:[#allocation2 + $0x304] ss:$24 sps:$4 sm:$0xff]  }
 0x286   : > { %4533 = vmatpush1.bf16.msra.mxu0 %v11347_v51  ;;  %v12726_v51 = vld [vmem:[%s12723_s11] sm:$0xff] }
 0x287   : > { %4574 = vmatpush1.bf16.msra.mxu1 %v11350_v34  ;;  %4534 = vmatprep.subr.bf16.mxu0 %v11355_v1  ;;  %v11419_v34 = vld [vmem:[#allocation2] ss:$24 sps:$4 sm:$0xff]  }
 0x288   : > { %4575 = vmatprep.subr.bf16.mxu1 %v11358_v2  ;;  %v4230_v9 = vpop.f32.mrb[16].mxu0  ;;  %v11422_v1 = vld [vmem:[#allocation2 + $0x300] ss:$24 sps:$4 sm:$0xff]   ;;  %v12729_v2 = vld [vmem:[%s12723_s11 + $0x8] sm:$0xff] }
 0x289   : > { %v12709_v10 = vpop.f32.mrb[16].mxu1  ;;  %v12712_v16 = vadd.f32 %v4230_v9, %v12701_v55  ;;  %v4232_v19 = vpop.f32.mrb[17].mxu0  ;;  %v11365_v55 = vld [vmem:[#allocation4 + $0x8c8] ss:$48 sps:$4 sm:$0xff]  }
 0x28a   : > { %v12714_v20 = vpop.f32.mrb[17].mxu1  ;;  %v12717_v21 = vadd.f32 %v4232_v19, %v12703_v59  ;;  %v4234_v22 = vpop.f32.mrb[18].mxu0  ;;  %4535 = vmatpush1.bf16.msra.mxu0 %v11353_v3  ;;  %v11371_v59 = vld [vmem:[#allocation4 + $0x928] ss:$48 sps:$4 sm:$0xff]   ;;  %v11427_v3 = vld [vmem:[#allocation2 + $0x34] ss:$24 sps:$4 sm:$0xff]  }
 0x28b   : > { %v4275_v23 = vpop.f32.mrb[18].mxu1  ;;  %4576 = vmatpush1.bf16.msra.mxu1 %v11356_v4  ;;  %v4235_v24 = vpop.f32.mrb[19].mxu0  ;;  %4536 = vmatprep.subr.bf16.mxu0 %v11361_v5  ;;  %v11430_v4 = vld [vmem:[#allocation2 + $0x334] ss:$24 sps:$4 sm:$0xff]   ;;  %v12733_v5 = vcombine.high %v12726_v51, %v12726_v51  ;;  %v11425_v9 = vld [vmem:[#allocation2 + $0x30] ss:$24 sps:$4 sm:$0xff]  }
 0x28c   : > { %v4276_v58 = vpop.f32.mrb[19].mxu1  ;;  %4577 = vmatprep.subr.bf16.mxu1 %v11364_v8  ;;  %v12737_v8 = vcombine.high %v12729_v2, %v12729_v2  ;;  %v11436_v19 = vld [vmem:[#allocation2 + $0x364] ss:$24 sps:$4 sm:$0xff]   ;;  %v11431_v22 = vld [vmem:[#allocation2 + $0x60] ss:$24 sps:$4 sm:$0xff]  }
 0x28d   : > { %v11434_v23 = vld [vmem:[#allocation2 + $0x360] ss:$24 sps:$4 sm:$0xff]   ;;  %v11437_v24 = vld [vmem:[#allocation2 + $0x90] ss:$24 sps:$4 sm:$0xff]  }
 0x28e   : > { %4537 = vmatpush1.bf16.msra.mxu0 %v11359_v12  ;;  %v11428_v12 = vld [vmem:[#allocation2 + $0x330] ss:$24 sps:$4 sm:$0xff]  }
 0x28f   : > { %4578 = vmatpush1.bf16.msra.mxu1 %v11362_v13  ;;  %4538 = vmatprep.subr.bf16.mxu0 %v11367_v25  ;;  %v11433_v13 = vld [vmem:[#allocation2 + $0x64] ss:$24 sps:$4 sm:$0xff]   ;;  %v11440_v58 = vld [vmem:[#allocation2 + $0x390] ss:$24 sps:$4 sm:$0xff]  }
 0x290   : > { %4579 = vmatprep.subr.bf16.mxu1 %v11370_v26  ;;  %v11445_v25 = vld [vmem:[#allocation2 + $0xc4] ss:$24 sps:$4 sm:$0xff]  }
 0x291   : > { %v11448_v26 = vld [vmem:[#allocation2 + $0x3c4] ss:$24 sps:$4 sm:$0xff]  }
 0x292   : > { %4539 = vmatpush1.bf16.msra.mxu0 %v11365_v55  ;;  %v11443_v55 = vld [vmem:[#allocation2 + $0xc0] ss:$24 sps:$4 sm:$0xff]  }
 0x293   : > { %4580 = vmatpush1.bf16.msra.mxu1 %v11368_v27  ;;  %4540 = vmatprep.subr.bf16.mxu0 %v11373_v61  ;;  %v11446_v27 = vld [vmem:[#allocation2 + $0x3c0] ss:$24 sps:$4 sm:$0xff]   ;;  %v11451_v61 = vld [vmem:[#allocation2 + $0xf4] ss:$24 sps:$4 sm:$0xff]  }
 0x294   : > { %4581 = vmatprep.subr.bf16.mxu1 %v11376_v28  ;;  %v11454_v28 = vld [vmem:[#allocation2 + $0x3f4] ss:$24 sps:$4 sm:$0xff]  }
 0x296   : > { %4541 = vmatpush1.bf16.msra.mxu0 %v11371_v59  ;;  %v11449_v59 = vld [vmem:[#allocation2 + $0xf0] ss:$24 sps:$4 sm:$0xff]  }
 0x297   : > { %4582 = vmatpush1.bf16.msra.mxu1 %v11374_v29  ;;  %4542 = vmatprep.subr.bf16.mxu0 %v11379_v30  ;;  %v11452_v29 = vld [vmem:[#allocation2 + $0x3f0] ss:$24 sps:$4 sm:$0xff]   ;;  %v11457_v30 = vld [vmem:[#allocation2 + $0x124] ss:$24 sps:$4 sm:$0xff]  }
 0x298   : > { %4583 = vmatprep.subr.bf16.mxu1 %v11382_v31  ;;  %v11460_v31 = vld [vmem:[#allocation2 + $0x424] ss:$24 sps:$4 sm:$0xff]  }
 0x29a   : > { %4543 = vmatpush1.bf16.msra.mxu0 %v11377_v32 }
 0x29b   : > { %4584 = vmatpush1.bf16.msra.mxu1 %v11380_v33  ;;  %4544 = vmatprep.subr.bf16.mxu0 %v11385_v35  ;;  %v11455_v35 = vld [vmem:[#allocation2 + $0x120] ss:$24 sps:$4 sm:$0xff]  }
 0x29c   : > { %4585 = vmatprep.subr.bf16.mxu1 %v11388_v36  ;;  %v11458_v36 = vld [vmem:[#allocation2 + $0x420] ss:$24 sps:$4 sm:$0xff]  }
 0x29e   : > { %4545 = vmatpush1.bf16.msra.mxu0 %v11383_v37 }
 0x29f   : > { %4586 = vmatpush1.bf16.msra.mxu1 %v11386_v38  ;;  %4546 = vmatprep.subr.bf16.mxu0 %v11391_v39 }
 0x2a0   : > { %4587 = vmatprep.subr.bf16.mxu1 %v11394_v41 }
 0x2a2   : > { %4547 = vmatpush1.bf16.msra.mxu0 %v11389_v42 }
 0x2a3   : > { %4588 = vmatpush1.bf16.msra.mxu1 %v11392_v43  ;;  %4548 = vmatprep.subr.bf16.mxu0 %v11397_v47 }
 0x2a4   : > { %4589 = vmatprep.subr.bf16.mxu1 %v11400_v44 }
 0x2a6   : > { %4549 = vmatpush1.bf16.msra.mxu0 %v11395_v11 }
 0x2a7   : > { %4590 = vmatpush1.bf16.msra.mxu1 %v11398_v46  ;;  %4550 = vmatprep.subr.bf16.mxu0 %v11403_v17  ;;  %v11463_v46 = vld [vmem:[#allocation2 + $0x154] ss:$24 sps:$4 sm:$0xff]  }
 0x2a8   : > { %4591 = vmatprep.subr.bf16.mxu1 %v11406_v48  ;;  %v11466_v17 = vld [vmem:[#allocation2 + $0x454] ss:$24 sps:$4 sm:$0xff]  }
 0x2aa   : > { %4551 = vmatpush1.bf16.msra.mxu0 %v11401_v49  ;;  %v11464_v49 = vld [vmem:[#allocation2 + $0x450] ss:$24 sps:$4 sm:$0xff]  }
 0x2ab   : > { %4592 = vmatpush1.bf16.msra.mxu1 %v11404_v50  ;;  %4552 = vmatprep.subr.bf16.mxu0 %v11409_v52  ;;  %v11472_v50 = vld [vmem:[#allocation2 + $0x484] ss:$24 sps:$4 sm:$0xff]   ;;  %v11467_v52 = vld [vmem:[#allocation2 + $0x180] ss:$24 sps:$4 sm:$0xff]  }
 0x2ac   : > { %4593 = vmatprep.subr.bf16.mxu1 %v11412_v53  ;;  %v11470_v53 = vld [vmem:[#allocation2 + $0x480] ss:$24 sps:$4 sm:$0xff]  }
 0x2ae   : > { %4553 = vmatpush1.bf16.msra.mxu0 %v11407_v54  ;;  %v11475_v54 = vld [vmem:[#allocation2 + $0x1b4] ss:$24 sps:$4 sm:$0xff]  }
 0x2af   : > { %4594 = vmatpush1.bf16.msra.mxu1 %v11410_v56  ;;  %4554 = vmatprep.subr.bf16.mxu0 %v11415_v57  ;;  %v11478_v56 = vld [vmem:[#allocation2 + $0x4b4] ss:$24 sps:$4 sm:$0xff]   ;;  %v11473_v57 = vld [vmem:[#allocation2 + $0x1b0] ss:$24 sps:$4 sm:$0xff]  }
 0x2b0   : > { %4595 = vmatprep.subr.bf16.mxu1 %v11418_v6  ;;  %v11476_v6 = vld [vmem:[#allocation2 + $0x4b0] ss:$24 sps:$4 sm:$0xff]  }
 0x2b2   : > { %4555 = vmatpush1.bf16.msra.mxu0 %v11413_v60  ;;  %v11481_v60 = vld [vmem:[#allocation2 + $0x1e4] ss:$24 sps:$4 sm:$0xff]  }
 0x2b3   : > { %4596 = vmatpush1.bf16.msra.mxu1 %v11416_v62  ;;  %6355 = vmatprep.subr.bf16.mxu0 %v11421_v63  ;;  %v11484_v62 = vld [vmem:[#allocation2 + $0x4e4] ss:$24 sps:$4 sm:$0xff]   ;;  %v11479_v63 = vld [vmem:[#allocation2 + $0x1e0] ss:$24 sps:$4 sm:$0xff]  }
 0x2b4   : > { %6396 = vmatprep.subr.bf16.mxu1 %v11424_v0  ;;  %v11482_v0 = vld [vmem:[#allocation2 + $0x4e0] ss:$24 sps:$4 sm:$0xff]  }
 0x2b5   : > { %4557 = vmatmul.mubr.bf16.vlgmr.msra.gmra.mrb[32].mxu0 %v12640_v7  ;;  %v11439_v7 = vld [vmem:[#allocation2 + $0x94] ss:$24 sps:$4 sm:$0xff]  }
 0x2b6   : > { %4598 = vmatmul.mubr.bf16.vlgmr.msra.gmra.mrb[32].mxu1 %v12655_v14  ;;  %6356 = vmatpush1.bf16.msra.mxu0 %v11419_v34  ;;  %v11442_v14 = vld [vmem:[#allocation2 + $0x394] ss:$24 sps:$4 sm:$0xff]  }
 0x2b7   : > { %6397 = vmatpush1.bf16.msra.mxu1 %v11422_v1  ;;  %6357 = vmatprep.subr.bf16.mxu0 %v11427_v3  ;;  %v11487_v34 = vld [vmem:[#allocation2 + $0x214] ss:$24 sps:$4 sm:$0xff]   ;;  %v11485_v3 = vld [vmem:[#allocation2 + $0x210] ss:$24 sps:$4 sm:$0xff]  }
 0x2b8   : > { %6398 = vmatprep.subr.bf16.mxu1 %v11430_v4  ;;  %6387 = vmatprep.mubr.bf16.mxu0 %v12733_v5  ;;  %v11490_v1 = vld [vmem:[#allocation2 + $0x514] ss:$24 sps:$4 sm:$0xff]   ;;  %v11488_v4 = vld [vmem:[#allocation2 + $0x510] ss:$24 sps:$4 sm:$0xff]  }
 0x2b9   : > { %6428 = vmatprep.mubr.bf16.mxu1 %v12737_v8 }
 0x2ba   : > { %6358 = vmatpush1.bf16.msra.mxu0 %v11425_v9  ;;  %v11493_v9 = vld [vmem:[#allocation2 + $0x244] ss:$24 sps:$4 sm:$0xff]  }
 0x2bb   : > { %6399 = vmatpush1.bf16.msra.mxu1 %v11428_v12  ;;  %6359 = vmatprep.subr.bf16.mxu0 %v11433_v13  ;;  %v11496_v12 = vld [vmem:[#allocation2 + $0x544] ss:$24 sps:$4 sm:$0xff]   ;;  %v11491_v13 = vld [vmem:[#allocation2 + $0x240] ss:$24 sps:$4 sm:$0xff]  }
 0x2bc   : > { %6400 = vmatprep.subr.bf16.mxu1 %v11436_v19  ;;  %v11494_v19 = vld [vmem:[#allocation2 + $0x540] ss:$24 sps:$4 sm:$0xff]  }
 0x2be   : > { %6360 = vmatpush1.bf16.msra.mxu0 %v11431_v22  ;;  %v11499_v22 = vld [vmem:[#allocation2 + $0x274] ss:$24 sps:$4 sm:$0xff]  }
 0x2bf   : > { %6401 = vmatpush1.bf16.msra.mxu1 %v11434_v23  ;;  %6361 = vmatprep.subr.bf16.mxu0 %v11439_v7  ;;  %v11502_v23 = vld [vmem:[#allocation2 + $0x574] ss:$24 sps:$4 sm:$0xff]   ;;  %v11497_v7 = vld [vmem:[#allocation2 + $0x270] ss:$24 sps:$4 sm:$0xff]  }
 0x2c0   : > { %6402 = vmatprep.subr.bf16.mxu1 %v11442_v14  ;;  %v11500_v14 = vld [vmem:[#allocation2 + $0x570] ss:$24 sps:$4 sm:$0xff]  }
 0x2c2   : > { %6362 = vmatpush1.bf16.msra.mxu0 %v11437_v24  ;;  %v11505_v24 = vld [vmem:[#allocation2 + $0x2a4] ss:$24 sps:$4 sm:$0xff]  }
 0x2c3   : > { %6403 = vmatpush1.bf16.msra.mxu1 %v11440_v58  ;;  %6363 = vmatprep.subr.bf16.mxu0 %v11445_v25  ;;  %v11508_v58 = vld [vmem:[#allocation2 + $0x5a4] ss:$24 sps:$4 sm:$0xff]   ;;  %v11503_v25 = vld [vmem:[#allocation2 + $0x2a0] ss:$24 sps:$4 sm:$0xff]  }
 0x2c4   : > { %6404 = vmatprep.subr.bf16.mxu1 %v11448_v26  ;;  %v11506_v26 = vld [vmem:[#allocation2 + $0x5a0] ss:$24 sps:$4 sm:$0xff]  }
 0x2c6   : > { %6364 = vmatpush1.bf16.msra.mxu0 %v11443_v55  ;;  %v11511_v55 = vld [vmem:[#allocation2 + $0x2d4] ss:$24 sps:$4 sm:$0xff]  }
 0x2c7   : > { %6405 = vmatpush1.bf16.msra.mxu1 %v11446_v27  ;;  %6365 = vmatprep.subr.bf16.mxu0 %v11451_v61  ;;  %v11514_v27 = vld [vmem:[#allocation2 + $0x5d4] ss:$24 sps:$4 sm:$0xff]   ;;  %v11509_v61 = vld [vmem:[#allocation2 + $0x2d0] ss:$24 sps:$4 sm:$0xff]  }
 0x2c8   : > { %6406 = vmatprep.subr.bf16.mxu1 %v11454_v28  ;;  %v4312_v32 = vpop.f32.mrb[20].mxu0  ;;  %v11512_v28 = vld [vmem:[#allocation2 + $0x5d0] ss:$24 sps:$4 sm:$0xff]  }
 0x2c9   : > { %v4353_v33 = vpop.f32.mrb[20].mxu1  ;;  %v4313_v37 = vadd.f32 %v4312_v32, %v12709_v10  ;;  %v4314_v38 = vpop.f32.mrb[21].mxu0  ;;  %v11461_v10 = vld [vmem:[#allocation2 + $0x150] ss:$24 sps:$4 sm:$0xff]  }
 0x2ca   : > { %v4355_v39 = vpop.f32.mrb[21].mxu1  ;;  %v4315_v41 = vadd.f32 %v4314_v38, %v12714_v20  ;;  %v4316_v42 = vpop.f32.mrb[22].mxu0  ;;  %6366 = vmatpush1.bf16.msra.mxu0 %v11449_v59  ;;  %v11469_v20 = vld [vmem:[#allocation2 + $0x184] ss:$24 sps:$4 sm:$0xff]   ;;  %v11522_v32 = vld [vmem:[#allocation2 + $0x8] ss:$24 sps:$4 sm:$0xff]  }
 0x2cb   : > { %v4357_v43 = vpop.f32.mrb[22].mxu1  ;;  %6407 = vmatpush1.bf16.msra.mxu1 %v11452_v29  ;;  %v12745_v47 = vadd.f32 %v4353_v33, %v4313_v37  ;;  %v4317_v44 = vpop.f32.mrb[23].mxu0  ;;  %6367 = vmatprep.subr.bf16.mxu0 %v11457_v30  ;;  %v11521_v59 = vld [vmem:[#allocation2 + $0x604] ss:$24 sps:$4 sm:$0xff]   ;;  %v12750_v30 = vld [vmem:[%s12723_s11 + $0x10] sm:$0xff]  ;;  %v12754_v33 = vcombine.low %v12726_v51, %v12726_v51 }
 0x2cc   : > { %v4358_v11 = vpop.f32.mrb[23].mxu1  ;;  %6408 = vmatprep.subr.bf16.mxu1 %v11460_v31  ;;  %v12747_v48 = vadd.f32 %v4355_v39, %v4315_v41  ;;  %v11524_v29 = vld [vmem:[#allocation2 + $0xc] ss:$24 sps:$4 sm:$0xff]   ;;  %v11519_v31 = vld [vmem:[#allocation2 + $0x600] ss:$24 sps:$4 sm:$0xff]   ;;  %v12762_v38 = vcombine.high %v12750_v30, %v12750_v30 }
 0x2cd   : > { %v11530_v37 = vld [vmem:[#allocation2 + $0x3c] ss:$24 sps:$4 sm:$0xff]   ;;  %v11525_v51 = vld [vmem:[#allocation2 + $0x630] ss:$24 sps:$4 sm:$0xff]   ;;  %v11536_v41 = vld [vmem:[#allocation2 + $0x6c] ss:$24 sps:$4 sm:$0xff]  }
 0x2ce   : > { %6368 = vmatpush1.bf16.msra.mxu0 %v11455_v35  ;;  %v12758_v35 = vcombine.low %v12729_v2, %v12729_v2  ;;  %v11528_v39 = vld [vmem:[#allocation2 + $0x38] ss:$24 sps:$4 sm:$0xff]   ;;  %v11533_v2 = vld [vmem:[#allocation2 + $0x664] ss:$24 sps:$4 sm:$0xff]   ;;  %v11534_v43 = vld [vmem:[#allocation2 + $0x68] ss:$24 sps:$4 sm:$0xff]  }
 0x2cf   : > { %6409 = vmatpush1.bf16.msra.mxu1 %v11458_v36  ;;  %6369 = vmatprep.subr.bf16.mxu0 %v11463_v46  ;;  %v11527_v36 = vld [vmem:[#allocation2 + $0x634] ss:$24 sps:$4 sm:$0xff]   ;;  %v11531_v42 = vld [vmem:[#allocation2 + $0x660] ss:$24 sps:$4 sm:$0xff]   ;;  %v11537_v46 = vld [vmem:[#allocation2 + $0x690] ss:$24 sps:$4 sm:$0xff]  }
 0x2d0   : > { %6410 = vmatprep.subr.bf16.mxu1 %v11466_v17  ;;  %v11539_v44 = vld [vmem:[#allocation2 + $0x694] ss:$24 sps:$4 sm:$0xff]   ;;  %v11540_v17 = vld [vmem:[#allocation2 + $0x98] ss:$24 sps:$4 sm:$0xff]  }
 0x2d1   : > { %v11542_v11 = vld [vmem:[#allocation2 + $0x9c] ss:$24 sps:$4 sm:$0xff]  }
 0x2d2   : > { %6370 = vmatpush1.bf16.msra.mxu0 %v11461_v10  ;;  %v11545_v10 = vld [vmem:[#allocation2 + $0x6c4] ss:$24 sps:$4 sm:$0xff]  }
 0x2d3   : > { %6411 = vmatpush1.bf16.msra.mxu1 %v11464_v49  ;;  %6371 = vmatprep.subr.bf16.mxu0 %v11469_v20  ;;  %v11548_v49 = vld [vmem:[#allocation2 + $0xcc] ss:$24 sps:$4 sm:$0xff]   ;;  %v11543_v20 = vld [vmem:[#allocation2 + $0x6c0] ss:$24 sps:$4 sm:$0xff]  }
 0x2d4   : > { %6412 = vmatprep.subr.bf16.mxu1 %v11472_v50  ;;  %v11546_v50 = vld [vmem:[#allocation2 + $0xc8] ss:$24 sps:$4 sm:$0xff]  }
 0x2d6   : > { %6372 = vmatpush1.bf16.msra.mxu0 %v11467_v52  ;;  %v11551_v52 = vld [vmem:[#allocation2 + $0x6f4] ss:$24 sps:$4 sm:$0xff]  }
 0x2d7   : > { %6413 = vmatpush1.bf16.msra.mxu1 %v11470_v53  ;;  %6373 = vmatprep.subr.bf16.mxu0 %v11475_v54  ;;  %v11554_v53 = vld [vmem:[#allocation2 + $0xfc] ss:$24 sps:$4 sm:$0xff]   ;;  %v11549_v54 = vld [vmem:[#allocation2 + $0x6f0] ss:$24 sps:$4 sm:$0xff]  }
 0x2d8   : > { %6414 = vmatprep.subr.bf16.mxu1 %v11478_v56  ;;  %v11552_v56 = vld [vmem:[#allocation2 + $0xf8] ss:$24 sps:$4 sm:$0xff]  }
 0x2da   : > { %6374 = vmatpush1.bf16.msra.mxu0 %v11473_v57  ;;  %v11557_v57 = vld [vmem:[#allocation2 + $0x724] ss:$24 sps:$4 sm:$0xff]  }
 0x2db   : > { %6415 = vmatpush1.bf16.msra.mxu1 %v11476_v6  ;;  %6375 = vmatprep.subr.bf16.mxu0 %v11481_v60  ;;  %v11560_v6 = vld [vmem:[#allocation2 + $0x12c] ss:$24 sps:$4 sm:$0xff]  }
 0x2dc   : > { %6416 = vmatprep.subr.bf16.mxu1 %v11484_v62 }
 0x2de   : > { %6376 = vmatpush1.bf16.msra.mxu0 %v11479_v63 }
 0x2df   : > { %6417 = vmatpush1.bf16.msra.mxu1 %v11482_v0  ;;  %6377 = vmatprep.subr.bf16.mxu0 %v11487_v34 }
 0x2e0   : > { %6418 = vmatprep.subr.bf16.mxu1 %v11490_v1 }
 0x2e2   : > { %6378 = vmatpush1.bf16.msra.mxu0 %v11485_v3 }
 0x2e3   : > { %6419 = vmatpush1.bf16.msra.mxu1 %v11488_v4  ;;  %6379 = vmatprep.subr.bf16.mxu0 %v11493_v9  ;;  %v11555_v9 = vld [vmem:[#allocation2 + $0x720] ss:$24 sps:$4 sm:$0xff]  }
 0x2e4   : > { %6420 = vmatprep.subr.bf16.mxu1 %v11496_v12  ;;  %v11558_v12 = vld [vmem:[#allocation2 + $0x128] ss:$24 sps:$4 sm:$0xff]  }
 0x2e6   : > { %6380 = vmatpush1.bf16.msra.mxu0 %v11491_v13 }
 0x2e7   : > { %6421 = vmatpush1.bf16.msra.mxu1 %v11494_v19  ;;  %6381 = vmatprep.subr.bf16.mxu0 %v11499_v22  ;;  %v11563_v22 = vld [vmem:[#allocation2 + $0x754] ss:$24 sps:$4 sm:$0xff]  }
 0x2e8   : > { %6422 = vmatprep.subr.bf16.mxu1 %v11502_v23  ;;  %v11566_v23 = vld [vmem:[#allocation2 + $0x15c] ss:$24 sps:$4 sm:$0xff]  }
 0x2ea   : > { %6382 = vmatpush1.bf16.msra.mxu0 %v11497_v7  ;;  %v11561_v7 = vld [vmem:[#allocation2 + $0x750] ss:$24 sps:$4 sm:$0xff]  }
 0x2eb   : > { %6423 = vmatpush1.bf16.msra.mxu1 %v11500_v14  ;;  %6383 = vmatprep.subr.bf16.mxu0 %v11505_v24  ;;  %v11564_v14 = vld [vmem:[#allocation2 + $0x158] ss:$24 sps:$4 sm:$0xff]   ;;  %v11569_v24 = vld [vmem:[#allocation2 + $0x784] ss:$24 sps:$4 sm:$0xff]  }
 0x2ec   : > { %6424 = vmatprep.subr.bf16.mxu1 %v11508_v58  ;;  %v11572_v58 = vld [vmem:[#allocation2 + $0x18c] ss:$24 sps:$4 sm:$0xff]  }
 0x2ee   : > { %6384 = vmatpush1.bf16.msra.mxu0 %v11503_v25  ;;  %v11567_v25 = vld [vmem:[#allocation2 + $0x780] ss:$24 sps:$4 sm:$0xff]  }
 0x2ef   : > { %6425 = vmatpush1.bf16.msra.mxu1 %v11506_v26  ;;  %6385 = vmatprep.subr.bf16.mxu0 %v11511_v55  ;;  %v11570_v26 = vld [vmem:[#allocation2 + $0x188] ss:$24 sps:$4 sm:$0xff]   ;;  %v11575_v55 = vld [vmem:[#allocation2 + $0x7b4] ss:$24 sps:$4 sm:$0xff]  }
 0x2f0   : > { %6426 = vmatprep.subr.bf16.mxu1 %v11514_v27  ;;  %v11578_v27 = vld [vmem:[#allocation2 + $0x1bc] ss:$24 sps:$4 sm:$0xff]  }
 0x2f2   : > { %6386 = vmatpush1.bf16.msra.mxu0 %v11509_v61  ;;  %v11573_v61 = vld [vmem:[#allocation2 + $0x7b0] ss:$24 sps:$4 sm:$0xff]  }
 0x2f3   : > { %6427 = vmatpush1.bf16.msra.mxu1 %v11512_v28  ;;  %6437 = vmatprep.subr.bf16.mxu0 %v11521_v59  ;;  %v11576_v28 = vld [vmem:[#allocation2 + $0x1b8] ss:$24 sps:$4 sm:$0xff]   ;;  %v11581_v59 = vld [vmem:[#allocation2 + $0x7e4] ss:$24 sps:$4 sm:$0xff]  }
 0x2f4   : > { %6478 = vmatprep.subr.bf16.mxu1 %v11524_v29  ;;  %v11584_v29 = vld [vmem:[#allocation2 + $0x1ec] ss:$24 sps:$4 sm:$0xff]  }
 0x2f5   : > { %6388 = vmatmul.mubr.bf16.vlgmr.msra.gmra.mrb[36].mxu0 %v12754_v33 }
 0x2f6   : > { %6429 = vmatmul.mubr.bf16.vlgmr.msra.gmra.mrb[36].mxu1 %v12758_v35  ;;  %6438 = vmatpush1.bf16.msra.mxu0 %v11519_v31  ;;  %v11579_v31 = vld [vmem:[#allocation2 + $0x7e0] ss:$24 sps:$4 sm:$0xff]  }
 0x2f7   : > { %6479 = vmatpush1.bf16.msra.mxu1 %v11522_v32  ;;  %6439 = vmatprep.subr.bf16.mxu0 %v11527_v36  ;;  %v11582_v32 = vld [vmem:[#allocation2 + $0x1e8] ss:$24 sps:$4 sm:$0xff]   ;;  %v11587_v36 = vld [vmem:[#allocation2 + $0x814] ss:$24 sps:$4 sm:$0xff]  }
 0x2f8   : > { %6480 = vmatprep.subr.bf16.mxu1 %v11530_v37  ;;  %6469 = vmatprep.mubr.bf16.mxu0 %v12762_v38  ;;  %v11590_v37 = vld [vmem:[#allocation2 + $0x21c] ss:$24 sps:$4 sm:$0xff]  }
 0x2f9   : > { %6510 = vmatprep.mubr.bf16.mxu1 %v12733_v5 }
 0x2fa   : > { %6440 = vmatpush1.bf16.msra.mxu0 %v11525_v51  ;;  %v11585_v51 = vld [vmem:[#allocation2 + $0x810] ss:$24 sps:$4 sm:$0xff]  }
 0x2fb   : > { %6481 = vmatpush1.bf16.msra.mxu1 %v11528_v39  ;;  %6441 = vmatprep.subr.bf16.mxu0 %v11533_v2  ;;  %v11588_v39 = vld [vmem:[#allocation2 + $0x218] ss:$24 sps:$4 sm:$0xff]   ;;  %v11593_v2 = vld [vmem:[#allocation2 + $0x844] ss:$24 sps:$4 sm:$0xff]  }
 0x2fc   : > { %6482 = vmatprep.subr.bf16.mxu1 %v11536_v41  ;;  %v11596_v41 = vld [vmem:[#allocation2 + $0x24c] ss:$24 sps:$4 sm:$0xff]  }
 0x2fe   : > { %6442 = vmatpush1.bf16.msra.mxu0 %v11531_v42  ;;  %v11591_v42 = vld [vmem:[#allocation2 + $0x840] ss:$24 sps:$4 sm:$0xff]  }
 0x2ff   : > { %6483 = vmatpush1.bf16.msra.mxu1 %v11534_v43  ;;  %6443 = vmatprep.subr.bf16.mxu0 %v11539_v44  ;;  %v11594_v43 = vld [vmem:[#allocation2 + $0x248] ss:$24 sps:$4 sm:$0xff]   ;;  %v11599_v44 = vld [vmem:[#allocation2 + $0x874] ss:$24 sps:$4 sm:$0xff]  }
 0x300   : > { %6484 = vmatprep.subr.bf16.mxu1 %v11542_v11  ;;  %v11602_v11 = vld [vmem:[#allocation2 + $0x27c] ss:$24 sps:$4 sm:$0xff]  }
 0x302   : > { %6444 = vmatpush1.bf16.msra.mxu0 %v11537_v46  ;;  %v11597_v46 = vld [vmem:[#allocation2 + $0x870] ss:$24 sps:$4 sm:$0xff]  }
 0x303   : > { %6485 = vmatpush1.bf16.msra.mxu1 %v11540_v17  ;;  %6445 = vmatprep.subr.bf16.mxu0 %v11545_v10  ;;  %v11600_v17 = vld [vmem:[#allocation2 + $0x278] ss:$24 sps:$4 sm:$0xff]   ;;  %v11605_v10 = vld [vmem:[#allocation2 + $0x8a4] ss:$24 sps:$4 sm:$0xff]  }
 0x304   : > { %6486 = vmatprep.subr.bf16.mxu1 %v11548_v49  ;;  %v11608_v49 = vld [vmem:[#allocation2 + $0x2ac] ss:$24 sps:$4 sm:$0xff]  }
 0x306   : > { %6446 = vmatpush1.bf16.msra.mxu0 %v11543_v20  ;;  %v11603_v20 = vld [vmem:[#allocation2 + $0x8a0] ss:$24 sps:$4 sm:$0xff]  }
 0x307   : > { %6487 = vmatpush1.bf16.msra.mxu1 %v11546_v50  ;;  %6447 = vmatprep.subr.bf16.mxu0 %v11551_v52  ;;  %v11606_v50 = vld [vmem:[#allocation2 + $0x2a8] ss:$24 sps:$4 sm:$0xff]   ;;  %v11611_v52 = vld [vmem:[#allocation2 + $0x8d4] ss:$24 sps:$4 sm:$0xff]  }
 0x308   : > { %6488 = vmatprep.subr.bf16.mxu1 %v11554_v53  ;;  %v4394_v60 = vpop.f32.mrb[24].mxu0  ;;  %v11614_v53 = vld [vmem:[#allocation2 + $0x2dc] ss:$24 sps:$4 sm:$0xff]  }
 0x309   : > { %v4435_v62 = vpop.f32.mrb[24].mxu1  ;;  %v4396_v0 = vpop.f32.mrb[25].mxu0 }
 0x30a   : > { %v12768_v63 = vadd.f32 %v4435_v62, %v4394_v60  ;;  %v4437_v34 = vpop.f32.mrb[25].mxu1  ;;  %v4398_v3 = vpop.f32.mrb[26].mxu0  ;;  %6448 = vmatpush1.bf16.msra.mxu0 %v11549_v54  ;;  %v11609_v54 = vld [vmem:[#allocation2 + $0x8d0] ss:$24 sps:$4 sm:$0xff]   ;;  %v12774_v60 = vcombine.low %v12750_v30, %v12750_v30  ;;  %v11631_v30 = vld [vmem:[#allocation2 + $0x36c] ss:$24 sps:$4 sm:$0xff]  }
 0x30b   : > { %v12770_v1 = vadd.f32 %v4437_v34, %v4396_v0  ;;  %v4439_v4 = vpop.f32.mrb[26].mxu1  ;;  %6489 = vmatpush1.bf16.msra.mxu1 %v11552_v56  ;;  %v4399_v13 = vpop.f32.mrb[27].mxu0  ;;  %6449 = vmatprep.subr.bf16.mxu0 %v11557_v57  ;;  %v11612_v56 = vld [vmem:[#allocation2 + $0x2d8] ss:$24 sps:$4 sm:$0xff]   ;;  %v11619_v57 = vld [vmem:[#allocation2 + $0x30c] ss:$24 sps:$4 sm:$0xff]  }
 0x30c   : > { %v4440_v19 = vpop.f32.mrb[27].mxu1  ;;  %6490 = vmatprep.subr.bf16.mxu1 %v11560_v6  ;;  %v11622_v6 = vld [vmem:[#allocation2 + $0x60c] ss:$24 sps:$4 sm:$0xff]   ;;  %v11617_v62 = vld [vmem:[#allocation2 + $0x308] ss:$24 sps:$4 sm:$0xff]  }
 0x30d   : > { %v11620_v0 = vld [vmem:[#allocation2 + $0x608] ss:$24 sps:$4 sm:$0xff]   ;;  %v11625_v34 = vld [vmem:[#allocation2 + $0x33c] ss:$24 sps:$4 sm:$0xff]   ;;  %v11623_v4 = vld [vmem:[#allocation2 + $0x338] ss:$24 sps:$4 sm:$0xff]  }
 0x30e   : > { %6450 = vmatpush1.bf16.msra.mxu0 %v11555_v9  ;;  %v11628_v3 = vld [vmem:[#allocation2 + $0x63c] ss:$24 sps:$4 sm:$0xff]   ;;  %v11626_v9 = vld [vmem:[#allocation2 + $0x638] ss:$24 sps:$4 sm:$0xff]   ;;  %v11629_v13 = vld [vmem:[#allocation2 + $0x368] ss:$24 sps:$4 sm:$0xff]  }
 0x30f   : > { %6491 = vmatpush1.bf16.msra.mxu1 %v11558_v12  ;;  %6451 = vmatprep.subr.bf16.mxu0 %v11563_v22  ;;  %v11634_v12 = vld [vmem:[#allocation2 + $0x66c] ss:$24 sps:$4 sm:$0xff]   ;;  %v11632_v19 = vld [vmem:[#allocation2 + $0x668] ss:$24 sps:$4 sm:$0xff]   ;;  %v11637_v22 = vld [vmem:[#allocation2 + $0x39c] ss:$24 sps:$4 sm:$0xff]  }
 0x310   : > { %6492 = vmatprep.subr.bf16.mxu1 %v11566_v23  ;;  %v11640_v23 = vld [vmem:[#allocation2 + $0x69c] ss:$24 sps:$4 sm:$0xff]  }
 0x312   : > { %6452 = vmatpush1.bf16.msra.mxu0 %v11561_v7  ;;  %v11635_v7 = vld [vmem:[#allocation2 + $0x398] ss:$24 sps:$4 sm:$0xff]  }
 0x313   : > { %6493 = vmatpush1.bf16.msra.mxu1 %v11564_v14  ;;  %6453 = vmatprep.subr.bf16.mxu0 %v11569_v24  ;;  %v11638_v14 = vld [vmem:[#allocation2 + $0x698] ss:$24 sps:$4 sm:$0xff]   ;;  %v11643_v24 = vld [vmem:[#allocation2 + $0x3cc] ss:$24 sps:$4 sm:$0xff]  }
 0x314   : > { %6494 = vmatprep.subr.bf16.mxu1 %v11572_v58  ;;  %v11646_v58 = vld [vmem:[#allocation2 + $0x6cc] ss:$24 sps:$4 sm:$0xff]  }
 0x316   : > { %6454 = vmatpush1.bf16.msra.mxu0 %v11567_v25  ;;  %v11641_v25 = vld [vmem:[#allocation2 + $0x3c8] ss:$24 sps:$4 sm:$0xff]  }
 0x317   : > { %6495 = vmatpush1.bf16.msra.mxu1 %v11570_v26  ;;  %6455 = vmatprep.subr.bf16.mxu0 %v11575_v55  ;;  %v11644_v26 = vld [vmem:[#allocation2 + $0x6c8] ss:$24 sps:$4 sm:$0xff]   ;;  %v11649_v55 = vld [vmem:[#allocation2 + $0x3fc] ss:$24 sps:$4 sm:$0xff]  }
 0x318   : > { %6496 = vmatprep.subr.bf16.mxu1 %v11578_v27  ;;  %v11652_v27 = vld [vmem:[#allocation2 + $0x6fc] ss:$24 sps:$4 sm:$0xff]  }
 0x31a   : > { %6456 = vmatpush1.bf16.msra.mxu0 %v11573_v61  ;;  %v11647_v61 = vld [vmem:[#allocation2 + $0x3f8] ss:$24 sps:$4 sm:$0xff]  }
 0x31b   : > { %6497 = vmatpush1.bf16.msra.mxu1 %v11576_v28  ;;  %6457 = vmatprep.subr.bf16.mxu0 %v11581_v59  ;;  %v11650_v28 = vld [vmem:[#allocation2 + $0x6f8] ss:$24 sps:$4 sm:$0xff]   ;;  %v11655_v59 = vld [vmem:[#allocation2 + $0x42c] ss:$24 sps:$4 sm:$0xff]  }
 0x31c   : > { %6498 = vmatprep.subr.bf16.mxu1 %v11584_v29  ;;  %v11658_v29 = vld [vmem:[#allocation2 + $0x72c] ss:$24 sps:$4 sm:$0xff]  }
 0x31e   : > { %6458 = vmatpush1.bf16.msra.mxu0 %v11579_v31 }
 0x31f   : > { %6499 = vmatpush1.bf16.msra.mxu1 %v11582_v32  ;;  %6459 = vmatprep.subr.bf16.mxu0 %v11587_v36 }
 0x320   : > { %6500 = vmatprep.subr.bf16.mxu1 %v11590_v37 }
 0x322   : > { %6460 = vmatpush1.bf16.msra.mxu0 %v11585_v51 }
 0x323   : > { %6501 = vmatpush1.bf16.msra.mxu1 %v11588_v39  ;;  %6461 = vmatprep.subr.bf16.mxu0 %v11593_v2 }
 0x324   : > { %6502 = vmatprep.subr.bf16.mxu1 %v11596_v41 }
 0x326   : > { %6462 = vmatpush1.bf16.msra.mxu0 %v11591_v42  ;;  %v11653_v42 = vld [vmem:[#allocation2 + $0x428] ss:$24 sps:$4 sm:$0xff]  }
 0x327   : > { %6503 = vmatpush1.bf16.msra.mxu1 %v11594_v43  ;;  %6463 = vmatprep.subr.bf16.mxu0 %v11599_v44  ;;  %v11656_v43 = vld [vmem:[#allocation2 + $0x728] ss:$24 sps:$4 sm:$0xff]  }
 0x328   : > { %6504 = vmatprep.subr.bf16.mxu1 %v11602_v11 }
 0x32a   : > { %6464 = vmatpush1.bf16.msra.mxu0 %v11597_v46  ;;  %v11661_v46 = vld [vmem:[#allocation2 + $0x45c] ss:$24 sps:$4 sm:$0xff]  }
 0x32b   : > { %6505 = vmatpush1.bf16.msra.mxu1 %v11600_v17  ;;  %6465 = vmatprep.subr.bf16.mxu0 %v11605_v10  ;;  %v11664_v17 = vld [vmem:[#allocation2 + $0x75c] ss:$24 sps:$4 sm:$0xff]   ;;  %v11662_v10 = vld [vmem:[#allocation2 + $0x758] ss:$24 sps:$4 sm:$0xff]  }
 0x32c   : > { %6506 = vmatprep.subr.bf16.mxu1 %v11608_v49  ;;  %v11670_v49 = vld [vmem:[#allocation2 + $0x78c] ss:$24 sps:$4 sm:$0xff]  }
 0x32e   : > { %6466 = vmatpush1.bf16.msra.mxu0 %v11603_v20  ;;  %v11665_v20 = vld [vmem:[#allocation2 + $0x488] ss:$24 sps:$4 sm:$0xff]  }
 0x32f   : > { %6507 = vmatpush1.bf16.msra.mxu1 %v11606_v50  ;;  %6467 = vmatprep.subr.bf16.mxu0 %v11611_v52  ;;  %v11668_v50 = vld [vmem:[#allocation2 + $0x788] ss:$24 sps:$4 sm:$0xff]   ;;  %v11673_v52 = vld [vmem:[#allocation2 + $0x4bc] ss:$24 sps:$4 sm:$0xff]  }
 0x330   : > { %6508 = vmatprep.subr.bf16.mxu1 %v11614_v53  ;;  %v11676_v53 = vld [vmem:[#allocation2 + $0x7bc] ss:$24 sps:$4 sm:$0xff]  }
 0x332   : > { %6468 = vmatpush1.bf16.msra.mxu0 %v11609_v54  ;;  %v11671_v54 = vld [vmem:[#allocation2 + $0x4b8] ss:$24 sps:$4 sm:$0xff]  }
 0x333   : > { %6509 = vmatpush1.bf16.msra.mxu1 %v11612_v56  ;;  %6519 = vmatprep.subr.bf16.mxu0 %v11619_v57  ;;  %v11674_v56 = vld [vmem:[#allocation2 + $0x7b8] ss:$24 sps:$4 sm:$0xff]   ;;  %v11679_v57 = vld [vmem:[#allocation2 + $0x4ec] ss:$24 sps:$4 sm:$0xff]  }
 0x334   : > { %6560 = vmatprep.subr.bf16.mxu1 %v11622_v6  ;;  %v11682_v6 = vld [vmem:[#allocation2 + $0x7ec] ss:$24 sps:$4 sm:$0xff]  }
 0x335   : > { %6470 = vmatmul.mubr.bf16.vlgmr.msra.gmra.mrb[40].mxu0 %v12774_v60 }
 0x336   : > { %6511 = vmatmul.mubr.bf16.vlgmr.msra.gmra.mrb[40].mxu1 %v12754_v33  ;;  %6520 = vmatpush1.bf16.msra.mxu0 %v11617_v62  ;;  %v11677_v62 = vld [vmem:[#allocation2 + $0x4e8] ss:$24 sps:$4 sm:$0xff]  }
 0x337   : > { %6561 = vmatpush1.bf16.msra.mxu1 %v11620_v0  ;;  %6521 = vmatprep.subr.bf16.mxu0 %v11625_v34  ;;  %v11680_v0 = vld [vmem:[#allocation2 + $0x7e8] ss:$24 sps:$4 sm:$0xff]   ;;  %v11685_v34 = vld [vmem:[#allocation2 + $0x51c] ss:$24 sps:$4 sm:$0xff]  }
 0x338   : > { %6562 = vmatprep.subr.bf16.mxu1 %v11628_v3  ;;  %6551 = vmatprep.mubr.bf16.mxu0 %v12737_v8  ;;  %v11688_v3 = vld [vmem:[#allocation2 + $0x81c] ss:$24 sps:$4 sm:$0xff]  }
 0x339   : > { %6592 = vmatprep.mubr.bf16.mxu1 %v12762_v38 }
 0x33a   : > { %6522 = vmatpush1.bf16.msra.mxu0 %v11623_v4  ;;  %v11683_v4 = vld [vmem:[#allocation2 + $0x518] ss:$24 sps:$4 sm:$0xff]  }
 0x33b   : > { %6563 = vmatpush1.bf16.msra.mxu1 %v11626_v9  ;;  %6523 = vmatprep.subr.bf16.mxu0 %v11631_v30  ;;  %v11686_v9 = vld [vmem:[#allocation2 + $0x818] ss:$24 sps:$4 sm:$0xff]   ;;  %v11691_v30 = vld [vmem:[#allocation2 + $0x54c] ss:$24 sps:$4 sm:$0xff]  }
 0x33c   : > { %6564 = vmatprep.subr.bf16.mxu1 %v11634_v12  ;;  %v11694_v12 = vld [vmem:[#allocation2 + $0x84c] ss:$24 sps:$4 sm:$0xff]  }
 0x33e   : > { %6524 = vmatpush1.bf16.msra.mxu0 %v11629_v13  ;;  %v11689_v13 = vld [vmem:[#allocation2 + $0x548] ss:$24 sps:$4 sm:$0xff]  }
 0x33f   : > { %6565 = vmatpush1.bf16.msra.mxu1 %v11632_v19  ;;  %6525 = vmatprep.subr.bf16.mxu0 %v11637_v22  ;;  %v11692_v19 = vld [vmem:[#allocation2 + $0x848] ss:$24 sps:$4 sm:$0xff]   ;;  %v11697_v22 = vld [vmem:[#allocation2 + $0x57c] ss:$24 sps:$4 sm:$0xff]  }
 0x340   : > { %6566 = vmatprep.subr.bf16.mxu1 %v11640_v23  ;;  %v11700_v23 = vld [vmem:[#allocation2 + $0x87c] ss:$24 sps:$4 sm:$0xff]  }
 0x342   : > { %6526 = vmatpush1.bf16.msra.mxu0 %v11635_v7  ;;  %v11695_v7 = vld [vmem:[#allocation2 + $0x578] ss:$24 sps:$4 sm:$0xff]  }
 0x343   : > { %6567 = vmatpush1.bf16.msra.mxu1 %v11638_v14  ;;  %6527 = vmatprep.subr.bf16.mxu0 %v11643_v24  ;;  %v11698_v14 = vld [vmem:[#allocation2 + $0x878] ss:$24 sps:$4 sm:$0xff]   ;;  %v11703_v24 = vld [vmem:[#allocation2 + $0x5ac] ss:$24 sps:$4 sm:$0xff]  }
 0x344   : > { %6568 = vmatprep.subr.bf16.mxu1 %v11646_v58  ;;  %v11706_v58 = vld [vmem:[#allocation2 + $0x8ac] ss:$24 sps:$4 sm:$0xff]  }
 0x346   : > { %6528 = vmatpush1.bf16.msra.mxu0 %v11641_v25  ;;  %v11701_v25 = vld [vmem:[#allocation2 + $0x5a8] ss:$24 sps:$4 sm:$0xff]  }
 0x347   : > { %6569 = vmatpush1.bf16.msra.mxu1 %v11644_v26  ;;  %6529 = vmatprep.subr.bf16.mxu0 %v11649_v55  ;;  %v11704_v26 = vld [vmem:[#allocation2 + $0x8a8] ss:$24 sps:$4 sm:$0xff]   ;;  %v11709_v55 = vld [vmem:[#allocation2 + $0x5dc] ss:$24 sps:$4 sm:$0xff]  }
 0x348   : > { %6570 = vmatprep.subr.bf16.mxu1 %v11652_v27  ;;  %v4476_v31 = vpop.f32.mrb[28].mxu0  ;;  %v11712_v27 = vld [vmem:[#allocation2 + $0x8dc] ss:$24 sps:$4 sm:$0xff]  }
 0x349   : > { %v12780_v32 = vpop.f32.mrb[28].mxu1  ;;  %v12783_v36 = vadd.f32 %v4476_v31, %v12768_v63  ;;  %v4478_v37 = vpop.f32.mrb[29].mxu0  ;;  %v11659_v63 = vld [vmem:[#allocation2 + $0x458] ss:$24 sps:$4 sm:$0xff]  }
 0x34a   : > { %v12785_v51 = vpop.f32.mrb[29].mxu1  ;;  %v12788_v39 = vadd.f32 %v4478_v37, %v12770_v1  ;;  %v4480_v2 = vpop.f32.mrb[30].mxu0  ;;  %6530 = vmatpush1.bf16.msra.mxu0 %v11647_v61  ;;  %v11667_v1 = vld [vmem:[#allocation2 + $0x48c] ss:$24 sps:$4 sm:$0xff]   ;;  %v11707_v61 = vld [vmem:[#allocation2 + $0x5d8] ss:$24 sps:$4 sm:$0xff]  }
 0x34b   : > { %v4521_v41 = vpop.f32.mrb[30].mxu1  ;;  %6571 = vmatpush1.bf16.msra.mxu1 %v11650_v28  ;;  %v4481_v44 = vpop.f32.mrb[31].mxu0  ;;  %6531 = vmatprep.subr.bf16.mxu0 %v11655_v59  ;;  %v11710_v28 = vld [vmem:[#allocation2 + $0x8d8] ss:$24 sps:$4 sm:$0xff]   ;;  %v11715_v59 = vld [vmem:[#allocation2 + $0x14] ss:$24 sps:$4 sm:$0xff]  }
 0x34c   : > { %v4522_v11 = vpop.f32.mrb[31].mxu1  ;;  %6572 = vmatprep.subr.bf16.mxu1 %v11658_v29  ;;  %v11718_v29 = vld [vmem:[#allocation2 + $0x314] ss:$24 sps:$4 sm:$0xff]   ;;  %v11713_v31 = vld [vmem:[#allocation2 + $0x10] ss:$24 sps:$4 sm:$0xff]  }
 0x34d   : > { %v11716_v37 = vld [vmem:[#allocation2 + $0x310] ss:$24 sps:$4 sm:$0xff]   ;;  %v11721_v2 = vld [vmem:[#allocation2 + $0x44] ss:$24 sps:$4 sm:$0xff]   ;;  %v11727_v44 = vld [vmem:[#allocation2 + $0x74] ss:$24 sps:$4 sm:$0xff]  }
 0x34e   : > { %6532 = vmatpush1.bf16.msra.mxu0 %v11653_v42  ;;  %v11724_v41 = vld [vmem:[#allocation2 + $0x344] ss:$24 sps:$4 sm:$0xff]   ;;  %v11719_v42 = vld [vmem:[#allocation2 + $0x40] ss:$24 sps:$4 sm:$0xff]   ;;  %v11730_v11 = vld [vmem:[#allocation2 + $0x374] ss:$24 sps:$4 sm:$0xff]  }
 0x34f   : > { %6573 = vmatpush1.bf16.msra.mxu1 %v11656_v43  ;;  %6533 = vmatprep.subr.bf16.mxu0 %v11661_v46  ;;  %v11722_v43 = vld [vmem:[#allocation2 + $0x340] ss:$24 sps:$4 sm:$0xff]   ;;  %v11725_v46 = vld [vmem:[#allocation2 + $0x70] ss:$24 sps:$4 sm:$0xff]  }
 0x350   : > { %6574 = vmatprep.subr.bf16.mxu1 %v11664_v17  ;;  %v11728_v17 = vld [vmem:[#allocation2 + $0x370] ss:$24 sps:$4 sm:$0xff]  }
 0x352   : > { %6534 = vmatpush1.bf16.msra.mxu0 %v11659_v63  ;;  %v11733_v63 = vld [vmem:[#allocation2 + $0xa4] ss:$24 sps:$4 sm:$0xff]  }
 0x353   : > { %6575 = vmatpush1.bf16.msra.mxu1 %v11662_v10  ;;  %6535 = vmatprep.subr.bf16.mxu0 %v11667_v1  ;;  %v11736_v10 = vld [vmem:[#allocation2 + $0x3a4] ss:$24 sps:$4 sm:$0xff]   ;;  %v11731_v1 = vld [vmem:[#allocation2 + $0xa0] ss:$24 sps:$4 sm:$0xff]  }
 0x354   : > { %6576 = vmatprep.subr.bf16.mxu1 %v11670_v49  ;;  %v11734_v49 = vld [vmem:[#allocation2 + $0x3a0] ss:$24 sps:$4 sm:$0xff]  }
 0x356   : > { %6536 = vmatpush1.bf16.msra.mxu0 %v11665_v20  ;;  %v11739_v20 = vld [vmem:[#allocation2 + $0xd4] ss:$24 sps:$4 sm:$0xff]  }
 0x357   : > { %6577 = vmatpush1.bf16.msra.mxu1 %v11668_v50  ;;  %6537 = vmatprep.subr.bf16.mxu0 %v11673_v52  ;;  %v11742_v50 = vld [vmem:[#allocation2 + $0x3d4] ss:$24 sps:$4 sm:$0xff]   ;;  %v11745_v52 = vld [vmem:[#allocation2 + $0x104] ss:$24 sps:$4 sm:$0xff]  }
 0x358   : > { %6578 = vmatprep.subr.bf16.mxu1 %v11676_v53  ;;  %v11748_v53 = vld [vmem:[#allocation2 + $0x404] ss:$24 sps:$4 sm:$0xff]  }
 0x35a   : > { %6538 = vmatpush1.bf16.msra.mxu0 %v11671_v54  ;;  %v11743_v54 = vld [vmem:[#allocation2 + $0x100] ss:$24 sps:$4 sm:$0xff]  }
 0x35b   : > { %6579 = vmatpush1.bf16.msra.mxu1 %v11674_v56  ;;  %6539 = vmatprep.subr.bf16.mxu0 %v11679_v57  ;;  %v11746_v56 = vld [vmem:[#allocation2 + $0x400] ss:$24 sps:$4 sm:$0xff]   ;;  %v11751_v57 = vld [vmem:[#allocation2 + $0x134] ss:$24 sps:$4 sm:$0xff]  }
 0x35c   : > { %6580 = vmatprep.subr.bf16.mxu1 %v11682_v6  ;;  %v11754_v6 = vld [vmem:[#allocation2 + $0x434] ss:$24 sps:$4 sm:$0xff]  }
 0x35e   : > { %6540 = vmatpush1.bf16.msra.mxu0 %v11677_v62 }
 0x35f   : > { %6581 = vmatpush1.bf16.msra.mxu1 %v11680_v0  ;;  %6541 = vmatprep.subr.bf16.mxu0 %v11685_v34 }
 0x360   : > { %6582 = vmatprep.subr.bf16.mxu1 %v11688_v3 }
 0x362   : > { %6542 = vmatpush1.bf16.msra.mxu0 %v11683_v4 }
 0x363   : > { %6583 = vmatpush1.bf16.msra.mxu1 %v11686_v9  ;;  %6543 = vmatprep.subr.bf16.mxu0 %v11691_v30 }
 0x364   : > { %6584 = vmatprep.subr.bf16.mxu1 %v11694_v12 }
 0x366   : > { %6544 = vmatpush1.bf16.msra.mxu0 %v11689_v13  ;;  %v11749_v13 = vld [vmem:[#allocation2 + $0x130] ss:$24 sps:$4 sm:$0xff]  }
 0x367   : > { %6585 = vmatpush1.bf16.msra.mxu1 %v11692_v19  ;;  %6545 = vmatprep.subr.bf16.mxu0 %v11697_v22  ;;  %v11752_v19 = vld [vmem:[#allocation2 + $0x430] ss:$24 sps:$4 sm:$0xff]  }
 0x368   : > { %6586 = vmatprep.subr.bf16.mxu1 %v11700_v23 }
 0x36a   : > { %6546 = vmatpush1.bf16.msra.mxu0 %v11695_v7 }
 0x36b   : > { %6587 = vmatpush1.bf16.msra.mxu1 %v11698_v14  ;;  %6547 = vmatprep.subr.bf16.mxu0 %v11703_v24  ;;  %v11757_v14 = vld [vmem:[#allocation2 + $0x164] ss:$24 sps:$4 sm:$0xff]  }
 0x36c   : > { %6588 = vmatprep.subr.bf16.mxu1 %v11706_v58  ;;  %v11760_v24 = vld [vmem:[#allocation2 + $0x464] ss:$24 sps:$4 sm:$0xff]  }
 0x36e   : > { %6548 = vmatpush1.bf16.msra.mxu0 %v11701_v25  ;;  %v11763_v25 = vld [vmem:[#allocation2 + $0x194] ss:$24 sps:$4 sm:$0xff]  }
 0x36f   : > { %6589 = vmatpush1.bf16.msra.mxu1 %v11704_v26  ;;  %6549 = vmatprep.subr.bf16.mxu0 %v11709_v55  ;;  %v11766_v26 = vld [vmem:[#allocation2 + $0x494] ss:$24 sps:$4 sm:$0xff]   ;;  %v11761_v55 = vld [vmem:[#allocation2 + $0x190] ss:$24 sps:$4 sm:$0xff]  }
 0x370   : > { %6590 = vmatprep.subr.bf16.mxu1 %v11712_v27  ;;  %v11764_v27 = vld [vmem:[#allocation2 + $0x490] ss:$24 sps:$4 sm:$0xff]  }
 0x372   : > { %6550 = vmatpush1.bf16.msra.mxu0 %v11707_v61  ;;  %v11769_v61 = vld [vmem:[#allocation2 + $0x1c4] ss:$24 sps:$4 sm:$0xff]  }
 0x373   : > { %6591 = vmatpush1.bf16.msra.mxu1 %v11710_v28  ;;  %6601 = vmatprep.subr.bf16.mxu0 %v11715_v59  ;;  %v11772_v28 = vld [vmem:[#allocation2 + $0x4c4] ss:$24 sps:$4 sm:$0xff]   ;;  %v11767_v59 = vld [vmem:[#allocation2 + $0x1c0] ss:$24 sps:$4 sm:$0xff]  }
 0x374   : > { %6642 = vmatprep.subr.bf16.mxu1 %v11718_v29  ;;  %v11770_v29 = vld [vmem:[#allocation2 + $0x4c0] ss:$24 sps:$4 sm:$0xff]  }
 0x375   : > { %6552 = vmatmul.mubr.bf16.vlgmr.msra.gmra.mrb[44].mxu0 %v12758_v35 }
 0x376   : > { %6593 = vmatmul.mubr.bf16.vlgmr.msra.gmra.mrb[44].mxu1 %v12774_v60  ;;  %6602 = vmatpush1.bf16.msra.mxu0 %v11713_v31  ;;  %v11775_v31 = vld [vmem:[#allocation2 + $0x1f4] ss:$24 sps:$4 sm:$0xff]  }
 0x377   : > { %6643 = vmatpush1.bf16.msra.mxu1 %v11716_v37  ;;  %6603 = vmatprep.subr.bf16.mxu0 %v11721_v2  ;;  %v11778_v37 = vld [vmem:[#allocation2 + $0x4f4] ss:$24 sps:$4 sm:$0xff]   ;;  %v11773_v2 = vld [vmem:[#allocation2 + $0x1f0] ss:$24 sps:$4 sm:$0xff]  }
 0x378   : > { %6644 = vmatprep.subr.bf16.mxu1 %v11724_v41  ;;  %6633 = vmatprep.mubr.bf16.mxu0 %v12733_v5  ;;  %v11737_v5 = vld [vmem:[#allocation2 + $0xd0] ss:$24 sps:$4 sm:$0xff]  }
 0x379   : > { %6674 = vmatprep.mubr.bf16.mxu1 %v12737_v8  ;;  %v11740_v8 = vld [vmem:[#allocation2 + $0x3d0] ss:$24 sps:$4 sm:$0xff]  }
 0x37a   : > { %6604 = vmatpush1.bf16.msra.mxu0 %v11719_v42  ;;  %v11776_v41 = vld [vmem:[#allocation2 + $0x4f0] ss:$24 sps:$4 sm:$0xff]   ;;  %v11781_v42 = vld [vmem:[#allocation2 + $0x224] ss:$24 sps:$4 sm:$0xff]  }
 0x37b   : > { %6645 = vmatpush1.bf16.msra.mxu1 %v11722_v43  ;;  %6605 = vmatprep.subr.bf16.mxu0 %v11727_v44  ;;  %v11784_v43 = vld [vmem:[#allocation2 + $0x524] ss:$24 sps:$4 sm:$0xff]   ;;  %v11779_v44 = vld [vmem:[#allocation2 + $0x220] ss:$24 sps:$4 sm:$0xff]  }
 0x37c   : > { %6646 = vmatprep.subr.bf16.mxu1 %v11730_v11  ;;  %v11782_v11 = vld [vmem:[#allocation2 + $0x520] ss:$24 sps:$4 sm:$0xff]  }
 0x37e   : > { %6606 = vmatpush1.bf16.msra.mxu0 %v11725_v46  ;;  %v11787_v46 = vld [vmem:[#allocation2 + $0x254] ss:$24 sps:$4 sm:$0xff]  }
 0x37f   : > { %6647 = vmatpush1.bf16.msra.mxu1 %v11728_v17  ;;  %6607 = vmatprep.subr.bf16.mxu0 %v11733_v63  ;;  %v11790_v17 = vld [vmem:[#allocation2 + $0x554] ss:$24 sps:$4 sm:$0xff]   ;;  %v11785_v63 = vld [vmem:[#allocation2 + $0x250] ss:$24 sps:$4 sm:$0xff]  }
 0x380   : > { %6648 = vmatprep.subr.bf16.mxu1 %v11736_v10  ;;  %v11788_v10 = vld [vmem:[#allocation2 + $0x550] ss:$24 sps:$4 sm:$0xff]  }
 0x382   : > { %6608 = vmatpush1.bf16.msra.mxu0 %v11731_v1  ;;  %v11793_v1 = vld [vmem:[#allocation2 + $0x284] ss:$24 sps:$4 sm:$0xff]  }
 0x383   : > { %6649 = vmatpush1.bf16.msra.mxu1 %v11734_v49  ;;  %6609 = vmatprep.subr.bf16.mxu0 %v11739_v20  ;;  %v11796_v49 = vld [vmem:[#allocation2 + $0x584] ss:$24 sps:$4 sm:$0xff]   ;;  %v11791_v20 = vld [vmem:[#allocation2 + $0x280] ss:$24 sps:$4 sm:$0xff]  }
 0x384   : > { %6650 = vmatprep.subr.bf16.mxu1 %v11742_v50  ;;  %v11794_v50 = vld [vmem:[#allocation2 + $0x580] ss:$24 sps:$4 sm:$0xff]  }
 0x386   : > { %6610 = vmatpush1.bf16.msra.mxu0 %v11737_v5  ;;  %v11799_v5 = vld [vmem:[#allocation2 + $0x2b4] ss:$24 sps:$4 sm:$0xff]  }
 0x387   : > { %6651 = vmatpush1.bf16.msra.mxu1 %v11740_v8  ;;  %6611 = vmatprep.subr.bf16.mxu0 %v11745_v52  ;;  %v11802_v8 = vld [vmem:[#allocation2 + $0x5b4] ss:$24 sps:$4 sm:$0xff]   ;;  %v11797_v52 = vld [vmem:[#allocation2 + $0x2b0] ss:$24 sps:$4 sm:$0xff]  }
 0x388   : > { %6652 = vmatprep.subr.bf16.mxu1 %v11748_v53  ;;  %v4558_v62 = vpop.f32.mrb[32].mxu0  ;;  %v11800_v53 = vld [vmem:[#allocation2 + $0x5b0] ss:$24 sps:$4 sm:$0xff]  }
 0x389   : > { %v4599_v0 = vpop.f32.mrb[32].mxu1  ;;  %v4559_v34 = vadd.f32 %v4558_v62, %v12780_v32  ;;  %v4560_v3 = vpop.f32.mrb[33].mxu0  ;;  %v11755_v32 = vld [vmem:[#allocation2 + $0x160] ss:$24 sps:$4 sm:$0xff]   ;;  %v11811_v62 = vld [vmem:[#allocation2 + $0x614] ss:$24 sps:$4 sm:$0xff]  }
 0x38a   : > { %v4601_v4 = vpop.f32.mrb[33].mxu1  ;;  %v4561_v9 = vadd.f32 %v4560_v3, %v12785_v51  ;;  %v4562_v30 = vpop.f32.mrb[34].mxu0  ;;  %6612 = vmatpush1.bf16.msra.mxu0 %v11743_v54  ;;  %v11758_v51 = vld [vmem:[#allocation2 + $0x460] ss:$24 sps:$4 sm:$0xff]   ;;  %v11805_v54 = vld [vmem:[#allocation2 + $0x2e4] ss:$24 sps:$4 sm:$0xff]  }
 0x38b   : > { %v4603_v12 = vpop.f32.mrb[34].mxu1  ;;  %6653 = vmatpush1.bf16.msra.mxu1 %v11746_v56  ;;  %v12796_v22 = vadd.f32 %v4599_v0, %v4559_v34  ;;  %v4563_v23 = vpop.f32.mrb[35].mxu0  ;;  %6613 = vmatprep.subr.bf16.mxu0 %v11751_v57  ;;  %v11808_v56 = vld [vmem:[#allocation2 + $0x5e4] ss:$24 sps:$4 sm:$0xff]   ;;  %v11803_v57 = vld [vmem:[#allocation2 + $0x2e0] ss:$24 sps:$4 sm:$0xff]  }
 0x38c   : > { %v4604_v7 = vpop.f32.mrb[35].mxu1  ;;  %6654 = vmatprep.subr.bf16.mxu1 %v11754_v6  ;;  %v12798_v58 = vadd.f32 %v4601_v4, %v4561_v9  ;;  %v11806_v6 = vld [vmem:[#allocation2 + $0x5e0] ss:$24 sps:$4 sm:$0xff]   ;;  %v11814_v0 = vld [vmem:[#allocation6 + $0x4] ss:$24 sps:$4 sm:$0xff]  }
 0x38d   : > { %v12807_v34 = vld [vmem:[%s12804_s13] sm:$0xff]  ;;  %v11809_v3 = vld [vmem:[#allocation2 + $0x610] ss:$24 sps:$4 sm:$0xff]   ;;  %v11820_v30 = vld [vmem:[#allocation6 + $0x34] ss:$24 sps:$4 sm:$0xff]  }
 0x38e   : > { %6614 = vmatpush1.bf16.msra.mxu0 %v11749_v13  ;;  %v11812_v4 = vld [vmem:[#allocation6] ss:$24 sps:$4 sm:$0xff]   ;;  %v11817_v9 = vld [vmem:[#allocation2 + $0x644] ss:$24 sps:$4 sm:$0xff]   ;;  %v12811_v12 = vcombine.high %v12807_v34, %v12807_v34  ;;  %v11823_v23 = vld [vmem:[#allocation2 + $0x674] ss:$24 sps:$4 sm:$0xff]  }
 0x38f   : > { %6655 = vmatpush1.bf16.msra.mxu1 %v11752_v19  ;;  %6615 = vmatprep.subr.bf16.mxu0 %v11757_v14  ;;  %v11815_v13 = vld [vmem:[#allocation2 + $0x640] ss:$24 sps:$4 sm:$0xff]   ;;  %v11818_v19 = vld [vmem:[#allocation6 + $0x30] ss:$24 sps:$4 sm:$0xff]   ;;  %v11826_v7 = vld [vmem:[#allocation6 + $0x64] ss:$24 sps:$4 sm:$0xff]  }
 0x390   : > { %6656 = vmatprep.subr.bf16.mxu1 %v11760_v24  ;;  %v11821_v14 = vld [vmem:[#allocation2 + $0x670] ss:$24 sps:$4 sm:$0xff]   ;;  %v11824_v24 = vld [vmem:[#allocation6 + $0x60] ss:$24 sps:$4 sm:$0xff]  }
 0x392   : > { %6616 = vmatpush1.bf16.msra.mxu0 %v11755_v32  ;;  %v11827_v32 = vld [vmem:[#allocation2 + $0x6a0] ss:$24 sps:$4 sm:$0xff]  }
 0x393   : > { %6657 = vmatpush1.bf16.msra.mxu1 %v11758_v51  ;;  %6617 = vmatprep.subr.bf16.mxu0 %v11763_v25  ;;  %v11830_v51 = vld [vmem:[#allocation6 + $0x90] ss:$24 sps:$4 sm:$0xff]   ;;  %v11835_v25 = vld [vmem:[#allocation2 + $0x6d4] ss:$24 sps:$4 sm:$0xff]  }
 0x394   : > { %6658 = vmatprep.subr.bf16.mxu1 %v11766_v26  ;;  %v11838_v26 = vld [vmem:[#allocation6 + $0xc4] ss:$24 sps:$4 sm:$0xff]  }
 0x396   : > { %6618 = vmatpush1.bf16.msra.mxu0 %v11761_v55  ;;  %v11836_v55 = vld [vmem:[#allocation6 + $0xc0] ss:$24 sps:$4 sm:$0xff]  }
 0x397   : > { %6659 = vmatpush1.bf16.msra.mxu1 %v11764_v27  ;;  %6619 = vmatprep.subr.bf16.mxu0 %v11769_v61  ;;  %v11841_v27 = vld [vmem:[#allocation2 + $0x704] ss:$24 sps:$4 sm:$0xff]   ;;  %v11844_v61 = vld [vmem:[#allocation6 + $0xf4] ss:$24 sps:$4 sm:$0xff]  }
 0x398   : > { %6660 = vmatprep.subr.bf16.mxu1 %v11772_v28  ;;  %v11839_v28 = vld [vmem:[#allocation2 + $0x700] ss:$24 sps:$4 sm:$0xff]  }
 0x39a   : > { %6620 = vmatpush1.bf16.msra.mxu0 %v11767_v59  ;;  %v11842_v59 = vld [vmem:[#allocation6 + $0xf0] ss:$24 sps:$4 sm:$0xff]  }
 0x39b   : > { %6661 = vmatpush1.bf16.msra.mxu1 %v11770_v29  ;;  %6621 = vmatprep.subr.bf16.mxu0 %v11775_v31  ;;  %v11847_v29 = vld [vmem:[#allocation2 + $0x734] ss:$24 sps:$4 sm:$0xff]   ;;  %v11850_v31 = vld [vmem:[#allocation6 + $0x124] ss:$24 sps:$4 sm:$0xff]  }
 0x39c   : > { %6662 = vmatprep.subr.bf16.mxu1 %v11778_v37 }
 0x39e   : > { %6622 = vmatpush1.bf16.msra.mxu0 %v11773_v2 }
 0x39f   : > { %6663 = vmatpush1.bf16.msra.mxu1 %v11776_v41  ;;  %6623 = vmatprep.subr.bf16.mxu0 %v11781_v42 }
 0x3a0   : > { %6664 = vmatprep.subr.bf16.mxu1 %v11784_v43 }
 0x3a2   : > { %6624 = vmatpush1.bf16.msra.mxu0 %v11779_v44 }
 0x3a3   : > { %6665 = vmatpush1.bf16.msra.mxu1 %v11782_v11  ;;  %6625 = vmatprep.subr.bf16.mxu0 %v11787_v46 }
 0x3a4   : > { %6666 = vmatprep.subr.bf16.mxu1 %v11790_v17  ;;  %v11845_v17 = vld [vmem:[#allocation2 + $0x730] ss:$24 sps:$4 sm:$0xff]  }
 0x3a6   : > { %6626 = vmatpush1.bf16.msra.mxu0 %v11785_v63  ;;  %v11848_v63 = vld [vmem:[#allocation6 + $0x120] ss:$24 sps:$4 sm:$0xff]  }
 0x3a7   : > { %6667 = vmatpush1.bf16.msra.mxu1 %v11788_v10  ;;  %6627 = vmatprep.subr.bf16.mxu0 %v11793_v1 }
 0x3a8   : > { %6668 = vmatprep.subr.bf16.mxu1 %v11796_v49 }
 0x3aa   : > { %6628 = vmatpush1.bf16.msra.mxu0 %v11791_v20  ;;  %v11853_v20 = vld [vmem:[#allocation2 + $0x764] ss:$24 sps:$4 sm:$0xff]  }
 0x3ab   : > { %6669 = vmatpush1.bf16.msra.mxu1 %v11794_v50  ;;  %6629 = vmatprep.subr.bf16.mxu0 %v11799_v5  ;;  %v11856_v50 = vld [vmem:[#allocation6 + $0x154] ss:$24 sps:$4 sm:$0xff]  }
 0x3ac   : > { %6670 = vmatprep.subr.bf16.mxu1 %v11802_v8  ;;  %v11859_v8 = vld [vmem:[#allocation2 + $0x794] ss:$24 sps:$4 sm:$0xff]  }
 0x3ae   : > { %6630 = vmatpush1.bf16.msra.mxu0 %v11797_v52  ;;  %v11862_v52 = vld [vmem:[#allocation6 + $0x184] ss:$24 sps:$4 sm:$0xff]  }
 0x3af   : > { %6671 = vmatpush1.bf16.msra.mxu1 %v11800_v53  ;;  %6631 = vmatprep.subr.bf16.mxu0 %v11805_v54  ;;  %v11857_v53 = vld [vmem:[#allocation2 + $0x790] ss:$24 sps:$4 sm:$0xff]   ;;  %v11860_v54 = vld [vmem:[#allocation6 + $0x180] ss:$24 sps:$4 sm:$0xff]  }
 0x3b0   : > { %6672 = vmatprep.subr.bf16.mxu1 %v11808_v56  ;;  %v11865_v56 = vld [vmem:[#allocation2 + $0x7c4] ss:$24 sps:$4 sm:$0xff]  }
 0x3b2   : > { %6632 = vmatpush1.bf16.msra.mxu0 %v11803_v57  ;;  %v11868_v57 = vld [vmem:[#allocation6 + $0x1b4] ss:$24 sps:$4 sm:$0xff]  }
 0x3b3   : > { %6673 = vmatpush1.bf16.msra.mxu1 %v11806_v6  ;;  %6683 = vmatprep.subr.bf16.mxu0 %v11811_v62  ;;  %v11863_v6 = vld [vmem:[#allocation2 + $0x7c0] ss:$24 sps:$4 sm:$0xff]   ;;  %v11866_v62 = vld [vmem:[#allocation6 + $0x1b0] ss:$24 sps:$4 sm:$0xff]  }
 0x3b4   : > { %8612 = vmatprep.subr.bf16.mxu1 %v11814_v0  ;;  %v11871_v0 = vld [vmem:[#allocation2 + $0x7f4] ss:$24 sps:$4 sm:$0xff]  }
 0x3b5   : > { %6634 = vmatmul.mubr.bf16.vlgmr.msra.gmra.mrb[48].mxu0 %v12754_v33  ;;  %v11829_v33 = vld [vmem:[#allocation2 + $0x6a4] ss:$24 sps:$4 sm:$0xff]  }
 0x3b6   : > { %6675 = vmatmul.mubr.bf16.vlgmr.msra.gmra.mrb[48].mxu1 %v12758_v35  ;;  %6684 = vmatpush1.bf16.msra.mxu0 %v11809_v3  ;;  %v11832_v35 = vld [vmem:[#allocation6 + $0x94] ss:$24 sps:$4 sm:$0xff]   ;;  %v11874_v3 = vld [vmem:[#allocation6 + $0x1e4] ss:$24 sps:$4 sm:$0xff]  }
 0x3b7   : > { %8613 = vmatpush1.bf16.msra.mxu1 %v11812_v4  ;;  %6685 = vmatprep.subr.bf16.mxu0 %v11817_v9  ;;  %v11869_v4 = vld [vmem:[#allocation2 + $0x7f0] ss:$24 sps:$4 sm:$0xff]   ;;  %v11872_v9 = vld [vmem:[#allocation6 + $0x1e0] ss:$24 sps:$4 sm:$0xff]  }
 0x3b8   : > { %8614 = vmatprep.subr.bf16.mxu1 %v11820_v30  ;;  %6715 = vmatprep.mubr.bf16.mxu0 %v12762_v38  ;;  %v11833_v38 = vld [vmem:[#allocation2 + $0x6d0] ss:$24 sps:$4 sm:$0xff]   ;;  %v11877_v30 = vld [vmem:[#allocation2 + $0x824] ss:$24 sps:$4 sm:$0xff]  }
 0x3b9   : > { %8644 = vmatprep.mubr.bf16.mxu1 %v12811_v12 }
 0x3ba   : > { %6686 = vmatpush1.bf16.msra.mxu0 %v11815_v13  ;;  %v11880_v13 = vld [vmem:[#allocation6 + $0x214] ss:$24 sps:$4 sm:$0xff]  }
 0x3bb   : > { %8615 = vmatpush1.bf16.msra.mxu1 %v11818_v19  ;;  %6687 = vmatprep.subr.bf16.mxu0 %v11823_v23  ;;  %v11875_v19 = vld [vmem:[#allocation2 + $0x820] ss:$24 sps:$4 sm:$0xff]   ;;  %v11878_v23 = vld [vmem:[#allocation6 + $0x210] ss:$24 sps:$4 sm:$0xff]  }
 0x3bc   : > { %8616 = vmatprep.subr.bf16.mxu1 %v11826_v7  ;;  %v11883_v7 = vld [vmem:[#allocation2 + $0x854] ss:$24 sps:$4 sm:$0xff]  }
 0x3be   : > { %6688 = vmatpush1.bf16.msra.mxu0 %v11821_v14  ;;  %v11886_v14 = vld [vmem:[#allocation6 + $0x244] ss:$24 sps:$4 sm:$0xff]  }
 0x3bf   : > { %8617 = vmatpush1.bf16.msra.mxu1 %v11824_v24  ;;  %6689 = vmatprep.subr.bf16.mxu0 %v11829_v33  ;;  %v11881_v24 = vld [vmem:[#allocation2 + $0x850] ss:$24 sps:$4 sm:$0xff]   ;;  %v11884_v33 = vld [vmem:[#allocation6 + $0x240] ss:$24 sps:$4 sm:$0xff]  }
 0x3c0   : > { %8618 = vmatprep.subr.bf16.mxu1 %v11832_v35  ;;  %v11889_v35 = vld [vmem:[#allocation2 + $0x884] ss:$24 sps:$4 sm:$0xff]  }
 0x3c2   : > { %6690 = vmatpush1.bf16.msra.mxu0 %v11827_v32  ;;  %v11892_v32 = vld [vmem:[#allocation6 + $0x274] ss:$24 sps:$4 sm:$0xff]  }
 0x3c3   : > { %8619 = vmatpush1.bf16.msra.mxu1 %v11830_v51  ;;  %6691 = vmatprep.subr.bf16.mxu0 %v11835_v25  ;;  %v11887_v51 = vld [vmem:[#allocation2 + $0x880] ss:$24 sps:$4 sm:$0xff]   ;;  %v11890_v25 = vld [vmem:[#allocation6 + $0x270] ss:$24 sps:$4 sm:$0xff]  }
 0x3c4   : > { %8620 = vmatprep.subr.bf16.mxu1 %v11838_v26  ;;  %v11895_v26 = vld [vmem:[#allocation2 + $0x8b4] ss:$24 sps:$4 sm:$0xff]  }
 0x3c6   : > { %6692 = vmatpush1.bf16.msra.mxu0 %v11833_v38  ;;  %v11898_v38 = vld [vmem:[#allocation6 + $0x2a4] ss:$24 sps:$4 sm:$0xff]  }
 0x3c7   : > { %8621 = vmatpush1.bf16.msra.mxu1 %v11836_v55  ;;  %6693 = vmatprep.subr.bf16.mxu0 %v11841_v27  ;;  %v11893_v55 = vld [vmem:[#allocation2 + $0x8b0] ss:$24 sps:$4 sm:$0xff]   ;;  %v11896_v27 = vld [vmem:[#allocation6 + $0x2a0] ss:$24 sps:$4 sm:$0xff]  }
 0x3c8   : > { %8622 = vmatprep.subr.bf16.mxu1 %v11844_v61  ;;  %v6389_v37 = vpop.f32.mrb[36].mxu0  ;;  %v11901_v61 = vld [vmem:[#allocation2 + $0x8e4] ss:$24 sps:$4 sm:$0xff]  }
 0x3c9   : > { %v6430_v2 = vpop.f32.mrb[36].mxu1  ;;  %v6390_v41 = vadd.f32 %v6389_v37, %v12680_v15  ;;  %v6391_v42 = vpop.f32.mrb[37].mxu0  ;;  %v11851_v15 = vld [vmem:[#allocation2 + $0x760] ss:$24 sps:$4 sm:$0xff]   ;;  %v11912_v37 = vld [vmem:[#allocation6 + $0x604] ss:$24 sps:$4 sm:$0xff]  }
 0x3ca   : > { %v6432_v43 = vpop.f32.mrb[37].mxu1  ;;  %v6392_v44 = vadd.f32 %v6391_v42, %v12685_v18  ;;  %v6393_v11 = vpop.f32.mrb[38].mxu0  ;;  %6694 = vmatpush1.bf16.msra.mxu0 %v11839_v28  ;;  %v11854_v18 = vld [vmem:[#allocation6 + $0x150] ss:$24 sps:$4 sm:$0xff]   ;;  %v11904_v28 = vld [vmem:[#allocation6 + $0x2d4] ss:$24 sps:$4 sm:$0xff]  }
 0x3cb   : > { %v6434_v46 = vpop.f32.mrb[38].mxu1  ;;  %8623 = vmatpush1.bf16.msra.mxu1 %v11842_v59  ;;  %v12819_v10 = vadd.f32 %v6430_v2, %v6390_v41  ;;  %v6394_v1 = vpop.f32.mrb[39].mxu0  ;;  %6695 = vmatprep.subr.bf16.mxu0 %v11847_v29  ;;  %v11899_v59 = vld [vmem:[#allocation2 + $0x8e0] ss:$24 sps:$4 sm:$0xff]   ;;  %v11902_v29 = vld [vmem:[#allocation6 + $0x2d0] ss:$24 sps:$4 sm:$0xff]   ;;  %v12825_v2 = vcombine.low %v12807_v34, %v12807_v34 }
 0x3cc   : > { %v6435_v49 = vpop.f32.mrb[39].mxu1  ;;  %8624 = vmatprep.subr.bf16.mxu1 %v11850_v31  ;;  %v12821_v5 = vadd.f32 %v6432_v43, %v6392_v44  ;;  %v11909_v31 = vld [vmem:[#allocation6 + $0x304] ss:$24 sps:$4 sm:$0xff]   ;;  %v12828_v41 = vld [vmem:[%s12804_s13 + $0x8] sm:$0xff]  ;;  %v12831_v42 = vld [vmem:[%s12804_s13 + $0x10] sm:$0xff] }
 0x3cd   : > { %v11907_v43 = vld [vmem:[#allocation6 + $0x300] ss:$24 sps:$4 sm:$0xff]   ;;  %v11915_v11 = vld [vmem:[#allocation6 + $0x334] ss:$24 sps:$4 sm:$0xff]   ;;  %v12839_v34 = vcombine.high %v12831_v42, %v12831_v42  ;;  %v11916_v1 = vld [vmem:[#allocation6 + $0x630] ss:$24 sps:$4 sm:$0xff]  }
 0x3ce   : > { %6696 = vmatpush1.bf16.msra.mxu0 %v11845_v17  ;;  %v11910_v44 = vld [vmem:[#allocation6 + $0x600] ss:$24 sps:$4 sm:$0xff]   ;;  %v11918_v46 = vld [vmem:[#allocation6 + $0x634] ss:$24 sps:$4 sm:$0xff]   ;;  %v12835_v17 = vcombine.high %v12828_v41, %v12828_v41  ;;  %v11921_v49 = vld [vmem:[#allocation6 + $0x364] ss:$24 sps:$4 sm:$0xff]  }
 0x3cf   : > { %8625 = vmatpush1.bf16.msra.mxu1 %v11848_v63  ;;  %6697 = vmatprep.subr.bf16.mxu0 %v11853_v20  ;;  %v11913_v63 = vld [vmem:[#allocation6 + $0x330] ss:$24 sps:$4 sm:$0xff]   ;;  %v11924_v20 = vld [vmem:[#allocation6 + $0x664] ss:$24 sps:$4 sm:$0xff]  }
 0x3d0   : > { %8626 = vmatprep.subr.bf16.mxu1 %v11856_v50  ;;  %v11919_v50 = vld [vmem:[#allocation6 + $0x360] ss:$24 sps:$4 sm:$0xff]  }
 0x3d2   : > { %6698 = vmatpush1.bf16.msra.mxu0 %v11851_v15  ;;  %v11922_v15 = vld [vmem:[#allocation6 + $0x660] ss:$24 sps:$4 sm:$0xff]  }
 0x3d3   : > { %8627 = vmatpush1.bf16.msra.mxu1 %v11854_v18  ;;  %6699 = vmatprep.subr.bf16.mxu0 %v11859_v8  ;;  %v11930_v18 = vld [vmem:[#allocation6 + $0x694] ss:$24 sps:$4 sm:$0xff]   ;;  %v11925_v8 = vld [vmem:[#allocation6 + $0x390] ss:$24 sps:$4 sm:$0xff]  }
 0x3d4   : > { %8628 = vmatprep.subr.bf16.mxu1 %v11862_v52  ;;  %v11928_v52 = vld [vmem:[#allocation6 + $0x690] ss:$24 sps:$4 sm:$0xff]  }
 0x3d6   : > { %6700 = vmatpush1.bf16.msra.mxu0 %v11857_v53  ;;  %v11933_v53 = vld [vmem:[#allocation6 + $0x3c4] ss:$24 sps:$4 sm:$0xff]  }
 0x3d7   : > { %8629 = vmatpush1.bf16.msra.mxu1 %v11860_v54  ;;  %6701 = vmatprep.subr.bf16.mxu0 %v11865_v56  ;;  %v11936_v54 = vld [vmem:[#allocation6 + $0x6c4] ss:$24 sps:$4 sm:$0xff]   ;;  %v11931_v56 = vld [vmem:[#allocation6 + $0x3c0] ss:$24 sps:$4 sm:$0xff]  }
 0x3d8   : > { %8630 = vmatprep.subr.bf16.mxu1 %v11868_v57  ;;  %v11934_v57 = vld [vmem:[#allocation6 + $0x6c0] ss:$24 sps:$4 sm:$0xff]  }
 0x3da   : > { %6702 = vmatpush1.bf16.msra.mxu0 %v11863_v6  ;;  %v11939_v6 = vld [vmem:[#allocation6 + $0x3f4] ss:$24 sps:$4 sm:$0xff]  }
 0x3db   : > { %8631 = vmatpush1.bf16.msra.mxu1 %v11866_v62  ;;  %6703 = vmatprep.subr.bf16.mxu0 %v11871_v0  ;;  %v11942_v62 = vld [vmem:[#allocation6 + $0x6f4] ss:$24 sps:$4 sm:$0xff]   ;;  %v11937_v0 = vld [vmem:[#allocation6 + $0x3f0] ss:$24 sps:$4 sm:$0xff]  }
 0x3dc   : > { %8632 = vmatprep.subr.bf16.mxu1 %v11874_v3  ;;  %v11940_v3 = vld [vmem:[#allocation6 + $0x6f0] ss:$24 sps:$4 sm:$0xff]  }
 0x3de   : > { %6704 = vmatpush1.bf16.msra.mxu0 %v11869_v4  ;;  %v11945_v4 = vld [vmem:[#allocation6 + $0x424] ss:$24 sps:$4 sm:$0xff]  }
 0x3df   : > { %8633 = vmatpush1.bf16.msra.mxu1 %v11872_v9  ;;  %6705 = vmatprep.subr.bf16.mxu0 %v11877_v30  ;;  %v11948_v9 = vld [vmem:[#allocation6 + $0x724] ss:$24 sps:$4 sm:$0xff]  }
 0x3e0   : > { %8634 = vmatprep.subr.bf16.mxu1 %v11880_v13 }
 0x3e2   : > { %6706 = vmatpush1.bf16.msra.mxu0 %v11875_v19 }
 0x3e3   : > { %8635 = vmatpush1.bf16.msra.mxu1 %v11878_v23  ;;  %6707 = vmatprep.subr.bf16.mxu0 %v11883_v7 }
 0x3e4   : > { %8636 = vmatprep.subr.bf16.mxu1 %v11886_v14 }
 0x3e6   : > { %6708 = vmatpush1.bf16.msra.mxu0 %v11881_v24 }
 0x3e7   : > { %8637 = vmatpush1.bf16.msra.mxu1 %v11884_v33  ;;  %6709 = vmatprep.subr.bf16.mxu0 %v11889_v35 }
 0x3e8   : > { %8638 = vmatprep.subr.bf16.mxu1 %v11892_v32 }
 0x3ea   : > { %6710 = vmatpush1.bf16.msra.mxu0 %v11887_v51  ;;  %v11943_v51 = vld [vmem:[#allocation6 + $0x420] ss:$24 sps:$4 sm:$0xff]  }
 0x3eb   : > { %8639 = vmatpush1.bf16.msra.mxu1 %v11890_v25  ;;  %6711 = vmatprep.subr.bf16.mxu0 %v11895_v26  ;;  %v11946_v25 = vld [vmem:[#allocation6 + $0x720] ss:$24 sps:$4 sm:$0xff]  }
 0x3ec   : > { %8640 = vmatprep.subr.bf16.mxu1 %v11898_v38  ;;  %v11954_v38 = vld [vmem:[#allocation6 + $0x754] ss:$24 sps:$4 sm:$0xff]  }
 0x3ee   : > { %6712 = vmatpush1.bf16.msra.mxu0 %v11893_v55  ;;  %v11949_v55 = vld [vmem:[#allocation6 + $0x450] ss:$24 sps:$4 sm:$0xff]  }
 0x3ef   : > { %8641 = vmatpush1.bf16.msra.mxu1 %v11896_v27  ;;  %6713 = vmatprep.subr.bf16.mxu0 %v11901_v61  ;;  %v11960_v27 = vld [vmem:[#allocation6 + $0x784] ss:$24 sps:$4 sm:$0xff]   ;;  %v11955_v61 = vld [vmem:[#allocation6 + $0x480] ss:$24 sps:$4 sm:$0xff]  }
 0x3f0   : > { %8642 = vmatprep.subr.bf16.mxu1 %v11904_v28  ;;  %v11958_v28 = vld [vmem:[#allocation6 + $0x780] ss:$24 sps:$4 sm:$0xff]  }
 0x3f2   : > { %6714 = vmatpush1.bf16.msra.mxu0 %v11899_v59  ;;  %v11963_v59 = vld [vmem:[#allocation6 + $0x4b4] ss:$24 sps:$4 sm:$0xff]  }
 0x3f3   : > { %8643 = vmatpush1.bf16.msra.mxu1 %v11902_v29  ;;  %8653 = vmatprep.subr.bf16.mxu0 %v11909_v31  ;;  %v11966_v29 = vld [vmem:[#allocation6 + $0x7b4] ss:$24 sps:$4 sm:$0xff]   ;;  %v11961_v31 = vld [vmem:[#allocation6 + $0x4b0] ss:$24 sps:$4 sm:$0xff]  }
 0x3f4   : > { %8694 = vmatprep.subr.bf16.mxu1 %v11912_v37  ;;  %v11964_v37 = vld [vmem:[#allocation6 + $0x7b0] ss:$24 sps:$4 sm:$0xff]  }
 0x3f5   : > { %6716 = vmatmul.mubr.bf16.vlgmr.msra.gmra.mrb[52].mxu0 %v12774_v60  ;;  %v11927_v60 = vld [vmem:[#allocation6 + $0x394] ss:$24 sps:$4 sm:$0xff]  }
 0x3f6   : > { %8645 = vmatmul.mubr.bf16.vlgmr.msra.gmra.mrb[52].mxu1 %v12825_v2  ;;  %8654 = vmatpush1.bf16.msra.mxu0 %v11907_v43  ;;  %v11969_v43 = vld [vmem:[#allocation6 + $0x4e4] ss:$24 sps:$4 sm:$0xff]  }
 0x3f7   : > { %8695 = vmatpush1.bf16.msra.mxu1 %v11910_v44  ;;  %8655 = vmatprep.subr.bf16.mxu0 %v11915_v11  ;;  %v11972_v44 = vld [vmem:[#allocation6 + $0x7e4] ss:$24 sps:$4 sm:$0xff]   ;;  %v11967_v11 = vld [vmem:[#allocation6 + $0x4e0] ss:$24 sps:$4 sm:$0xff]  }
 0x3f8   : > { %8696 = vmatprep.subr.bf16.mxu1 %v11918_v46  ;;  %8685 = vmatprep.mubr.bf16.mxu0 %v12835_v17  ;;  %v11970_v46 = vld [vmem:[#allocation6 + $0x7e0] ss:$24 sps:$4 sm:$0xff]  }
 0x3f9   : > { %8726 = vmatprep.mubr.bf16.mxu1 %v12839_v34 }
 0x3fa   : > { %8656 = vmatpush1.bf16.msra.mxu0 %v11913_v63  ;;  %v11975_v63 = vld [vmem:[#allocation6 + $0x514] ss:$24 sps:$4 sm:$0xff]  }
 0x3fb   : > { %8697 = vmatpush1.bf16.msra.mxu1 %v11916_v1  ;;  %8657 = vmatprep.subr.bf16.mxu0 %v11921_v49  ;;  %v11978_v1 = vld [vmem:[#allocation6 + $0x814] ss:$24 sps:$4 sm:$0xff]   ;;  %v11973_v49 = vld [vmem:[#allocation6 + $0x510] ss:$24 sps:$4 sm:$0xff]  }
 0x3fc   : > { %8698 = vmatprep.subr.bf16.mxu1 %v11924_v20  ;;  %v11976_v20 = vld [vmem:[#allocation6 + $0x810] ss:$24 sps:$4 sm:$0xff]  }
 0x3fe   : > { %8658 = vmatpush1.bf16.msra.mxu0 %v11919_v50  ;;  %v11981_v50 = vld [vmem:[#allocation6 + $0x544] ss:$24 sps:$4 sm:$0xff]  }
 0x3ff   : > { %8699 = vmatpush1.bf16.msra.mxu1 %v11922_v15  ;;  %8659 = vmatprep.subr.bf16.mxu0 %v11927_v60  ;;  %v11984_v15 = vld [vmem:[#allocation6 + $0x844] ss:$24 sps:$4 sm:$0xff]   ;;  %v11979_v60 = vld [vmem:[#allocation6 + $0x540] ss:$24 sps:$4 sm:$0xff]  }
 0x400   : > { %8700 = vmatprep.subr.bf16.mxu1 %v11930_v18  ;;  %v11982_v18 = vld [vmem:[#allocation6 + $0x840] ss:$24 sps:$4 sm:$0xff]  }
 0x402   : > { %8660 = vmatpush1.bf16.msra.mxu0 %v11925_v8  ;;  %v11987_v8 = vld [vmem:[#allocation6 + $0x574] ss:$24 sps:$4 sm:$0xff]  }
 0x403   : > { %8701 = vmatpush1.bf16.msra.mxu1 %v11928_v52  ;;  %8661 = vmatprep.subr.bf16.mxu0 %v11933_v53  ;;  %v11990_v52 = vld [vmem:[#allocation6 + $0x874] ss:$24 sps:$4 sm:$0xff]   ;;  %v11985_v53 = vld [vmem:[#allocation6 + $0x570] ss:$24 sps:$4 sm:$0xff]  }
 0x404   : > { %8702 = vmatprep.subr.bf16.mxu1 %v11936_v54  ;;  %v11988_v54 = vld [vmem:[#allocation6 + $0x870] ss:$24 sps:$4 sm:$0xff]  }
 0x406   : > { %8662 = vmatpush1.bf16.msra.mxu0 %v11931_v56  ;;  %v11993_v56 = vld [vmem:[#allocation6 + $0x5a4] ss:$24 sps:$4 sm:$0xff]  }
 0x407   : > { %8703 = vmatpush1.bf16.msra.mxu1 %v11934_v57  ;;  %8663 = vmatprep.subr.bf16.mxu0 %v11939_v6  ;;  %v11996_v57 = vld [vmem:[#allocation6 + $0x8a4] ss:$24 sps:$4 sm:$0xff]   ;;  %v11991_v6 = vld [vmem:[#allocation6 + $0x5a0] ss:$24 sps:$4 sm:$0xff]  }
 0x408   : > { %8704 = vmatprep.subr.bf16.mxu1 %v11942_v62  ;;  %v6471_v30 = vpop.f32.mrb[40].mxu0  ;;  %v11994_v62 = vld [vmem:[#allocation6 + $0x8a0] ss:$24 sps:$4 sm:$0xff]  }
 0x409   : > { %v6512_v13 = vpop.f32.mrb[40].mxu1  ;;  %v12846_v19 = vadd.f32 %v6471_v30, %v12819_v10  ;;  %v6473_v7 = vpop.f32.mrb[41].mxu0  ;;  %v12009_v30 = vld [vmem:[#allocation6 + $0xc] ss:$24 sps:$4 sm:$0xff]  }
 0x40a   : > { %v12849_v23 = vadd.f32 %v6512_v13, %v12693_v40  ;;  %v6514_v14 = vpop.f32.mrb[41].mxu1  ;;  %v12852_v24 = vadd.f32 %v6473_v7, %v12821_v5  ;;  %v6475_v35 = vpop.f32.mrb[42].mxu0  ;;  %8664 = vmatpush1.bf16.msra.mxu0 %v11937_v0  ;;  %v11951_v40 = vld [vmem:[#allocation6 + $0x454] ss:$24 sps:$4 sm:$0xff]   ;;  %v11952_v5 = vld [vmem:[#allocation6 + $0x750] ss:$24 sps:$4 sm:$0xff]   ;;  %v12859_v7 = vcombine.low %v12828_v41, %v12828_v41 }
 0x40b   : > { %v12855_v33 = vadd.f32 %v6514_v14, %v12695_v45  ;;  %v6516_v32 = vpop.f32.mrb[42].mxu1  ;;  %8705 = vmatpush1.bf16.msra.mxu1 %v11940_v3  ;;  %v6476_v26 = vpop.f32.mrb[43].mxu0  ;;  %8665 = vmatprep.subr.bf16.mxu0 %v11945_v4  ;;  %v11957_v45 = vld [vmem:[#allocation6 + $0x484] ss:$24 sps:$4 sm:$0xff]   ;;  %v11999_v0 = vld [vmem:[#allocation6 + $0x5d4] ss:$24 sps:$4 sm:$0xff]   ;;  %v12863_v14 = vcombine.low %v12831_v42, %v12831_v42 }
 0x40c   : > { %v6517_v10 = vpop.f32.mrb[43].mxu1  ;;  %8706 = vmatprep.subr.bf16.mxu1 %v11948_v9  ;;  %v12002_v3 = vld [vmem:[#allocation6 + $0x8d4] ss:$24 sps:$4 sm:$0xff]   ;;  %v11997_v4 = vld [vmem:[#allocation6 + $0x5d0] ss:$24 sps:$4 sm:$0xff]  }
 0x40d   : > { %v12000_v9 = vld [vmem:[#allocation6 + $0x8d0] ss:$24 sps:$4 sm:$0xff]   ;;  %v12012_v13 = vld [vmem:[#allocation6 + $0x30c] ss:$24 sps:$4 sm:$0xff]  }
 0x40e   : > { %8666 = vmatpush1.bf16.msra.mxu0 %v11943_v51  ;;  %v12007_v35 = vld [vmem:[#allocation6 + $0x8] ss:$24 sps:$4 sm:$0xff]   ;;  %v12015_v51 = vld [vmem:[#allocation6 + $0x3c] ss:$24 sps:$4 sm:$0xff]   ;;  %v12013_v41 = vld [vmem:[#allocation6 + $0x38] ss:$24 sps:$4 sm:$0xff]  }
 0x40f   : > { %8707 = vmatpush1.bf16.msra.mxu1 %v11946_v25  ;;  %8667 = vmatprep.subr.bf16.mxu0 %v11951_v40  ;;  %v12010_v32 = vld [vmem:[#allocation6 + $0x308] ss:$24 sps:$4 sm:$0xff]   ;;  %v12018_v25 = vld [vmem:[#allocation6 + $0x33c] ss:$24 sps:$4 sm:$0xff]   ;;  %v12016_v26 = vld [vmem:[#allocation6 + $0x338] ss:$24 sps:$4 sm:$0xff]  }
 0x410   : > { %8708 = vmatprep.subr.bf16.mxu1 %v11954_v38  ;;  %v12021_v42 = vld [vmem:[#allocation6 + $0x6c] ss:$24 sps:$4 sm:$0xff]   ;;  %v12019_v40 = vld [vmem:[#allocation6 + $0x68] ss:$24 sps:$4 sm:$0xff]  }
 0x411   : > { %v12024_v10 = vld [vmem:[#allocation6 + $0x36c] ss:$24 sps:$4 sm:$0xff]   ;;  %v12022_v38 = vld [vmem:[#allocation6 + $0x368] ss:$24 sps:$4 sm:$0xff]  }
 0x412   : > { %8668 = vmatpush1.bf16.msra.mxu0 %v11949_v55  ;;  %v12027_v55 = vld [vmem:[#allocation6 + $0x9c] ss:$24 sps:$4 sm:$0xff]  }
 0x413   : > { %8709 = vmatpush1.bf16.msra.mxu1 %v11952_v5  ;;  %8669 = vmatprep.subr.bf16.mxu0 %v11957_v45  ;;  %v12030_v5 = vld [vmem:[#allocation6 + $0x39c] ss:$24 sps:$4 sm:$0xff]   ;;  %v12025_v45 = vld [vmem:[#allocation6 + $0x98] ss:$24 sps:$4 sm:$0xff]  }
 0x414   : > { %8710 = vmatprep.subr.bf16.mxu1 %v11960_v27  ;;  %v12028_v27 = vld [vmem:[#allocation6 + $0x398] ss:$24 sps:$4 sm:$0xff]  }
 0x416   : > { %8670 = vmatpush1.bf16.msra.mxu0 %v11955_v61  ;;  %v12033_v61 = vld [vmem:[#allocation6 + $0xcc] ss:$24 sps:$4 sm:$0xff]  }
 0x417   : > { %8711 = vmatpush1.bf16.msra.mxu1 %v11958_v28  ;;  %8671 = vmatprep.subr.bf16.mxu0 %v11963_v59  ;;  %v12036_v28 = vld [vmem:[#allocation6 + $0x3cc] ss:$24 sps:$4 sm:$0xff]   ;;  %v12031_v59 = vld [vmem:[#allocation6 + $0xc8] ss:$24 sps:$4 sm:$0xff]  }
 0x418   : > { %8712 = vmatprep.subr.bf16.mxu1 %v11966_v29  ;;  %v12034_v29 = vld [vmem:[#allocation6 + $0x3c8] ss:$24 sps:$4 sm:$0xff]  }
 0x41a   : > { %8672 = vmatpush1.bf16.msra.mxu0 %v11961_v31  ;;  %v12039_v31 = vld [vmem:[#allocation6 + $0xfc] ss:$24 sps:$4 sm:$0xff]  }
 0x41b   : > { %8713 = vmatpush1.bf16.msra.mxu1 %v11964_v37  ;;  %8673 = vmatprep.subr.bf16.mxu0 %v11969_v43  ;;  %v12042_v37 = vld [vmem:[#allocation6 + $0x3fc] ss:$24 sps:$4 sm:$0xff]   ;;  %v12037_v43 = vld [vmem:[#allocation6 + $0xf8] ss:$24 sps:$4 sm:$0xff]  }
 0x41c   : > { %8714 = vmatprep.subr.bf16.mxu1 %v11972_v44  ;;  %v12040_v44 = vld [vmem:[#allocation6 + $0x3f8] ss:$24 sps:$4 sm:$0xff]  }
 0x41e   : > { %8674 = vmatpush1.bf16.msra.mxu0 %v11967_v11  ;;  %v12045_v11 = vld [vmem:[#allocation6 + $0x12c] ss:$24 sps:$4 sm:$0xff]  }
 0x41f   : > { %8715 = vmatpush1.bf16.msra.mxu1 %v11970_v46  ;;  %8675 = vmatprep.subr.bf16.mxu0 %v11975_v63  ;;  %v12048_v46 = vld [vmem:[#allocation6 + $0x42c] ss:$24 sps:$4 sm:$0xff]  }
 0x420   : > { %8716 = vmatprep.subr.bf16.mxu1 %v11978_v1 }
 0x422   : > { %8676 = vmatpush1.bf16.msra.mxu0 %v11973_v49 }
 0x423   : > { %8717 = vmatpush1.bf16.msra.mxu1 %v11976_v20  ;;  %8677 = vmatprep.subr.bf16.mxu0 %v11981_v50 }
 0x424   : > { %8718 = vmatprep.subr.bf16.mxu1 %v11984_v15 }
 0x426   : > { %8678 = vmatpush1.bf16.msra.mxu0 %v11979_v60 }
 0x427   : > { %8719 = vmatpush1.bf16.msra.mxu1 %v11982_v18  ;;  %8679 = vmatprep.subr.bf16.mxu0 %v11987_v8  ;;  %v12043_v8 = vld [vmem:[#allocation6 + $0x128] ss:$24 sps:$4 sm:$0xff]  }
 0x428   : > { %8720 = vmatprep.subr.bf16.mxu1 %v11990_v52  ;;  %v12046_v52 = vld [vmem:[#allocation6 + $0x428] ss:$24 sps:$4 sm:$0xff]  }
 0x42a   : > { %8680 = vmatpush1.bf16.msra.mxu0 %v11985_v53 }
 0x42b   : > { %8721 = vmatpush1.bf16.msra.mxu1 %v11988_v54  ;;  %8681 = vmatprep.subr.bf16.mxu0 %v11993_v56 }
 0x42c   : > { %8722 = vmatprep.subr.bf16.mxu1 %v11996_v57  ;;  %v12051_v57 = vld [vmem:[#allocation6 + $0x15c] ss:$24 sps:$4 sm:$0xff]  }
 0x42e   : > { %8682 = vmatpush1.bf16.msra.mxu0 %v11991_v6  ;;  %v12054_v6 = vld [vmem:[#allocation6 + $0x45c] ss:$24 sps:$4 sm:$0xff]  }
 0x42f   : > { %8723 = vmatpush1.bf16.msra.mxu1 %v11994_v62  ;;  %8683 = vmatprep.subr.bf16.mxu0 %v11999_v0  ;;  %v12057_v0 = vld [vmem:[#allocation6 + $0x18c] ss:$24 sps:$4 sm:$0xff]  }
 0x430   : > { %8724 = vmatprep.subr.bf16.mxu1 %v12002_v3  ;;  %v12060_v3 = vld [vmem:[#allocation6 + $0x48c] ss:$24 sps:$4 sm:$0xff]  }
 0x432   : > { %8684 = vmatpush1.bf16.msra.mxu0 %v11997_v4  ;;  %v12055_v4 = vld [vmem:[#allocation6 + $0x188] ss:$24 sps:$4 sm:$0xff]  }
 0x433   : > { %8725 = vmatpush1.bf16.msra.mxu1 %v12000_v9  ;;  %8735 = vmatprep.subr.bf16.mxu0 %v12009_v30  ;;  %v12058_v9 = vld [vmem:[#allocation6 + $0x488] ss:$24 sps:$4 sm:$0xff]   ;;  %v12063_v30 = vld [vmem:[#allocation6 + $0x1bc] ss:$24 sps:$4 sm:$0xff]  }
 0x434   : > { %8776 = vmatprep.subr.bf16.mxu1 %v12012_v13  ;;  %v12066_v13 = vld [vmem:[#allocation6 + $0x4bc] ss:$24 sps:$4 sm:$0xff]  }
 0x435   : > { %8686 = vmatmul.mubr.bf16.vlgmr.msra.gmra.mrb[56].mxu0 %v12859_v7 }
 0x436   : > { %8727 = vmatmul.mubr.bf16.vlgmr.msra.gmra.mrb[56].mxu1 %v12863_v14  ;;  %8736 = vmatpush1.bf16.msra.mxu0 %v12007_v35  ;;  %v12061_v35 = vld [vmem:[#allocation6 + $0x1b8] ss:$24 sps:$4 sm:$0xff]  }
 0x437   : > { %8777 = vmatpush1.bf16.msra.mxu1 %v12010_v32  ;;  %8737 = vmatprep.subr.bf16.mxu0 %v12015_v51  ;;  %v12064_v32 = vld [vmem:[#allocation6 + $0x4b8] ss:$24 sps:$4 sm:$0xff]   ;;  %v12069_v51 = vld [vmem:[#allocation6 + $0x1ec] ss:$24 sps:$4 sm:$0xff]  }
 0x438   : > { %8778 = vmatprep.subr.bf16.mxu1 %v12018_v25  ;;  %8767 = vmatprep.mubr.bf16.mxu0 %v12811_v12  ;;  %v12072_v25 = vld [vmem:[#allocation6 + $0x4ec] ss:$24 sps:$4 sm:$0xff]  }
 0x439   : > { %8808 = vmatprep.mubr.bf16.mxu1 %v12835_v17 }
 0x43a   : > { %8738 = vmatpush1.bf16.msra.mxu0 %v12013_v41  ;;  %v12067_v41 = vld [vmem:[#allocation6 + $0x1e8] ss:$24 sps:$4 sm:$0xff]  }
 0x43b   : > { %8779 = vmatpush1.bf16.msra.mxu1 %v12016_v26  ;;  %8739 = vmatprep.subr.bf16.mxu0 %v12021_v42  ;;  %v12070_v26 = vld [vmem:[#allocation6 + $0x4e8] ss:$24 sps:$4 sm:$0xff]   ;;  %v12075_v42 = vld [vmem:[#allocation6 + $0x21c] ss:$24 sps:$4 sm:$0xff]  }
 0x43c   : > { %8780 = vmatprep.subr.bf16.mxu1 %v12024_v10  ;;  %v12078_v10 = vld [vmem:[#allocation6 + $0x51c] ss:$24 sps:$4 sm:$0xff]  }
 0x43e   : > { %8740 = vmatpush1.bf16.msra.mxu0 %v12019_v40  ;;  %v12073_v40 = vld [vmem:[#allocation6 + $0x218] ss:$24 sps:$4 sm:$0xff]  }
 0x43f   : > { %8781 = vmatpush1.bf16.msra.mxu1 %v12022_v38  ;;  %8741 = vmatprep.subr.bf16.mxu0 %v12027_v55  ;;  %v12076_v38 = vld [vmem:[#allocation6 + $0x518] ss:$24 sps:$4 sm:$0xff]   ;;  %v12081_v55 = vld [vmem:[#allocation6 + $0x24c] ss:$24 sps:$4 sm:$0xff]  }
 0x440   : > { %8782 = vmatprep.subr.bf16.mxu1 %v12030_v5  ;;  %v12084_v5 = vld [vmem:[#allocation6 + $0x54c] ss:$24 sps:$4 sm:$0xff]  }
 0x442   : > { %8742 = vmatpush1.bf16.msra.mxu0 %v12025_v45  ;;  %v12079_v45 = vld [vmem:[#allocation6 + $0x248] ss:$24 sps:$4 sm:$0xff]  }
 0x443   : > { %8783 = vmatpush1.bf16.msra.mxu1 %v12028_v27  ;;  %8743 = vmatprep.subr.bf16.mxu0 %v12033_v61  ;;  %v12082_v27 = vld [vmem:[#allocation6 + $0x548] ss:$24 sps:$4 sm:$0xff]   ;;  %v12087_v61 = vld [vmem:[#allocation6 + $0x27c] ss:$24 sps:$4 sm:$0xff]  }
 0x444   : > { %8784 = vmatprep.subr.bf16.mxu1 %v12036_v28  ;;  %v12090_v28 = vld [vmem:[#allocation6 + $0x57c] ss:$24 sps:$4 sm:$0xff]  }
 0x446   : > { %8744 = vmatpush1.bf16.msra.mxu0 %v12031_v59  ;;  %v12085_v59 = vld [vmem:[#allocation6 + $0x278] ss:$24 sps:$4 sm:$0xff]  }
 0x447   : > { %8785 = vmatpush1.bf16.msra.mxu1 %v12034_v29  ;;  %8745 = vmatprep.subr.bf16.mxu0 %v12039_v31  ;;  %v12088_v29 = vld [vmem:[#allocation6 + $0x578] ss:$24 sps:$4 sm:$0xff]   ;;  %v12093_v31 = vld [vmem:[#allocation6 + $0x2ac] ss:$24 sps:$4 sm:$0xff]  }
 0x448   : > { %8786 = vmatprep.subr.bf16.mxu1 %v12042_v37  ;;  %v6553_v63 = vpop.f32.mrb[44].mxu0  ;;  %v12096_v37 = vld [vmem:[#allocation6 + $0x5ac] ss:$24 sps:$4 sm:$0xff]  }
 0x449   : > { %v6594_v1 = vpop.f32.mrb[44].mxu1  ;;  %v6554_v49 = vadd.f32 %v6553_v63, %v12849_v23  ;;  %v6555_v20 = vpop.f32.mrb[45].mxu0  ;;  %v12049_v23 = vld [vmem:[#allocation6 + $0x158] ss:$24 sps:$4 sm:$0xff]  }
 0x44a   : > { %v6596_v50 = vpop.f32.mrb[45].mxu1  ;;  %v6556_v15 = vadd.f32 %v6555_v20, %v12855_v33  ;;  %v6557_v60 = vpop.f32.mrb[46].mxu0  ;;  %8746 = vmatpush1.bf16.msra.mxu0 %v12037_v43  ;;  %v12052_v33 = vld [vmem:[#allocation6 + $0x458] ss:$24 sps:$4 sm:$0xff]   ;;  %v12091_v43 = vld [vmem:[#allocation6 + $0x2a8] ss:$24 sps:$4 sm:$0xff]  }
 0x44b   : > { %v6598_v18 = vpop.f32.mrb[46].mxu1  ;;  %8787 = vmatpush1.bf16.msra.mxu1 %v12040_v44  ;;  %v12871_v53 = vadd.f32 %v6594_v1, %v6554_v49  ;;  %v6558_v54 = vpop.f32.mrb[47].mxu0  ;;  %8747 = vmatprep.subr.bf16.mxu0 %v12045_v11  ;;  %v12094_v44 = vld [vmem:[#allocation6 + $0x5a8] ss:$24 sps:$4 sm:$0xff]   ;;  %v12099_v11 = vld [vmem:[#allocation6 + $0x2dc] ss:$24 sps:$4 sm:$0xff]  }
 0x44c   : > { %v6599_v56 = vpop.f32.mrb[47].mxu1  ;;  %8788 = vmatprep.subr.bf16.mxu1 %v12048_v46  ;;  %v12873_v62 = vadd.f32 %v6596_v50, %v6556_v15  ;;  %v12102_v46 = vld [vmem:[#allocation6 + $0x5dc] ss:$24 sps:$4 sm:$0xff]   ;;  %v12097_v63 = vld [vmem:[#allocation6 + $0x2d8] ss:$24 sps:$4 sm:$0xff]  }
 0x44d   : > { %v12100_v1 = vld [vmem:[#allocation6 + $0x5d8] ss:$24 sps:$4 sm:$0xff]   ;;  %v12105_v49 = vld [vmem:[#allocation6 + $0x60c] ss:$24 sps:$4 sm:$0xff]   ;;  %v12103_v50 = vld [vmem:[#allocation6 + $0x608] ss:$24 sps:$4 sm:$0xff]  }
 0x44e   : > { %8748 = vmatpush1.bf16.msra.mxu0 %v12043_v8  ;;  %v12108_v20 = vld [vmem:[#allocation6 + $0x14] ss:$24 sps:$4 sm:$0xff]   ;;  %v12106_v15 = vld [vmem:[#allocation6 + $0x10] ss:$24 sps:$4 sm:$0xff]   ;;  %v12114_v18 = vld [vmem:[#allocation6 + $0x44] ss:$24 sps:$4 sm:$0xff]  }
 0x44f   : > { %8789 = vmatpush1.bf16.msra.mxu1 %v12046_v52  ;;  %8749 = vmatprep.subr.bf16.mxu0 %v12051_v57  ;;  %v12111_v60 = vld [vmem:[#allocation6 + $0x63c] ss:$24 sps:$4 sm:$0xff]   ;;  %v12109_v8 = vld [vmem:[#allocation6 + $0x638] ss:$24 sps:$4 sm:$0xff]   ;;  %v12117_v54 = vld [vmem:[#allocation6 + $0x66c] ss:$24 sps:$4 sm:$0xff]  }
 0x450   : > { %8790 = vmatprep.subr.bf16.mxu1 %v12054_v6  ;;  %v12112_v52 = vld [vmem:[#allocation6 + $0x40] ss:$24 sps:$4 sm:$0xff]   ;;  %v12120_v56 = vld [vmem:[#allocation6 + $0x74] ss:$24 sps:$4 sm:$0xff]   ;;  %v12118_v6 = vld [vmem:[#allocation6 + $0x70] ss:$24 sps:$4 sm:$0xff]  }
 0x451   : > { %v12115_v57 = vld [vmem:[#allocation6 + $0x668] ss:$24 sps:$4 sm:$0xff]  }
 0x452   : > { %8750 = vmatpush1.bf16.msra.mxu0 %v12049_v23  ;;  %v12123_v23 = vld [vmem:[#allocation6 + $0x69c] ss:$24 sps:$4 sm:$0xff]  }
 0x453   : > { %8791 = vmatpush1.bf16.msra.mxu1 %v12052_v33  ;;  %8751 = vmatprep.subr.bf16.mxu0 %v12057_v0  ;;  %v12126_v33 = vld [vmem:[#allocation6 + $0xa4] ss:$24 sps:$4 sm:$0xff]   ;;  %v12121_v0 = vld [vmem:[#allocation6 + $0x698] ss:$24 sps:$4 sm:$0xff]  }
 0x454   : > { %8792 = vmatprep.subr.bf16.mxu1 %v12060_v3  ;;  %v12124_v3 = vld [vmem:[#allocation6 + $0xa0] ss:$24 sps:$4 sm:$0xff]  }
 0x456   : > { %8752 = vmatpush1.bf16.msra.mxu0 %v12055_v4  ;;  %v12129_v4 = vld [vmem:[#allocation6 + $0x6cc] ss:$24 sps:$4 sm:$0xff]  }
 0x457   : > { %8793 = vmatpush1.bf16.msra.mxu1 %v12058_v9  ;;  %8753 = vmatprep.subr.bf16.mxu0 %v12063_v30  ;;  %v12132_v9 = vld [vmem:[#allocation6 + $0xd4] ss:$24 sps:$4 sm:$0xff]   ;;  %v12127_v30 = vld [vmem:[#allocation6 + $0x6c8] ss:$24 sps:$4 sm:$0xff]  }
 0x458   : > { %8794 = vmatprep.subr.bf16.mxu1 %v12066_v13  ;;  %v12135_v13 = vld [vmem:[#allocation6 + $0x6fc] ss:$24 sps:$4 sm:$0xff]  }
 0x45a   : > { %8754 = vmatpush1.bf16.msra.mxu0 %v12061_v35  ;;  %v12138_v35 = vld [vmem:[#allocation6 + $0x104] ss:$24 sps:$4 sm:$0xff]  }
 0x45b   : > { %8795 = vmatpush1.bf16.msra.mxu1 %v12064_v32  ;;  %8755 = vmatprep.subr.bf16.mxu0 %v12069_v51  ;;  %v12133_v32 = vld [vmem:[#allocation6 + $0x6f8] ss:$24 sps:$4 sm:$0xff]  }
 0x45c   : > { %8796 = vmatprep.subr.bf16.mxu1 %v12072_v25  ;;  %v12136_v51 = vld [vmem:[#allocation6 + $0x100] ss:$24 sps:$4 sm:$0xff]   ;;  %v12141_v25 = vld [vmem:[#allocation6 + $0x72c] ss:$24 sps:$4 sm:$0xff]  }
 0x45e   : > { %8756 = vmatpush1.bf16.msra.mxu0 %v12067_v41  ;;  %v12144_v41 = vld [vmem:[#allocation6 + $0x134] ss:$24 sps:$4 sm:$0xff]  }
 0x45f   : > { %8797 = vmatpush1.bf16.msra.mxu1 %v12070_v26  ;;  %8757 = vmatprep.subr.bf16.mxu0 %v12075_v42 }
 0x460   : > { %8798 = vmatprep.subr.bf16.mxu1 %v12078_v10 }
 0x462   : > { %8758 = vmatpush1.bf16.msra.mxu0 %v12073_v40 }
 0x463   : > { %8799 = vmatpush1.bf16.msra.mxu1 %v12076_v38  ;;  %8759 = vmatprep.subr.bf16.mxu0 %v12081_v55 }
 0x464   : > { %8800 = vmatprep.subr.bf16.mxu1 %v12084_v5 }
 0x466   : > { %8760 = vmatpush1.bf16.msra.mxu0 %v12079_v45 }
 0x467   : > { %8801 = vmatpush1.bf16.msra.mxu1 %v12082_v27  ;;  %8761 = vmatprep.subr.bf16.mxu0 %v12087_v61  ;;  %v12139_v27 = vld [vmem:[#allocation6 + $0x728] ss:$24 sps:$4 sm:$0xff]  }
 0x468   : > { %8802 = vmatprep.subr.bf16.mxu1 %v12090_v28  ;;  %v12142_v61 = vld [vmem:[#allocation6 + $0x130] ss:$24 sps:$4 sm:$0xff]  }
 0x46a   : > { %8762 = vmatpush1.bf16.msra.mxu0 %v12085_v59 }
 0x46b   : > { %8803 = vmatpush1.bf16.msra.mxu1 %v12088_v29  ;;  %8763 = vmatprep.subr.bf16.mxu0 %v12093_v31  ;;  %v12147_v31 = vld [vmem:[#allocation6 + $0x75c] ss:$24 sps:$4 sm:$0xff]  }
 0x46c   : > { %8804 = vmatprep.subr.bf16.mxu1 %v12096_v37  ;;  %v12150_v37 = vld [vmem:[#allocation6 + $0x164] ss:$24 sps:$4 sm:$0xff]  }
 0x46e   : > { %8764 = vmatpush1.bf16.msra.mxu0 %v12091_v43 }
 0x46f   : > { %8805 = vmatpush1.bf16.msra.mxu1 %v12094_v44  ;;  %8765 = vmatprep.subr.bf16.mxu0 %v12099_v11  ;;  %v12153_v44 = vld [vmem:[#allocation6 + $0x78c] ss:$24 sps:$4 sm:$0xff]  }
 0x470   : > { %8806 = vmatprep.subr.bf16.mxu1 %v12102_v46  ;;  %v12156_v11 = vld [vmem:[#allocation6 + $0x194] ss:$24 sps:$4 sm:$0xff]   ;;  %v12151_v46 = vld [vmem:[#allocation6 + $0x788] ss:$24 sps:$4 sm:$0xff]  }
 0x472   : > { %8766 = vmatpush1.bf16.msra.mxu0 %v12097_v63  ;;  %v12154_v63 = vld [vmem:[#allocation6 + $0x190] ss:$24 sps:$4 sm:$0xff]  }
 0x473   : > { %8807 = vmatpush1.bf16.msra.mxu1 %v12100_v1  ;;  %8817 = vmatprep.subr.bf16.mxu0 %v12105_v49  ;;  %v12159_v1 = vld [vmem:[#allocation6 + $0x7bc] ss:$24 sps:$4 sm:$0xff]  }
 0x474   : > { %8858 = vmatprep.subr.bf16.mxu1 %v12108_v20  ;;  %v12162_v49 = vld [vmem:[#allocation6 + $0x1c4] ss:$24 sps:$4 sm:$0xff]   ;;  %v12157_v20 = vld [vmem:[#allocation6 + $0x7b8] ss:$24 sps:$4 sm:$0xff]  }
 0x475   : > { %8768 = vmatmul.mubr.bf16.vlgmr.msra.gmra.mrb[60].mxu0 %v12825_v2 }
 0x476   : > { %8809 = vmatmul.mubr.bf16.vlgmr.msra.gmra.mrb[60].mxu1 %v12859_v7  ;;  %8818 = vmatpush1.bf16.msra.mxu0 %v12103_v50  ;;  %v12160_v50 = vld [vmem:[#allocation6 + $0x1c0] ss:$24 sps:$4 sm:$0xff]  }
 0x477   : > { %8859 = vmatpush1.bf16.msra.mxu1 %v12106_v15  ;;  %8819 = vmatprep.subr.bf16.mxu0 %v12111_v60  ;;  %v12165_v15 = vld [vmem:[#allocation6 + $0x7ec] ss:$24 sps:$4 sm:$0xff]  }
 0x478   : > { %8860 = vmatprep.subr.bf16.mxu1 %v12114_v18  ;;  %8849 = vmatprep.mubr.bf16.mxu0 %v12839_v34  ;;  %v12168_v60 = vld [vmem:[#allocation6 + $0x1f4] ss:$24 sps:$4 sm:$0xff]   ;;  %v12163_v18 = vld [vmem:[#allocation6 + $0x7e8] ss:$24 sps:$4 sm:$0xff]  }
 0x479   : > { %8890 = vmatprep.mubr.bf16.mxu1 %v12811_v12  ;;  %v12130_v12 = vld [vmem:[#allocation6 + $0xd0] ss:$24 sps:$4 sm:$0xff]  }
 0x47a   : > { %8820 = vmatpush1.bf16.msra.mxu0 %v12109_v8  ;;  %v12166_v8 = vld [vmem:[#allocation6 + $0x1f0] ss:$24 sps:$4 sm:$0xff]  }
 0x47b   : > { %8861 = vmatpush1.bf16.msra.mxu1 %v12112_v52  ;;  %8821 = vmatprep.subr.bf16.mxu0 %v12117_v54  ;;  %v12171_v52 = vld [vmem:[#allocation6 + $0x81c] ss:$24 sps:$4 sm:$0xff]  }
 0x47c   : > { %8862 = vmatprep.subr.bf16.mxu1 %v12120_v56  ;;  %v12174_v54 = vld [vmem:[#allocation6 + $0x224] ss:$24 sps:$4 sm:$0xff]   ;;  %v12169_v56 = vld [vmem:[#allocation6 + $0x818] ss:$24 sps:$4 sm:$0xff]  }
 0x47e   : > { %8822 = vmatpush1.bf16.msra.mxu0 %v12115_v57  ;;  %v12172_v57 = vld [vmem:[#allocation6 + $0x220] ss:$24 sps:$4 sm:$0xff]  }
 0x47f   : > { %8863 = vmatpush1.bf16.msra.mxu1 %v12118_v6  ;;  %8823 = vmatprep.subr.bf16.mxu0 %v12123_v23  ;;  %v12177_v6 = vld [vmem:[#allocation6 + $0x84c] ss:$24 sps:$4 sm:$0xff]  }
 0x480   : > { %8864 = vmatprep.subr.bf16.mxu1 %v12126_v33  ;;  %v12180_v23 = vld [vmem:[#allocation6 + $0x254] ss:$24 sps:$4 sm:$0xff]   ;;  %v12175_v33 = vld [vmem:[#allocation6 + $0x848] ss:$24 sps:$4 sm:$0xff]  }
 0x482   : > { %8824 = vmatpush1.bf16.msra.mxu0 %v12121_v0  ;;  %v12178_v0 = vld [vmem:[#allocation6 + $0x250] ss:$24 sps:$4 sm:$0xff]  }
 0x483   : > { %8865 = vmatpush1.bf16.msra.mxu1 %v12124_v3  ;;  %8825 = vmatprep.subr.bf16.mxu0 %v12129_v4  ;;  %v12183_v3 = vld [vmem:[#allocation6 + $0x87c] ss:$24 sps:$4 sm:$0xff]  }
 0x484   : > { %8866 = vmatprep.subr.bf16.mxu1 %v12132_v9  ;;  %v12186_v4 = vld [vmem:[#allocation6 + $0x284] ss:$24 sps:$4 sm:$0xff]   ;;  %v12181_v9 = vld [vmem:[#allocation6 + $0x878] ss:$24 sps:$4 sm:$0xff]  }
 0x486   : > { %8826 = vmatpush1.bf16.msra.mxu0 %v12127_v30  ;;  %v12184_v30 = vld [vmem:[#allocation6 + $0x280] ss:$24 sps:$4 sm:$0xff]  }
 0x487   : > { %8867 = vmatpush1.bf16.msra.mxu1 %v12130_v12  ;;  %8827 = vmatprep.subr.bf16.mxu0 %v12135_v13  ;;  %v12189_v12 = vld [vmem:[#allocation6 + $0x8ac] ss:$24 sps:$4 sm:$0xff]  }
 0x488   : > { %8868 = vmatprep.subr.bf16.mxu1 %v12138_v35  ;;  %v6635_v26 = vpop.f32.mrb[48].mxu0  ;;  %v12192_v13 = vld [vmem:[#allocation6 + $0x2b4] ss:$24 sps:$4 sm:$0xff]   ;;  %v12187_v35 = vld [vmem:[#allocation6 + $0x8a8] ss:$24 sps:$4 sm:$0xff]  }
 0x489   : > { %v6676_v42 = vpop.f32.mrb[48].mxu1  ;;  %v6636_v10 = vadd.f32 %v6635_v26, %v12712_v16  ;;  %v6637_v40 = vpop.f32.mrb[49].mxu0  ;;  %v12145_v16 = vld [vmem:[#allocation6 + $0x758] ss:$24 sps:$4 sm:$0xff]  }
 0x48a   : > { %v6678_v38 = vpop.f32.mrb[49].mxu1  ;;  %v6638_v55 = vadd.f32 %v6637_v40, %v12717_v21  ;;  %v6639_v5 = vpop.f32.mrb[50].mxu0  ;;  %8828 = vmatpush1.bf16.msra.mxu0 %v12133_v32  ;;  %v12148_v21 = vld [vmem:[#allocation6 + $0x160] ss:$24 sps:$4 sm:$0xff]   ;;  %v12190_v32 = vld [vmem:[#allocation6 + $0x2b0] ss:$24 sps:$4 sm:$0xff]   ;;  %v6724_v40 = vlaneseq }
 0x48b   : > { %v6680_v45 = vpop.f32.mrb[50].mxu1  ;;  %8869 = vmatpush1.bf16.msra.mxu1 %v12136_v51  ;;  %v12881_v28 = vadd.f32 %v6676_v42, %v6636_v10  ;;  %v6640_v59 = vpop.f32.mrb[51].mxu0  ;;  %8829 = vmatprep.subr.bf16.mxu0 %v12141_v25  ;;  %v12195_v51 = vld [vmem:[#allocation6 + $0x8dc] ss:$24 sps:$4 sm:$0xff]   ;;  %v12196_v26 = vld [vmem:[#allocation6 + $0x2e0] ss:$24 sps:$4 sm:$0xff]  }
 0x48c   : > { %v6681_v29 = vpop.f32.mrb[51].mxu1  ;;  %8870 = vmatprep.subr.bf16.mxu1 %v12144_v41  ;;  %v12883_v43 = vadd.f32 %v6678_v38, %v6638_v55  ;;  %v12198_v25 = vld [vmem:[#allocation6 + $0x2e4] ss:$24 sps:$4 sm:$0xff]   ;;  %v12193_v41 = vld [vmem:[#allocation6 + $0x8d8] ss:$24 sps:$4 sm:$0xff]  }
 0x48d   : > { %v12201_v42 = vld [vmem:[#allocation6 + $0x314] ss:$24 sps:$4 sm:$0xff]   ;;  %v12199_v38 = vld [vmem:[#allocation6 + $0x310] ss:$24 sps:$4 sm:$0xff]   ;;  %v12207_v5 = vld [vmem:[#allocation6 + $0x344] ss:$24 sps:$4 sm:$0xff]  }
 0x48e   : > { %8830 = vmatpush1.bf16.msra.mxu0 %v12139_v27  ;;  %v12204_v10 = vld [vmem:[#allocation6 + $0x614] ss:$24 sps:$4 sm:$0xff]   ;;  %v12202_v55 = vld [vmem:[#allocation6 + $0x610] ss:$24 sps:$4 sm:$0xff]   ;;  %v12210_v45 = vld [vmem:[#allocation6 + $0x644] ss:$24 sps:$4 sm:$0xff]  }
 0x48f   : > { %8871 = vmatpush1.bf16.msra.mxu1 %v12142_v61  ;;  %8831 = vmatprep.subr.bf16.mxu0 %v12147_v31  ;;  %v12885_v27 = vshrl.u32 %v6724_v40, 7  ;;  %v12205_v61 = vld [vmem:[#allocation6 + $0x340] ss:$24 sps:$4 sm:$0xff]   ;;  %v12213_v29 = vld [vmem:[#allocation6 + $0x374] ss:$24 sps:$4 sm:$0xff]  }
 0x490   : > { %8872 = vmatprep.subr.bf16.mxu1 %v12150_v37  ;;  %v12208_v59 = vld [vmem:[#allocation6 + $0x640] ss:$24 sps:$4 sm:$0xff]   ;;  %v12216_v31 = vld [vmem:[#allocation6 + $0x674] ss:$24 sps:$4 sm:$0xff]  }
 0x491   : > { %v12891_v37 = vld [vmem:[#allocation7] sm:$0xff] }
 0x492   : > { %8832 = vmatpush1.bf16.msra.mxu0 %v12145_v16  ;;  %v12894_v16 = vsub.s32 0, %v12885_v27 }
 0x493   : > { %8873 = vmatpush1.bf16.msra.mxu1 %v12148_v21  ;;  %8833 = vmatprep.subr.bf16.mxu0 %v12153_v44  ;;  %v12896_v21 = vld [vmem:[#allocation7 + $0x8] sm:$0xff] }
 0x494   : > { %8874 = vmatprep.subr.bf16.mxu1 %v12156_v11  ;;  %v12214_v44 = vld [vmem:[#allocation6 + $0x670] ss:$24 sps:$4 sm:$0xff]   ;;  %v12219_v11 = vld [vmem:[#allocation6 + $0x3a4] ss:$24 sps:$4 sm:$0xff]  }
 0x496   : > { %8834 = vmatpush1.bf16.msra.mxu0 %v12151_v46  ;;  %v12222_v46 = vld [vmem:[#allocation6 + $0x6a4] ss:$24 sps:$4 sm:$0xff]  }
 0x497   : > { %8875 = vmatpush1.bf16.msra.mxu1 %v12154_v63  ;;  %8835 = vmatprep.subr.bf16.mxu0 %v12159_v1  ;;  %v12898_v63 = vld [vmem:[#allocation7 + $0x10] sm:$0xff]  ;;  %v12217_v1 = vld [vmem:[#allocation6 + $0x3a0] ss:$24 sps:$4 sm:$0xff]  }
 0x498   : > { %8876 = vmatprep.subr.bf16.mxu1 %v12162_v49  ;;  %v12220_v49 = vld [vmem:[#allocation6 + $0x6a0] ss:$24 sps:$4 sm:$0xff]  }
 0x49a   : > { %8836 = vmatpush1.bf16.msra.mxu0 %v12157_v20  ;;  %v6735_v20 = vrot.slane %v12898_v63, %v12894_v16 }
 0x49b   : > { %8877 = vmatpush1.bf16.msra.mxu1 %v12160_v50  ;;  %8837 = vmatprep.subr.bf16.mxu0 %v12165_v15  ;;  %v12225_v50 = vld [vmem:[#allocation6 + $0x3d4] ss:$24 sps:$4 sm:$0xff]  }
 0x49c   : > { %8878 = vmatprep.subr.bf16.mxu1 %v12168_v60  ;;  %v12228_v15 = vld [vmem:[#allocation6 + $0x6d4] ss:$24 sps:$4 sm:$0xff]   ;;  %v12906_v60 = vld [vmem:[#allocation7 + $0x18] sm:$0xff] }
 0x49e   : > { %8838 = vmatpush1.bf16.msra.mxu0 %v12163_v18 }
 0x49f   : > { %8879 = vmatpush1.bf16.msra.mxu1 %v12166_v8  ;;  %8839 = vmatprep.subr.bf16.mxu0 %v12171_v52  ;;  %v12223_v52 = vld [vmem:[#allocation6 + $0x3d0] ss:$24 sps:$4 sm:$0xff]  }
 0x4a0   : > { %8880 = vmatprep.subr.bf16.mxu1 %v12174_v54  ;;  %v12226_v54 = vld [vmem:[#allocation6 + $0x6d0] ss:$24 sps:$4 sm:$0xff]  }
 0x4a2   : > { %8840 = vmatpush1.bf16.msra.mxu0 %v12169_v56  ;;  %v12915_v56 = vadd.f32 %v6735_v20, %v12871_v53  ;;  %v12261_v20 = vld [vmem:[#allocation6 + $0x4f4] ss:$24 sps:$4 sm:$0xff]  }
 0x4a3   : > { %8881 = vmatpush1.bf16.msra.mxu1 %v12172_v57  ;;  %8841 = vmatprep.subr.bf16.mxu0 %v12177_v6  ;;  %v6739_v57 = vrot.slane %v12906_v60, %v12894_v16  ;;  %v12231_v6 = vld [vmem:[#allocation6 + $0x404] ss:$24 sps:$4 sm:$0xff]  }
 0x4a4   : > { %8882 = vmatprep.subr.bf16.mxu1 %v12180_v23  ;;  %v12234_v23 = vld [vmem:[#allocation6 + $0x704] ss:$24 sps:$4 sm:$0xff]  }
 0x4a6   : > { %8842 = vmatpush1.bf16.msra.mxu0 %v12175_v33  ;;  %v12919_v33 = vld [vmem:[#allocation7 + $0x20] sm:$0xff] }
 0x4a7   : > { %8883 = vmatpush1.bf16.msra.mxu1 %v12178_v0  ;;  %8843 = vmatprep.subr.bf16.mxu0 %v12183_v3  ;;  %v12229_v0 = vld [vmem:[#allocation6 + $0x400] ss:$24 sps:$4 sm:$0xff]  }
 0x4a8   : > { %8884 = vmatprep.subr.bf16.mxu1 %v12186_v4  ;;  %v12232_v3 = vld [vmem:[#allocation6 + $0x700] ss:$24 sps:$4 sm:$0xff]   ;;  %v12927_v4 = vadd.f32 %v6739_v57, %v12873_v62  ;;  %v12270_v57 = vld [vmem:[#allocation6 + $0x824] ss:$24 sps:$4 sm:$0xff]  }
 0x4aa   : > { %8844 = vmatpush1.bf16.msra.mxu0 %v12181_v9  ;;  %v6743_v9 = vrot.slane %v12919_v33, %v12894_v16 }
 0x4ab   : > { %8885 = vmatpush1.bf16.msra.mxu1 %v12184_v30  ;;  %8845 = vmatprep.subr.bf16.mxu0 %v12189_v12  ;;  %v12237_v30 = vld [vmem:[#allocation6 + $0x434] ss:$24 sps:$4 sm:$0xff]  }
 0x4ac   : > { %8886 = vmatprep.subr.bf16.mxu1 %v12192_v13  ;;  %v12240_v12 = vld [vmem:[#allocation6 + $0x734] ss:$24 sps:$4 sm:$0xff]  }
 0x4ae   : > { %8846 = vmatpush1.bf16.msra.mxu0 %v12187_v35 }
 0x4af   : > { %8887 = vmatpush1.bf16.msra.mxu1 %v12190_v32  ;;  %8847 = vmatprep.subr.bf16.mxu0 %v12195_v51 }
 0x4b0   : > { %8888 = vmatprep.subr.bf16.mxu1 %v12198_v25 }
 0x4b2   : > { %8848 = vmatpush1.bf16.msra.mxu0 %v12193_v41 }
 0x4b3   : > { %8889 = vmatpush1.bf16.msra.mxu1 %v12196_v26  ;;  %8899 = vmatprep.subr.bf16.mxu0 %v12201_v42 }
 0x4b4   : > { %8940 = vmatprep.subr.bf16.mxu1 %v12204_v10 }
 0x4b5   : > { %8850 = vmatmul.mubr.bf16.vlgmr.msra.gmra.mrb[64].mxu0 %v12863_v14 }
 0x4b6   : > { %8891 = vmatmul.mubr.bf16.vlgmr.msra.gmra.mrb[64].mxu1 %v12825_v2  ;;  %8900 = vmatpush1.bf16.msra.mxu0 %v12199_v38  ;;  %v12211_v2 = vld [vmem:[#allocation6 + $0x370] ss:$24 sps:$4 sm:$0xff]  }
 0x4b7   : > { %8941 = vmatpush1.bf16.msra.mxu1 %v12202_v55  ;;  %8901 = vmatprep.subr.bf16.mxu0 %v12207_v5  ;;  %v12235_v38 = vld [vmem:[#allocation6 + $0x430] ss:$24 sps:$4 sm:$0xff]  }
 0x4b8   : > { %8942 = vmatprep.subr.bf16.mxu1 %v12210_v45  ;;  %8931 = vmatprep.mubr.bf16.mxu0 %v12835_v17  ;;  %v6727_v17 = vrot.slane %v12891_v37, %v12894_v16  ;;  %v12238_v55 = vld [vmem:[#allocation6 + $0x730] ss:$24 sps:$4 sm:$0xff]  }
 0x4b9   : > { %8972 = vmatprep.mubr.bf16.mxu1 %v12839_v34  ;;  %v6731_v34 = vrot.slane %v12896_v21, %v12894_v16 }
 0x4ba   : > { %8902 = vmatpush1.bf16.msra.mxu0 %v12205_v61  ;;  %v12909_v18 = vadd.f32 %v6727_v17, %v12846_v19  ;;  %v12243_v61 = vld [vmem:[#allocation6 + $0x464] ss:$24 sps:$4 sm:$0xff]  }
 0x4bb   : > { %8943 = vmatpush1.bf16.msra.mxu1 %v12208_v59  ;;  %8903 = vmatprep.subr.bf16.mxu0 %v12213_v29  ;;  %v12912_v8 = vadd.f32 %v6731_v34, %v12852_v24  ;;  %v12923_v24 = vld [vmem:[#allocation7 + $0x28] sm:$0xff]  ;;  %v12246_v59 = vld [vmem:[#allocation6 + $0x764] ss:$24 sps:$4 sm:$0xff]   ;;  %v12241_v29 = vld [vmem:[#allocation6 + $0x460] ss:$24 sps:$4 sm:$0xff]  }
 0x4bc   : > { %8944 = vmatprep.subr.bf16.mxu1 %v12216_v31  ;;  %v6747_v32 = vrot.slane %v12923_v24, %v12894_v16  ;;  %v12244_v31 = vld [vmem:[#allocation6 + $0x760] ss:$24 sps:$4 sm:$0xff]   ;;  %v12255_v17 = vld [vmem:[#allocation6 + $0x4c4] ss:$24 sps:$4 sm:$0xff]  }
 0x4bd   : > { %v6754_v19 = vadd.f32 %v12912_v8, %v12909_v18  ;;  %v12258_v34 = vld [vmem:[#allocation6 + $0x7c4] ss:$24 sps:$4 sm:$0xff]  }
 0x4be   : > { %8904 = vmatpush1.bf16.msra.mxu0 %v12211_v2  ;;  %v12249_v2 = vld [vmem:[#allocation6 + $0x494] ss:$24 sps:$4 sm:$0xff]  }
 0x4bf   : > { %8945 = vmatpush1.bf16.msra.mxu1 %v12214_v44  ;;  %8905 = vmatprep.subr.bf16.mxu0 %v12219_v11  ;;  %v6755_v53 = vadd.f32 %v6754_v19, %v12915_v56  ;;  %v12252_v44 = vld [vmem:[#allocation6 + $0x794] ss:$24 sps:$4 sm:$0xff]   ;;  %v12247_v11 = vld [vmem:[#allocation6 + $0x490] ss:$24 sps:$4 sm:$0xff]  }
 0x4c0   : > { %8946 = vmatprep.subr.bf16.mxu1 %v12222_v46  ;;  %v12250_v46 = vld [vmem:[#allocation6 + $0x790] ss:$24 sps:$4 sm:$0xff]   ;;  %v12273_v19 = vld [vmem:[#allocation6 + $0x554] ss:$24 sps:$4 sm:$0xff]  }
 0x4c2   : > { %8906 = vmatpush1.bf16.msra.mxu0 %v12217_v1  ;;  %v12253_v1 = vld [vmem:[#allocation6 + $0x4c0] ss:$24 sps:$4 sm:$0xff]  }
 0x4c3   : > { %8947 = vmatpush1.bf16.msra.mxu1 %v12220_v49  ;;  %8907 = vmatprep.subr.bf16.mxu0 %v12225_v50  ;;  %v12256_v49 = vld [vmem:[#allocation6 + $0x7c0] ss:$24 sps:$4 sm:$0xff]   ;;  %v12264_v50 = vld [vmem:[#allocation6 + $0x7f4] ss:$24 sps:$4 sm:$0xff]  }
 0x4c4   : > { %8948 = vmatprep.subr.bf16.mxu1 %v12228_v15  ;;  %v12259_v15 = vld [vmem:[#allocation6 + $0x4f0] ss:$24 sps:$4 sm:$0xff]  }
 0x4c6   : > { %8908 = vmatpush1.bf16.msra.mxu0 %v12223_v52  ;;  %v12262_v52 = vld [vmem:[#allocation6 + $0x7f0] ss:$24 sps:$4 sm:$0xff]  }
 0x4c7   : > { %8949 = vmatpush1.bf16.msra.mxu1 %v12226_v54  ;;  %8909 = vmatprep.subr.bf16.mxu0 %v12231_v6  ;;  %v12267_v54 = vld [vmem:[#allocation6 + $0x524] ss:$24 sps:$4 sm:$0xff]   ;;  %v12265_v6 = vld [vmem:[#allocation6 + $0x520] ss:$24 sps:$4 sm:$0xff]  }
 0x4c8   : > { %8950 = vmatprep.subr.bf16.mxu1 %v12234_v23  ;;  %v6717_v13 = vpop.f32.mrb[52].mxu0  ;;  %v12268_v23 = vld [vmem:[#allocation6 + $0x820] ss:$24 sps:$4 sm:$0xff]  }
 0x4c9   : > { %v8646_v35 = vpop.f32.mrb[52].mxu1  ;;  %v6718_v51 = vadd.f32 %v6717_v13, %v12881_v28  ;;  %v6719_v41 = vpop.f32.mrb[53].mxu0  ;;  %v12280_v13 = vld [vmem:[#allocation6 + $0x880] ss:$24 sps:$4 sm:$0xff]  }
 0x4ca   : > { %v12935_v25 = vadd.f32 %v8646_v35, %v12745_v47  ;;  %v8648_v62 = vpop.f32.mrb[53].mxu1  ;;  %v6720_v26 = vadd.f32 %v6719_v41, %v12883_v43  ;;  %v6721_v10 = vpop.f32.mrb[54].mxu0  ;;  %8910 = vmatpush1.bf16.msra.mxu0 %v12229_v0  ;;  %v6756_v47 = vadd.f32 %v6755_v53, %v12927_v4  ;;  %v12276_v0 = vld [vmem:[#allocation6 + $0x854] ss:$24 sps:$4 sm:$0xff]   ;;  %v12274_v53 = vld [vmem:[#allocation6 + $0x850] ss:$24 sps:$4 sm:$0xff]  }
 0x4cb   : > { %v12939_v42 = vadd.f32 %v8648_v62, %v12747_v48  ;;  %v8650_v40 = vpop.f32.mrb[54].mxu1  ;;  %8951 = vmatpush1.bf16.msra.mxu1 %v12232_v3  ;;  %v12941_v5 = vadd.f32 %v6743_v9, %v6718_v51  ;;  %v6722_v45 = vpop.f32.mrb[55].mxu0  ;;  %8911 = vmatprep.subr.bf16.mxu0 %v12237_v30  ;;  %v12271_v3 = vld [vmem:[#allocation6 + $0x550] ss:$24 sps:$4 sm:$0xff]   ;;  %v12279_v9 = vld [vmem:[#allocation6 + $0x584] ss:$24 sps:$4 sm:$0xff]  }
 0x4cc   : > { %v8651_v28 = vpop.f32.mrb[55].mxu1  ;;  %8952 = vmatprep.subr.bf16.mxu1 %v12240_v12  ;;  %v12944_v43 = vadd.f32 %v6747_v32, %v6720_v26  ;;  %v12282_v30 = vld [vmem:[#allocation6 + $0x884] ss:$24 sps:$4 sm:$0xff]   ;;  %v12277_v12 = vld [vmem:[#allocation6 + $0x580] ss:$24 sps:$4 sm:$0xff]  }
 0x4cd   : > { %v6757_v48 = vadd.f32 %v6756_v47, %v12941_v5  ;;  %v12285_v35 = vld [vmem:[#allocation6 + $0x5b4] ss:$24 sps:$4 sm:$0xff]   ;;  %v12283_v51 = vld [vmem:[#allocation6 + $0x5b0] ss:$24 sps:$4 sm:$0xff]   ;;  %v12291_v62 = vld [vmem:[#allocation6 + $0x5e4] ss:$24 sps:$4 sm:$0xff]  }
 0x4ce   : > { %8912 = vmatpush1.bf16.msra.mxu0 %v12235_v38  ;;  %v12288_v32 = vld [vmem:[#allocation6 + $0x8b4] ss:$24 sps:$4 sm:$0xff]   ;;  %v12286_v41 = vld [vmem:[#allocation6 + $0x8b0] ss:$24 sps:$4 sm:$0xff]   ;;  %v12294_v26 = vld [vmem:[#allocation6 + $0x8e4] ss:$24 sps:$4 sm:$0xff]  }
 0x4cf   : > { %8953 = vmatpush1.bf16.msra.mxu1 %v12238_v55  ;;  %v6758_v16 = vadd.f32 %v6757_v48, %v12944_v43  ;;  %8913 = vmatprep.subr.bf16.mxu0 %v12243_v61  ;;  %v12289_v10 = vld [vmem:[#allocation6 + $0x5e0] ss:$24 sps:$4 sm:$0xff]  }
 0x4d0   : > { %8954 = vmatprep.subr.bf16.mxu1 %v12246_v59  ;;  %v12292_v40 = vld [vmem:[#allocation6 + $0x8e0] ss:$24 sps:$4 sm:$0xff]  }
 0x4d1   : > { %6759 = vadd.xlane.f32.xlu0 %v6758_v16 }
 0x4d2   : > { %8914 = vmatpush1.bf16.msra.mxu0 %v12241_v29 }
 0x4d3   : > { %8955 = vmatpush1.bf16.msra.mxu1 %v12244_v31  ;;  %8915 = vmatprep.subr.bf16.mxu0 %v12249_v2 }
 0x4d4   : > { %8956 = vmatprep.subr.bf16.mxu1 %v12252_v44 }
 0x4d6   : > { %8916 = vmatpush1.bf16.msra.mxu0 %v12247_v11 }
 0x4d7   : > { %8957 = vmatpush1.bf16.msra.mxu1 %v12250_v46  ;;  %8917 = vmatprep.subr.bf16.mxu0 %v12255_v17 }
 0x4d8   : > { %8958 = vmatprep.subr.bf16.mxu1 %v12258_v34 }
 0x4da   : > { %8918 = vmatpush1.bf16.msra.mxu0 %v12253_v1 }
 0x4db   : > { %8959 = vmatpush1.bf16.msra.mxu1 %v12256_v49  ;;  %8919 = vmatprep.subr.bf16.mxu0 %v12261_v20 }
 0x4dc   : > { %8960 = vmatprep.subr.bf16.mxu1 %v12264_v50 }
 0x4de   : > { %8920 = vmatpush1.bf16.msra.mxu0 %v12259_v15 }
 0x4df   : > { %8961 = vmatpush1.bf16.msra.mxu1 %v12262_v52  ;;  %8921 = vmatprep.subr.bf16.mxu0 %v12267_v54 }
 0x4e0   : > { %8962 = vmatprep.subr.bf16.mxu1 %v12270_v57 }
 0x4e2   : > { %8922 = vmatpush1.bf16.msra.mxu0 %v12265_v6 }
 0x4e3   : > { %8963 = vmatpush1.bf16.msra.mxu1 %v12268_v23  ;;  %8923 = vmatprep.subr.bf16.mxu0 %v12273_v19 }
 0x4e4   : > { %8964 = vmatprep.subr.bf16.mxu1 %v12276_v0 }
 0x4e6   : > { %8924 = vmatpush1.bf16.msra.mxu0 %v12271_v3 }
 0x4e7   : > { %8965 = vmatpush1.bf16.msra.mxu1 %v12274_v53  ;;  %8925 = vmatprep.subr.bf16.mxu0 %v12279_v9 }
 0x4e8   : > { %8966 = vmatprep.subr.bf16.mxu1 %v12282_v30 }
 0x4ea   : > { %8926 = vmatpush1.bf16.msra.mxu0 %v12277_v12 }
 0x4eb   : > { %8967 = vmatpush1.bf16.msra.mxu1 %v12280_v13  ;;  %8927 = vmatprep.subr.bf16.mxu0 %v12285_v35 }
 0x4ec   : > { %8968 = vmatprep.subr.bf16.mxu1 %v12288_v32 }
 0x4ee   : > { %8928 = vmatpush1.bf16.msra.mxu0 %v12283_v51 }
 0x4ef   : > { %8969 = vmatpush1.bf16.msra.mxu1 %v12286_v41  ;;  %8929 = vmatprep.subr.bf16.mxu0 %v12291_v62 }
 0x4f0   : > { %8970 = vmatprep.subr.bf16.mxu1 %v12294_v26 }
 0x4f2   : > { %8930 = vmatpush1.bf16.msra.mxu0 %v12289_v10 }
 0x4f3   : > { %8971 = vmatpush1.bf16.msra.mxu1 %v12292_v40 }
 0x4f5   : > { %8932 = vmatmul.mubr.bf16.vlgmr.msra.gmra.mrb[68].mxu0 %v12859_v7 }
 0x4f6   : > { %8973 = vmatmul.mubr.bf16.vlgmr.msra.gmra.mrb[68].mxu1 %v12863_v14 }
 0x508   : > { %v8687_v38 = vpop.f32.mrb[56].mxu0 }
 0x509   : > { %v8728_v55 = vpop.f32.mrb[56].mxu1  ;;  %v8688_v45 = vadd.f32 %v8687_v38, %v12935_v25  ;;  %v8689_v28 = vpop.f32.mrb[57].mxu0  ;;  %v8983_v38 = vsub.s32 3, %v12885_v27 }
 0x50a   : > { %v8730_v47 = vpop.f32.mrb[57].mxu1  ;;  %v8690_v61 = vadd.f32 %v8689_v28, %v12939_v42  ;;  %v8691_v59 = vpop.f32.mrb[58].mxu0 }
 0x50b   : > { %v8732_v48 = vpop.f32.mrb[58].mxu1  ;;  %v8729_v29 = vadd.f32 %v8728_v55, %v8688_v45  ;;  %v8692_v31 = vpop.f32.mrb[59].mxu0  ;;  %v8984_v55 = vrot.slane %v12891_v37, %v8983_v38  ;;  %v8988_v45 = vrot.slane %v12896_v21, %v8983_v38  ;;  %v8992_v28 = vrot.slane %v12898_v63, %v8983_v38 }
 0x50c   : > { %v8733_v16 = vpop.f32.mrb[59].mxu1  ;;  %v8731_v2 = vadd.f32 %v8730_v47, %v8690_v61 }
 0x50d   : > { %v12990_v47 = vadd.f32 %v8984_v55, %v8729_v29 }
 0x548   : > { %v8769_v44 = vpop.f32.mrb[60].mxu0 }
 0x549   : > { %v8810_v11 = vpop.f32.mrb[60].mxu1  ;;  %v8770_v7 = vadd.f32 %v8769_v44, %v12783_v36  ;;  %v8771_v46 = vpop.f32.mrb[61].mxu0 }
 0x54a   : > { %v8812_v14 = vpop.f32.mrb[61].mxu1  ;;  %v8772_v17 = vadd.f32 %v8771_v46, %v12788_v39  ;;  %v8773_v34 = vpop.f32.mrb[62].mxu0 }
 0x54b   : > { %v8814_v25 = vpop.f32.mrb[62].mxu1  ;;  %v8811_v1 = vadd.f32 %v8810_v11, %v8770_v7  ;;  %v8774_v49 = vpop.f32.mrb[63].mxu0  ;;  %v9000_v7 = vrot.slane %v12919_v33, %v8983_v38 }
 0x54c   : > { %v8815_v20 = vpop.f32.mrb[63].mxu1  ;;  %v8813_v42 = vadd.f32 %v8812_v14, %v8772_v17  ;;  %v9004_v14 = vrot.slane %v12923_v24, %v8983_v38 }
 0x55e   : > { %v6760_v50 = vpop.xlane.xlu0 %6759 }
 0x55f   : > { %v6762_v15 = vmul.f32 0.0013020834, %v6760_v50 }
 0x561   : > { %v12955_v52 = vsub.f32 %v12909_v18, %v6762_v15  ;;  %v12958_v54 = vsub.f32 %v12912_v8, %v6762_v15  ;;  %v12961_v36 = vsub.f32 %v12915_v56, %v6762_v15  ;;  %v12964_v57 = vsub.f32 %v12927_v4, %v6762_v15 }
 0x562   : > { %v12971_v23 = vsub.f32 %v12941_v5, %v6762_v15  ;;  %v12976_v19 = vsub.f32 %v12944_v43, %v6762_v15 }
 0x563   : > { %v6769_v39 = vmul.f32 %v12955_v52, %v12955_v52  ;;  %v6770_v6 = vmul.f32 %v12958_v54, %v12958_v54  ;;  %v6771_v18 = vmul.f32 %v12961_v36, %v12961_v36  ;;  %v6772_v56 = vmul.f32 %v12964_v57, %v12964_v57 }
 0x564   : > { %v6773_v0 = vmul.f32 %v12971_v23, %v12971_v23  ;;  %v6774_v53 = vmul.f32 %v12976_v19, %v12976_v19 }
 0x565   : > { %v6775_v8 = vadd.f32 %v6770_v6, %v6769_v39 }
 0x567   : > { %v6776_v4 = vadd.f32 %v6775_v8, %v6771_v18 }
 0x569   : > { %v6777_v3 = vadd.f32 %v6776_v4, %v6772_v56  ;;  %v6793_v4 = vsub.s32 1, %v12885_v27 }
 0x56b   : > { %v6778_v5 = vadd.f32 %v6777_v3, %v6773_v0  ;;  %v6823_v0 = vsub.s32 2, %v12885_v27  ;;  %v12299_v3 = vld [vmem:[%s12628_s17] sm:$0xff] }
 0x56d   : > { %v6779_v9 = vadd.f32 %v6778_v5, %v6774_v53  ;;  %v6851_v53 = vunpack.c.l.bf16 %v12299_v3  ;;  %v6852_v5 = vunpack.c.h.bf16 %v12299_v3 }
 0x56f   : > { %6780 = vadd.xlane.f32.xlu1 %v6779_v9  ;;  %v12300_v9 = vld [vmem:[%s12628_s17 + $0x8] sm:$0xff] }
 0x588   : > { %v8851_v30 = vpop.f32.mrb[64].mxu0 }
 0x589   : > { %v8892_v12 = vpop.f32.mrb[64].mxu1  ;;  %v8852_v13 = vadd.f32 %v8851_v30, %v8811_v1  ;;  %v8853_v35 = vpop.f32.mrb[65].mxu0  ;;  %v6853_v30 = vunpack.c.l.bf16 %v12300_v9 }
 0x58a   : > { %v8893_v43 = vadd.f32 %v8892_v12, %v12796_v22  ;;  %v8894_v32 = vpop.f32.mrb[65].mxu1  ;;  %v8854_v51 = vadd.f32 %v8853_v35, %v8813_v42  ;;  %v8855_v62 = vpop.f32.mrb[66].mxu0  ;;  %v12992_v22 = vadd.f32 %v8988_v45, %v8731_v2  ;;  %v6854_v12 = vunpack.c.h.bf16 %v12300_v9 }
 0x58b   : > { %v8895_v41 = vadd.f32 %v8894_v32, %v12798_v58  ;;  %v8896_v26 = vpop.f32.mrb[66].mxu1  ;;  %v8856_v10 = vpop.f32.mrb[67].mxu0  ;;  %v12994_v61 = vadd.f32 %v8992_v28, %v8852_v13  ;;  %v8996_v58 = vrot.slane %v12906_v60, %v8983_v38  ;;  %v6794_v13 = vrot.slane %v12891_v37, %v6793_v4 }
 0x58c   : > { %v8897_v40 = vpop.f32.mrb[67].mxu1  ;;  %v9011_v59 = vadd.f32 %v12992_v22, %v12990_v47  ;;  %v6798_v35 = vrot.slane %v12896_v21, %v6793_v4  ;;  %v6828_v32 = vrot.slane %v12896_v21, %v6823_v0  ;;  %v6832_v26 = vrot.slane %v12898_v63, %v6823_v0 }
 0x58d   : > { %v13000_v44 = vadd.f32 %v8996_v58, %v8854_v51  ;;  %v6802_v51 = vrot.slane %v12898_v63, %v6793_v4  ;;  %v6836_v10 = vrot.slane %v12906_v60, %v6823_v0  ;;  %v6810_v40 = vrot.slane %v12919_v33, %v6793_v4 }
 0x58e   : > { %v9012_v16 = vadd.f32 %v9011_v59, %v12994_v61  ;;  %v6814_v38 = vrot.slane %v12923_v24, %v6793_v4  ;;  %v6840_v59 = vrot.slane %v12919_v33, %v6823_v0 }
 0x590   : > { %v9013_v42 = vadd.f32 %v9012_v16, %v13000_v44 }
 0x5c8   : > { %v8933_v48 = vpop.f32.mrb[68].mxu0 }
 0x5c9   : > { %v8974_v31 = vpop.f32.mrb[68].mxu1  ;;  %v8934_v11 = vadd.f32 %v8933_v48, %v8893_v43  ;;  %v8935_v29 = vpop.f32.mrb[69].mxu0  ;;  %v6824_v43 = vrot.slane %v12891_v37, %v6823_v0  ;;  %v6844_v48 = vrot.slane %v12923_v24, %v6823_v0 }
 0x5ca   : > { %v8976_v46 = vpop.f32.mrb[69].mxu1  ;;  %v8936_v2 = vadd.f32 %v8935_v29, %v8895_v41  ;;  %v8937_v17 = vpop.f32.mrb[70].mxu0  ;;  %v6806_v41 = vrot.slane %v12906_v60, %v6793_v4 }
 0x5cb   : > { %v8978_v34 = vpop.f32.mrb[70].mxu1  ;;  %v8975_v25 = vadd.f32 %v8974_v31, %v8934_v11  ;;  %v8938_v1 = vpop.f32.mrb[71].mxu0 }
 0x5cc   : > { %v8979_v49 = vpop.f32.mrb[71].mxu1  ;;  %v8977_v20 = vadd.f32 %v8976_v46, %v8936_v2 }
 0x5cd   : > { %v13005_v50 = vadd.f32 %v9000_v7, %v8975_v25 }
 0x5ce   : > { %v13007_v15 = vadd.f32 %v9004_v14, %v8977_v20 }
 0x5cf   : > { %v9014_v39 = vadd.f32 %v9013_v42, %v13005_v50 }
 0x5d1   : > { %v9015_v6 = vadd.f32 %v9014_v39, %v13007_v15 }
 0x5d3   : > { %9016 = vadd.xlane.f32.xlu0 %v9015_v6 }
 0x5fc   : > { %v6781_v18 = vpop.xlane.xlu1 %6780 }
 0x5fd   : > { %v6782_v8 = vmul.f32 0.0013020834, %v6781_v18 }
 0x5ff   : > { %v6783_v56 = vadd.f32 1e-05, %v6782_v8 }
 0x601   : > { %12295 = vrsqrt.f32 %v6783_v56 }
 0x60b   : > { %v12296_v62 = vpop.eup %12295 }
 0x60c   : > { %v6785_v55 = vmul.f32 %v12296_v62, %v12955_v52  ;;  %v6786_v45 = vmul.f32 %v12296_v62, %v12958_v54  ;;  %v6787_v28 = vmul.f32 %v12296_v62, %v12961_v36  ;;  %v6788_v58 = vmul.f32 %v12296_v62, %v12964_v57  ;;  %v12301_v52 = vld [vmem:[%s12628_s17 + $0x10] sm:$0xff] }
 0x60d   : > { %v6789_v31 = vmul.f32 %v12296_v62, %v12971_v23  ;;  %v6790_v16 = vmul.f32 %v12296_v62, %v12976_v19  ;;  %v6855_v2 = vunpack.c.l.bf16 %v12301_v52  ;;  %v6856_v54 = vunpack.c.h.bf16 %v12301_v52 }
 0x60e   : > { %v6815_v11 = vmul.f32 %v6794_v13, %v6785_v55  ;;  %v6816_v7 = vmul.f32 %v6798_v35, %v6786_v45  ;;  %v6817_v29 = vmul.f32 %v6802_v51, %v6787_v28  ;;  %v6818_v46 = vmul.f32 %v6806_v41, %v6788_v58  ;;  %v12302_v55 = vld [vmem:[%s12804_s13] sm:$0xff] }
 0x60f   : > { %v6819_v14 = vmul.f32 %v6810_v40, %v6789_v31  ;;  %v6820_v36 = vmul.f32 %v6814_v38, %v6790_v16  ;;  %v9079_v38 = vsub.s32 5, %v12885_v27  ;;  %v9107_v45 = vunpack.c.l.bf16 %v12302_v55  ;;  %v12303_v31 = vld [vmem:[%s12804_s13 + $0x8] sm:$0xff] }
 0x610   : > { %v6845_v17 = vadd.f32 %v6824_v43, %v6815_v11  ;;  %v6846_v57 = vadd.f32 %v6828_v32, %v6816_v7  ;;  %v6847_v34 = vadd.f32 %v6832_v26, %v6817_v29  ;;  %v6848_v25 = vadd.f32 %v6836_v10, %v6818_v46 }
 0x611   : > { %v6849_v1 = vadd.f32 %v6840_v59, %v6819_v14  ;;  %v6850_v49 = vadd.f32 %v6844_v48, %v6820_v36  ;;  %v9080_v58 = vrot.slane %v12891_v37, %v9079_v38  ;;  %v9084_v48 = vrot.slane %v12896_v21, %v9079_v38 }
 0x612   : > { %v6857_v20 = vadd.f32 %v6851_v53, %v6845_v17  ;;  %v6858_v23 = vadd.f32 %v6852_v5, %v6846_v57  ;;  %v6859_v42 = vadd.f32 %v6853_v30, %v6847_v34  ;;  %v6860_v19 = vadd.f32 %v6854_v12, %v6848_v25 }
 0x613   : > { %v6861_v39 = vadd.f32 %v6855_v2, %v6849_v1  ;;  %v6862_v6 = vadd.f32 %v6856_v54, %v6850_v49  ;;  %v9109_v16 = vunpack.c.l.bf16 %v12303_v31  ;;  %v9110_v11 = vunpack.c.h.bf16 %v12303_v31 }
 0x614   : > { %v10488_v18 = vpack.c.bf16 %v6858_v23, %v6857_v20  ;;  %v10489_v8 = vpack.c.bf16 %v6860_v19, %v6859_v42  ;;  %v9092_v52 = vrot.slane %v12906_v60, %v9079_v38  ;;  %v9096_v17 = vrot.slane %v12919_v33, %v9079_v38  ;;  %v12304_v23 = vld [vmem:[%s12804_s13 + $0x10] sm:$0xff] }
 0x615   : > { %v10490_v56 = vpack.c.bf16 %v6862_v6, %v6861_v39  ;;  %v9100_v57 = vrot.slane %v12923_v24, %v9079_v38  ;;  %v9112_v42 = vunpack.c.h.bf16 %v12304_v23 }
 0x616   : > { %9143 = vst [vmem:[%s13038_s19] sm:$0xff] %v10488_v18  ;;  %9144 = vst [vmem:[%s13038_s19 + $0x8] sm:$0xff] %v10489_v8 }
 0x617   : > { %9145 = vst [vmem:[%s13038_s19 + $0x10] sm:$0xff] %v10490_v56 }
 0x660   : > { %v9017_v4 = vpop.xlane.xlu0 %9016 }
 0x661   : > { %v9018_v0 = vmul.f32 0.0013020834, %v9017_v4 }
 0x663   : > { %v9019_v3 = vsub.f32 %v12990_v47, %v9018_v0  ;;  %v9020_v53 = vsub.f32 %v12992_v22, %v9018_v0  ;;  %v9021_v5 = vsub.f32 %v12994_v61, %v9018_v0  ;;  %v9022_v9 = vsub.f32 %v13000_v44, %v9018_v0 }
 0x664   : > { %v9023_v13 = vsub.f32 %v13005_v50, %v9018_v0  ;;  %v9024_v32 = vsub.f32 %v13007_v15, %v9018_v0  ;;  %v9049_v50 = vsub.s32 4, %v12885_v27  ;;  %v9108_v15 = vunpack.c.h.bf16 %v12302_v55 }
 0x665   : > { %v9025_v30 = vmul.f32 %v9019_v3, %v9019_v3  ;;  %v9026_v12 = vmul.f32 %v9020_v53, %v9020_v53  ;;  %v9027_v43 = vmul.f32 %v9021_v5, %v9021_v5  ;;  %v9028_v51 = vmul.f32 %v9022_v9, %v9022_v9 }
 0x666   : > { %v9029_v62 = vmul.f32 %v9023_v13, %v9023_v13  ;;  %v9030_v47 = vmul.f32 %v9024_v32, %v9024_v32  ;;  %v9050_v28 = vrot.slane %v12891_v37, %v9049_v50  ;;  %v9054_v59 = vrot.slane %v12896_v21, %v9049_v50 }
 0x667   : > { %v9031_v35 = vadd.f32 %v9026_v12, %v9025_v30  ;;  %v9058_v7 = vrot.slane %v12898_v63, %v9049_v50  ;;  %v9062_v29 = vrot.slane %v12906_v60, %v9049_v50  ;;  %v9088_v27 = vrot.slane %v12898_v63, %v9079_v38 }
 0x668   : > { %v9066_v2 = vrot.slane %v12919_v33, %v9049_v50  ;;  %v9070_v37 = vrot.slane %v12923_v24, %v9049_v50  ;;  %v9111_v60 = vunpack.c.l.bf16 %v12304_v23 }
 0x669   : > { %v9032_v41 = vadd.f32 %v9031_v35, %v9027_v43 }
 0x66b   : > { %v9033_v26 = vadd.f32 %v9032_v41, %v9028_v51 }
 0x66d   : > { %v9034_v10 = vadd.f32 %v9033_v26, %v9029_v62 }
 0x66f   : > { %v9035_v22 = vadd.f32 %v9034_v10, %v9030_v47 }
 0x671   : > { %9036 = vadd.xlane.f32.xlu1 %v9035_v22 }
 0x6fe   : > { %v9037_v61 = vpop.xlane.xlu1 %9036 }
 0x6ff   : > { %v9038_v44 = vmul.f32 0.0013020834, %v9037_v61 }
 0x701   : > { %v9039_v40 = vadd.f32 1e-05, %v9038_v44 }
 0x703   : > { %12297 = vrsqrt.f32 %v9039_v40 }
 0x70d   : > { %v12298_v46 = vpop.eup %12297 }
 0x70e   : > { %v9041_v54 = vmul.f32 %v12298_v46, %v9019_v3  ;;  %v9042_v14 = vmul.f32 %v12298_v46, %v9020_v53  ;;  %v9043_v21 = vmul.f32 %v12298_v46, %v9021_v5  ;;  %v9044_v36 = vmul.f32 %v12298_v46, %v9022_v9 }
 0x70f   : > { %v9045_v34 = vmul.f32 %v12298_v46, %v9023_v13  ;;  %v9046_v25 = vmul.f32 %v12298_v46, %v9024_v32 }
 0x710   : > { %v9071_v1 = vmul.f32 %v9050_v28, %v9041_v54  ;;  %v9072_v49 = vmul.f32 %v9054_v59, %v9042_v14  ;;  %v9073_v63 = vmul.f32 %v9058_v7, %v9043_v21  ;;  %v9074_v20 = vmul.f32 %v9062_v29, %v9044_v36 }
 0x711   : > { %v9075_v19 = vmul.f32 %v9066_v2, %v9045_v34  ;;  %v9076_v39 = vmul.f32 %v9070_v37, %v9046_v25 }
 0x712   : > { %v9101_v6 = vadd.f32 %v9080_v58, %v9071_v1  ;;  %v9102_v18 = vadd.f32 %v9084_v48, %v9072_v49  ;;  %v9103_v8 = vadd.f32 %v9088_v27, %v9073_v63  ;;  %v9104_v33 = vadd.f32 %v9092_v52, %v9074_v20 }
 0x713   : > { %v9105_v56 = vadd.f32 %v9096_v17, %v9075_v19  ;;  %v9106_v24 = vadd.f32 %v9100_v57, %v9076_v39 }
 0x714   : > { %v9113_v4 = vadd.f32 %v9107_v45, %v9101_v6  ;;  %v9114_v0 = vadd.f32 %v9108_v15, %v9102_v18  ;;  %v9115_v3 = vadd.f32 %v9109_v16, %v9103_v8  ;;  %v9116_v53 = vadd.f32 %v9110_v11, %v9104_v33 }
 0x715   : > { %v9117_v5 = vadd.f32 %v9111_v60, %v9105_v56  ;;  %v9118_v9 = vadd.f32 %v9112_v42, %v9106_v24 }
 0x716   : > { %v10491_v30 = vpack.c.bf16 %v9114_v0, %v9113_v4  ;;  %v10492_v12 = vpack.c.bf16 %v9116_v53, %v9115_v3 }
 0x717   : > { %v10493_v13 = vpack.c.bf16 %v9118_v9, %v9117_v5 }
 0x718   : > { %9170 = vst [vmem:[%s13038_s19 + $0x18] sm:$0xff] %v10491_v30  ;;  %9171 = vst [vmem:[%s13038_s19 + $0x20] sm:$0xff] %v10492_v12 }
 0x719   : > { %9172 = vst [vmem:[%s13038_s19 + $0x28] sm:$0xff] %v10493_v13 }
 0x71a PF: > { %s20_s24 = sadd.s32 1, %s12435_s24  }
 0x71b   : > { %p17_p1 = scmp.ge.s32.totalorder %s20_s24, 4  }
 0x71d   :  { %19 = sbr.rel (!%p17_p1) target bundleno = 3 (0x3), region = 101 }
 0x724   :  { %9194 = vsyncpa [#allocation3], 1 }
 0x725   :  { %9196 = vsyncpa [#allocation3 + $0x1], 1 }
 0x726   :  { %9197 = vsyncpa [#allocation5], 1 }
 0x727   :  { %9198 = vsyncpa [#allocation8], 1 }

</bundles_post_ra>
